<compile_context>
chip_gen: v7x
topology: tpu7x:2x2x1
jax: 0.10.0
libtpu: 0.0.40
codegen_flags: <defaults>
</compile_context>

<pallas_src>
import jax
import jax.numpy as jnp
from jax.experimental import pallas as pl
from jax.experimental.pallas import tpu as pltpu

F32 = jnp.float32
TAPS = tuple((di, dj) for di in range(3) for dj in range(3))


# ---------------------------------------------------------------------------
# Fused forward kernel (one grid step == one batch sample)
# ---------------------------------------------------------------------------
def _net_kernel(x_ref, bd1_ref, b1_ref, sr1_ref, sc1_ref,
                bd2_ref, b2_ref, sr2_ref, sc2_ref,
                wf1_ref, bf1_ref, wf2_ref, bf2_ref, wf3_ref, bf3_ref,
                out_ref):
    x = x_ref[0]                                            # (32, 32), Cin = 1

    # ---- conv1 (1->6, 3x3 valid) + ReLU; activation layout (30, 30*6) ----
    acc = jnp.zeros((30, 180), F32)
    for t, (di, dj) in enumerate(TAPS):
        acc += jnp.dot(x[di:di + 30, dj:dj + 30], bd1_ref[t],
                       preferred_element_type=F32)
    y1 = jnp.maximum(acc + b1_ref[...], 0.0)

    # ---- 2x2 / stride-2 max pool -> (15, 15*6) ----
    m = jnp.maximum(y1[0:29, :], y1[1:30, :])               # row-pair max
    m = jnp.maximum(m[:, 0:174], m[:, 6:180])               # col-pair max (neighbor j is +C=6)
    p1 = jnp.dot(sr1_ref[...], m, preferred_element_type=F32)    # keep even rows
    p1 = jnp.dot(p1, sc1_ref[...], preferred_element_type=F32)   # keep even cols

    # ---- conv2 (6->16, 3x3 valid) + ReLU; activation layout (13, 13*16) ----
    acc = jnp.zeros((13, 208), F32)
    for t, (di, dj) in enumerate(TAPS):
        acc += jnp.dot(p1[di:di + 13, dj * 6:(dj + 13) * 6], bd2_ref[t],
                       preferred_element_type=F32)
    y2 = jnp.maximum(acc + b2_ref[...], 0.0)

    # ---- 2x2 / stride-2 max pool (floor: drops row/col 12) -> (6, 6*16) ----
    m = jnp.maximum(y2[0:12, :], y2[1:13, :])
    m = jnp.maximum(m[:, 0:192], m[:, 16:208])
    p2 = jnp.dot(sr2_ref[...], m, preferred_element_type=F32)
    p2 = jnp.dot(p2, sc2_ref[...], preferred_element_type=F32)   # (6, 96)

    # ---- fc1 (576->120) + ReLU; flatten is implicit (fc1 rows pre-permuted) ----
    h = jnp.zeros((1, 120), F32)
    for i in range(6):
        h += jnp.dot(p2[i:i + 1, :], wf1_ref[i * 96:(i + 1) * 96, :],
                     preferred_element_type=F32)
    h = jnp.maximum(h + bf1_ref[...], 0.0)

    # ---- fc2 (120->84) + ReLU ----
    h = jnp.maximum(jnp.dot(h, wf2_ref[...], preferred_element_type=F32)
                    + bf2_ref[...], 0.0)

    # ---- fc3 (84->10) ----
    out_ref[0] = (jnp.dot(h, wf3_ref[...], preferred_element_type=F32)
                  + bf3_ref[...])


# ---------------------------------------------------------------------------
# Parameters (PyTorch-style) and one-time host-side repack into kernel layout
# ---------------------------------------------------------------------------
def init_params(key):
    """Deterministic synthetic init (PyTorch-style uniform +-1/sqrt(fan_in)).

    fc weights are stored as (in, out); a real PyTorch state_dict would need `.T`.
    """
    def uniform(k, shape, fan_in):
        bound = 1.0 / float(fan_in) ** 0.5
        return jax.random.uniform(k, shape, F32, -bound, bound)

    ks = jax.random.split(key, 10)
    return {
        "conv1_w": uniform(ks[0], (6, 1, 3, 3), 9),
        "conv1_b": uniform(ks[1], (6,), 9),
        "conv2_w": uniform(ks[2], (16, 6, 3, 3), 54),
        "conv2_b": uniform(ks[3], (16,), 54),
        "fc1_w": uniform(ks[4], (576, 120), 576),
        "fc1_b": uniform(ks[5], (120,), 576),
        "fc2_w": uniform(ks[6], (120, 84), 120),
        "fc2_b": uniform(ks[7], (84,), 120),
        "fc3_w": uniform(ks[8], (84, 10), 84),
        "fc3_b": uniform(ks[9], (10,), 84),
    }


def prepare_params(p):
    """One-time repack: block-diagonal conv taps, pool selectors, fc1 row permutation."""
    eye = lambda n: jnp.eye(n, dtype=F32)

    def tap_blockdiag(w_oikk, width):
        # (Cout, Cin, 3, 3) -> stack over the 9 taps of kron(I_width, W_tap[ci, co])
        mats = []
        for di in range(3):
            for dj in range(3):
                w_tap = jnp.transpose(w_oikk[:, :, di, dj], (1, 0)).astype(F32)
                mats.append(jnp.kron(eye(width), w_tap))
        return jnp.stack(mats, axis=0)

    def pool_selectors(hc, wc, c):
        hp, wp = hc // 2, wc // 2
        sr = (jnp.arange(hc - 1)[None, :] == 2 * jnp.arange(hp)[:, None]).astype(F32)
        sel = (jnp.arange(wc - 1)[:, None] == 2 * jnp.arange(wp)[None, :]).astype(F32)
        return sr, jnp.kron(sel, eye(c))

    sr1, sc1 = pool_selectors(30, 30, 6)        # (15, 29), (174, 90)
    sr2, sc2 = pool_selectors(13, 13, 16)       # (6, 12),  (192, 96)

    # Kernel flatten index is i*96 + j*16 + c ; PyTorch x.view(-1, 576) uses c*36 + i*6 + j.
    i_idx, j_idx, c_idx = jnp.meshgrid(jnp.arange(6), jnp.arange(6), jnp.arange(16),
                                       indexing="ij")
    perm = (c_idx * 36 + i_idx * 6 + j_idx).reshape(-1)

    return {
        "bd1": tap_blockdiag(p["conv1_w"], 30),               # (9, 30, 180)
        "b1": jnp.tile(p["conv1_b"].astype(F32), 30)[None],   # (1, 180)
        "sr1": sr1, "sc1": sc1,
        "bd2": tap_blockdiag(p["conv2_w"], 13),               # (9, 78, 208)
        "b2": jnp.tile(p["conv2_b"].astype(F32), 13)[None],   # (1, 208)
        "sr2": sr2, "sc2": sc2,
        "wf1": p["fc1_w"].astype(F32)[perm, :],               # (576, 120), rows permuted
        "bf1": p["fc1_b"].astype(F32)[None],
        "wf2": p["fc2_w"].astype(F32),
        "bf2": p["fc2_b"].astype(F32)[None],
        "wf3": p["fc3_w"].astype(F32),
        "bf3": p["fc3_b"].astype(F32)[None],
    }


# ---------------------------------------------------------------------------
# Forward wrapper: a single pallas_call over the batch
# ---------------------------------------------------------------------------
@jax.jit
def net_forward(kp, x_nchw):
    n = x_nchw.shape[0]
    x = x_nchw.astype(F32).reshape(n, 32, 32)               # NCHW, C == 1

    def full(shape):
        return pl.BlockSpec(shape, lambda b: (0,) * len(shape))

    out = pl.pallas_call(
        _net_kernel,
        out_shape=jax.ShapeDtypeStruct((n, 1, 10), F32),
        grid=(n,),
        in_specs=[
            pl.BlockSpec((1, 32, 32), lambda b: (b, 0, 0)),
            full((9, 30, 180)), full((1, 180)), full((15, 29)), full((174, 90)),
            full((9, 78, 208)), full((1, 208)), full((6, 12)), full((192, 96)),
            full((576, 120)), full((1, 120)),
            full((120, 84)), full((1, 84)),
            full((84, 10)), full((1, 10)),
        ],
        out_specs=pl.BlockSpec((1, 1, 10), lambda b: (b, 0, 0)),
        compiler_params=pltpu.CompilerParams(
            dimension_semantics=("parallel",),
            vmem_limit_bytes=32 * 1024 * 1024,
        ),
    )(x, kp["bd1"], kp["b1"], kp["sr1"], kp["sc1"],
      kp["bd2"], kp["b2"], kp["sr2"], kp["sc2"],
      kp["wf1"], kp["bf1"], kp["wf2"], kp["bf2"], kp["wf3"], kp["bf3"])
    return out.reshape(n, 10)


if __name__ == "__main__":
    key = jax.random.PRNGKey(0)
    pkey, xkey = jax.random.split(key)
    params = init_params(pkey)
    kparams = prepare_params(params)        # one-time host-side repack
    # The module implies 32x32 single-channel inputs (16*6*6 flat features).
    x = jax.random.normal(xkey, (2, 1, 32, 32), F32)
    out = jax.block_until_ready(net_forward(kparams, x))
    assert out.shape == (2, 10)
    print("KERNEL_OK")
</pallas_src>

<mosaic_0001>
module attributes {stable_mosaic.version = 11 : i64} {
  func.func @_net_kernel(%arg0: i32, %arg1: memref<1x32x32xf32, #tpu.memory_space<vmem>>, %arg2: memref<9x30x180xf32, #tpu.memory_space<vmem>>, %arg3: memref<1x180xf32, #tpu.memory_space<vmem>>, %arg4: memref<15x29xf32, #tpu.memory_space<vmem>>, %arg5: memref<174x90xf32, #tpu.memory_space<vmem>>, %arg6: memref<9x78x208xf32, #tpu.memory_space<vmem>>, %arg7: memref<1x208xf32, #tpu.memory_space<vmem>>, %arg8: memref<6x12xf32, #tpu.memory_space<vmem>>, %arg9: memref<192x96xf32, #tpu.memory_space<vmem>>, %arg10: memref<576x120xf32, #tpu.memory_space<vmem>>, %arg11: memref<1x120xf32, #tpu.memory_space<vmem>>, %arg12: memref<120x84xf32, #tpu.memory_space<vmem>>, %arg13: memref<1x84xf32, #tpu.memory_space<vmem>>, %arg14: memref<84x10xf32, #tpu.memory_space<vmem>>, %arg15: memref<1x10xf32, #tpu.memory_space<vmem>>, %arg16: memref<1x1x10xf32, #tpu.memory_space<vmem>>) attributes {dimension_semantics = [#tpu.dimension_semantics<parallel>], iteration_bounds = array<i64: 2>, scalar_prefetch = 0 : i64, scratch_operands = 0 : i64, tpu.core_type = #tpu.core_type<tc>, window_params = [{transform_indices = @transform_0, window_bounds = array<i64: 1, 32, 32>}, {pipeline_mode = #tpu.pipeline_mode<synchronous>, transform_indices = @transform_1, window_bounds = array<i64: 9, 30, 180>}, {pipeline_mode = #tpu.pipeline_mode<synchronous>, transform_indices = @transform_2, window_bounds = array<i64: 1, 180>}, {pipeline_mode = #tpu.pipeline_mode<synchronous>, transform_indices = @transform_3, window_bounds = array<i64: 15, 29>}, {pipeline_mode = #tpu.pipeline_mode<synchronous>, transform_indices = @transform_4, window_bounds = array<i64: 174, 90>}, {pipeline_mode = #tpu.pipeline_mode<synchronous>, transform_indices = @transform_5, window_bounds = array<i64: 9, 78, 208>}, {pipeline_mode = #tpu.pipeline_mode<synchronous>, transform_indices = @transform_6, window_bounds = array<i64: 1, 208>}, {pipeline_mode = #tpu.pipeline_mode<synchronous>, transform_indices = @transform_7, window_bounds = array<i64: 6, 12>}, {pipeline_mode = #tpu.pipeline_mode<synchronous>, transform_indices = @transform_8, window_bounds = array<i64: 192, 96>}, {pipeline_mode = #tpu.pipeline_mode<synchronous>, transform_indices = @transform_9, window_bounds = array<i64: 576, 120>}, {pipeline_mode = #tpu.pipeline_mode<synchronous>, transform_indices = @transform_10, window_bounds = array<i64: 1, 120>}, {pipeline_mode = #tpu.pipeline_mode<synchronous>, transform_indices = @transform_11, window_bounds = array<i64: 120, 84>}, {pipeline_mode = #tpu.pipeline_mode<synchronous>, transform_indices = @transform_12, window_bounds = array<i64: 1, 84>}, {pipeline_mode = #tpu.pipeline_mode<synchronous>, transform_indices = @transform_13, window_bounds = array<i64: 84, 10>}, {pipeline_mode = #tpu.pipeline_mode<synchronous>, transform_indices = @transform_14, window_bounds = array<i64: 1, 10>}, {transform_indices = @transform_15, window_bounds = array<i64: 1, 1, 10>}]} {
    %c0 = arith.constant 0 : index
    %c0_0 = arith.constant 0 : index
    %c0_1 = arith.constant 0 : index
    %0 = vector.load %arg1[%c0, %c0_0, %c0_1] : memref<1x32x32xf32, #tpu.memory_space<vmem>>, vector<1x32x32xf32>
    %1 = vector.shape_cast %0 : vector<1x32x32xf32> to vector<32x32xf32>
    %cst = arith.constant 0.000000e+00 : f32
    %2 = vector.broadcast %cst : f32 to vector<30x180xf32>
    %3 = vector.extract_strided_slice %1 {offsets = [0, 0], sizes = [30, 30], strides = [1, 1]} : vector<32x32xf32> to vector<30x30xf32>
    %c0_2 = arith.constant 0 : index
    %c0_3 = arith.constant 0 : index
    %c0_4 = arith.constant 0 : index
    %4 = vector.load %arg2[%c0_2, %c0_3, %c0_4] : memref<9x30x180xf32, #tpu.memory_space<vmem>>, vector<1x30x180xf32>
    %5 = vector.shape_cast %4 : vector<1x30x180xf32> to vector<30x180xf32>
    %cst_5 = arith.constant dense<0.000000e+00> : vector<30x180xf32>
    %6 = tpu.matmul %3, %5, %cst_5 {dimension_numbers = #tpu.dot_dimension_numbers<[1], [0], [0], [1], [0, 0, 1, 1], [], []>} : vector<30x30xf32>, vector<30x180xf32>, vector<30x180xf32> -> vector<30x180xf32>
    %7 = arith.addf %2, %6 : vector<30x180xf32>
    %8 = vector.extract_strided_slice %1 {offsets = [0, 1], sizes = [30, 30], strides = [1, 1]} : vector<32x32xf32> to vector<30x30xf32>
    %c1 = arith.constant 1 : index
    %c0_6 = arith.constant 0 : index
    %c0_7 = arith.constant 0 : index
    %9 = vector.load %arg2[%c1, %c0_6, %c0_7] : memref<9x30x180xf32, #tpu.memory_space<vmem>>, vector<1x30x180xf32>
    %10 = vector.shape_cast %9 : vector<1x30x180xf32> to vector<30x180xf32>
    %cst_8 = arith.constant dense<0.000000e+00> : vector<30x180xf32>
    %11 = tpu.matmul %8, %10, %cst_8 {dimension_numbers = #tpu.dot_dimension_numbers<[1], [0], [0], [1], [0, 0, 1, 1], [], []>} : vector<30x30xf32>, vector<30x180xf32>, vector<30x180xf32> -> vector<30x180xf32>
    %12 = arith.addf %7, %11 : vector<30x180xf32>
    %13 = vector.extract_strided_slice %1 {offsets = [0, 2], sizes = [30, 30], strides = [1, 1]} : vector<32x32xf32> to vector<30x30xf32>
    %c2 = arith.constant 2 : index
    %c0_9 = arith.constant 0 : index
    %c0_10 = arith.constant 0 : index
    %14 = vector.load %arg2[%c2, %c0_9, %c0_10] : memref<9x30x180xf32, #tpu.memory_space<vmem>>, vector<1x30x180xf32>
    %15 = vector.shape_cast %14 : vector<1x30x180xf32> to vector<30x180xf32>
    %cst_11 = arith.constant dense<0.000000e+00> : vector<30x180xf32>
    %16 = tpu.matmul %13, %15, %cst_11 {dimension_numbers = #tpu.dot_dimension_numbers<[1], [0], [0], [1], [0, 0, 1, 1], [], []>} : vector<30x30xf32>, vector<30x180xf32>, vector<30x180xf32> -> vector<30x180xf32>
    %17 = arith.addf %12, %16 : vector<30x180xf32>
    %18 = vector.extract_strided_slice %1 {offsets = [1, 0], sizes = [30, 30], strides = [1, 1]} : vector<32x32xf32> to vector<30x30xf32>
    %c3 = arith.constant 3 : index
    %c0_12 = arith.constant 0 : index
    %c0_13 = arith.constant 0 : index
    %19 = vector.load %arg2[%c3, %c0_12, %c0_13] : memref<9x30x180xf32, #tpu.memory_space<vmem>>, vector<1x30x180xf32>
    %20 = vector.shape_cast %19 : vector<1x30x180xf32> to vector<30x180xf32>
    %cst_14 = arith.constant dense<0.000000e+00> : vector<30x180xf32>
    %21 = tpu.matmul %18, %20, %cst_14 {dimension_numbers = #tpu.dot_dimension_numbers<[1], [0], [0], [1], [0, 0, 1, 1], [], []>} : vector<30x30xf32>, vector<30x180xf32>, vector<30x180xf32> -> vector<30x180xf32>
    %22 = arith.addf %17, %21 : vector<30x180xf32>
    %23 = vector.extract_strided_slice %1 {offsets = [1, 1], sizes = [30, 30], strides = [1, 1]} : vector<32x32xf32> to vector<30x30xf32>
    %c4 = arith.constant 4 : index
    %c0_15 = arith.constant 0 : index
    %c0_16 = arith.constant 0 : index
    %24 = vector.load %arg2[%c4, %c0_15, %c0_16] : memref<9x30x180xf32, #tpu.memory_space<vmem>>, vector<1x30x180xf32>
    %25 = vector.shape_cast %24 : vector<1x30x180xf32> to vector<30x180xf32>
    %cst_17 = arith.constant dense<0.000000e+00> : vector<30x180xf32>
    %26 = tpu.matmul %23, %25, %cst_17 {dimension_numbers = #tpu.dot_dimension_numbers<[1], [0], [0], [1], [0, 0, 1, 1], [], []>} : vector<30x30xf32>, vector<30x180xf32>, vector<30x180xf32> -> vector<30x180xf32>
    %27 = arith.addf %22, %26 : vector<30x180xf32>
    %28 = vector.extract_strided_slice %1 {offsets = [1, 2], sizes = [30, 30], strides = [1, 1]} : vector<32x32xf32> to vector<30x30xf32>
    %c5 = arith.constant 5 : index
    %c0_18 = arith.constant 0 : index
    %c0_19 = arith.constant 0 : index
    %29 = vector.load %arg2[%c5, %c0_18, %c0_19] : memref<9x30x180xf32, #tpu.memory_space<vmem>>, vector<1x30x180xf32>
    %30 = vector.shape_cast %29 : vector<1x30x180xf32> to vector<30x180xf32>
    %cst_20 = arith.constant dense<0.000000e+00> : vector<30x180xf32>
    %31 = tpu.matmul %28, %30, %cst_20 {dimension_numbers = #tpu.dot_dimension_numbers<[1], [0], [0], [1], [0, 0, 1, 1], [], []>} : vector<30x30xf32>, vector<30x180xf32>, vector<30x180xf32> -> vector<30x180xf32>
    %32 = arith.addf %27, %31 : vector<30x180xf32>
    %33 = vector.extract_strided_slice %1 {offsets = [2, 0], sizes = [30, 30], strides = [1, 1]} : vector<32x32xf32> to vector<30x30xf32>
    %c6 = arith.constant 6 : index
    %c0_21 = arith.constant 0 : index
    %c0_22 = arith.constant 0 : index
    %34 = vector.load %arg2[%c6, %c0_21, %c0_22] : memref<9x30x180xf32, #tpu.memory_space<vmem>>, vector<1x30x180xf32>
    %35 = vector.shape_cast %34 : vector<1x30x180xf32> to vector<30x180xf32>
    %cst_23 = arith.constant dense<0.000000e+00> : vector<30x180xf32>
    %36 = tpu.matmul %33, %35, %cst_23 {dimension_numbers = #tpu.dot_dimension_numbers<[1], [0], [0], [1], [0, 0, 1, 1], [], []>} : vector<30x30xf32>, vector<30x180xf32>, vector<30x180xf32> -> vector<30x180xf32>
    %37 = arith.addf %32, %36 : vector<30x180xf32>
    %38 = vector.extract_strided_slice %1 {offsets = [2, 1], sizes = [30, 30], strides = [1, 1]} : vector<32x32xf32> to vector<30x30xf32>
    %c7 = arith.constant 7 : index
    %c0_24 = arith.constant 0 : index
    %c0_25 = arith.constant 0 : index
    %39 = vector.load %arg2[%c7, %c0_24, %c0_25] : memref<9x30x180xf32, #tpu.memory_space<vmem>>, vector<1x30x180xf32>
    %40 = vector.shape_cast %39 : vector<1x30x180xf32> to vector<30x180xf32>
    %cst_26 = arith.constant dense<0.000000e+00> : vector<30x180xf32>
    %41 = tpu.matmul %38, %40, %cst_26 {dimension_numbers = #tpu.dot_dimension_numbers<[1], [0], [0], [1], [0, 0, 1, 1], [], []>} : vector<30x30xf32>, vector<30x180xf32>, vector<30x180xf32> -> vector<30x180xf32>
    %42 = arith.addf %37, %41 : vector<30x180xf32>
    %43 = vector.extract_strided_slice %1 {offsets = [2, 2], sizes = [30, 30], strides = [1, 1]} : vector<32x32xf32> to vector<30x30xf32>
    %c8 = arith.constant 8 : index
    %c0_27 = arith.constant 0 : index
    %c0_28 = arith.constant 0 : index
    %44 = vector.load %arg2[%c8, %c0_27, %c0_28] : memref<9x30x180xf32, #tpu.memory_space<vmem>>, vector<1x30x180xf32>
    %45 = vector.shape_cast %44 : vector<1x30x180xf32> to vector<30x180xf32>
    %cst_29 = arith.constant dense<0.000000e+00> : vector<30x180xf32>
    %46 = tpu.matmul %43, %45, %cst_29 {dimension_numbers = #tpu.dot_dimension_numbers<[1], [0], [0], [1], [0, 0, 1, 1], [], []>} : vector<30x30xf32>, vector<30x180xf32>, vector<30x180xf32> -> vector<30x180xf32>
    %47 = arith.addf %42, %46 : vector<30x180xf32>
    %c0_30 = arith.constant 0 : index
    %c0_31 = arith.constant 0 : index
    %48 = vector.load %arg3[%c0_30, %c0_31] : memref<1x180xf32, #tpu.memory_space<vmem>>, vector<1x180xf32>
    %49 = vector.broadcast %48 : vector<1x180xf32> to vector<30x180xf32>
    %50 = arith.addf %47, %49 : vector<30x180xf32>
    %cst_32 = arith.constant 0.000000e+00 : f32
    %51 = vector.broadcast %cst_32 : f32 to vector<30x180xf32>
    %52 = arith.maximumf %50, %51 : vector<30x180xf32>
    %53 = vector.extract_strided_slice %52 {offsets = [0, 0], sizes = [29, 180], strides = [1, 1]} : vector<30x180xf32> to vector<29x180xf32>
    %54 = vector.extract_strided_slice %52 {offsets = [1, 0], sizes = [29, 180], strides = [1, 1]} : vector<30x180xf32> to vector<29x180xf32>
    %55 = arith.maximumf %53, %54 : vector<29x180xf32>
    %56 = vector.extract_strided_slice %55 {offsets = [0, 0], sizes = [29, 174], strides = [1, 1]} : vector<29x180xf32> to vector<29x174xf32>
    %57 = vector.extract_strided_slice %55 {offsets = [0, 6], sizes = [29, 174], strides = [1, 1]} : vector<29x180xf32> to vector<29x174xf32>
    %58 = arith.maximumf %56, %57 : vector<29x174xf32>
    %c0_33 = arith.constant 0 : index
    %c0_34 = arith.constant 0 : index
    %59 = vector.load %arg4[%c0_33, %c0_34] : memref<15x29xf32, #tpu.memory_space<vmem>>, vector<15x29xf32>
    %cst_35 = arith.constant dense<0.000000e+00> : vector<15x174xf32>
    %60 = tpu.matmul %59, %58, %cst_35 {dimension_numbers = #tpu.dot_dimension_numbers<[1], [0], [0], [1], [0, 0, 1, 1], [], []>} : vector<15x29xf32>, vector<29x174xf32>, vector<15x174xf32> -> vector<15x174xf32>
    %c0_36 = arith.constant 0 : index
    %c0_37 = arith.constant 0 : index
    %61 = vector.load %arg5[%c0_36, %c0_37] : memref<174x90xf32, #tpu.memory_space<vmem>>, vector<174x90xf32>
    %cst_38 = arith.constant dense<0.000000e+00> : vector<15x90xf32>
    %62 = tpu.matmul %60, %61, %cst_38 {dimension_numbers = #tpu.dot_dimension_numbers<[1], [0], [0], [1], [0, 0, 1, 1], [], []>} : vector<15x174xf32>, vector<174x90xf32>, vector<15x90xf32> -> vector<15x90xf32>
    %cst_39 = arith.constant 0.000000e+00 : f32
    %63 = vector.broadcast %cst_39 : f32 to vector<13x208xf32>
    %64 = vector.extract_strided_slice %62 {offsets = [0, 0], sizes = [13, 78], strides = [1, 1]} : vector<15x90xf32> to vector<13x78xf32>
    %c0_40 = arith.constant 0 : index
    %c0_41 = arith.constant 0 : index
    %c0_42 = arith.constant 0 : index
    %65 = vector.load %arg6[%c0_40, %c0_41, %c0_42] : memref<9x78x208xf32, #tpu.memory_space<vmem>>, vector<1x78x208xf32>
    %66 = vector.shape_cast %65 : vector<1x78x208xf32> to vector<78x208xf32>
    %cst_43 = arith.constant dense<0.000000e+00> : vector<13x208xf32>
    %67 = tpu.matmul %64, %66, %cst_43 {dimension_numbers = #tpu.dot_dimension_numbers<[1], [0], [0], [1], [0, 0, 1, 1], [], []>} : vector<13x78xf32>, vector<78x208xf32>, vector<13x208xf32> -> vector<13x208xf32>
    %68 = arith.addf %63, %67 : vector<13x208xf32>
    %69 = vector.extract_strided_slice %62 {offsets = [0, 6], sizes = [13, 78], strides = [1, 1]} : vector<15x90xf32> to vector<13x78xf32>
    %c1_44 = arith.constant 1 : index
    %c0_45 = arith.constant 0 : index
    %c0_46 = arith.constant 0 : index
    %70 = vector.load %arg6[%c1_44, %c0_45, %c0_46] : memref<9x78x208xf32, #tpu.memory_space<vmem>>, vector<1x78x208xf32>
    %71 = vector.shape_cast %70 : vector<1x78x208xf32> to vector<78x208xf32>
    %cst_47 = arith.constant dense<0.000000e+00> : vector<13x208xf32>
    %72 = tpu.matmul %69, %71, %cst_47 {dimension_numbers = #tpu.dot_dimension_numbers<[1], [0], [0], [1], [0, 0, 1, 1], [], []>} : vector<13x78xf32>, vector<78x208xf32>, vector<13x208xf32> -> vector<13x208xf32>
    %73 = arith.addf %68, %72 : vector<13x208xf32>
    %74 = vector.extract_strided_slice %62 {offsets = [0, 12], sizes = [13, 78], strides = [1, 1]} : vector<15x90xf32> to vector<13x78xf32>
    %c2_48 = arith.constant 2 : index
    %c0_49 = arith.constant 0 : index
    %c0_50 = arith.constant 0 : index
    %75 = vector.load %arg6[%c2_48, %c0_49, %c0_50] : memref<9x78x208xf32, #tpu.memory_space<vmem>>, vector<1x78x208xf32>
    %76 = vector.shape_cast %75 : vector<1x78x208xf32> to vector<78x208xf32>
    %cst_51 = arith.constant dense<0.000000e+00> : vector<13x208xf32>
    %77 = tpu.matmul %74, %76, %cst_51 {dimension_numbers = #tpu.dot_dimension_numbers<[1], [0], [0], [1], [0, 0, 1, 1], [], []>} : vector<13x78xf32>, vector<78x208xf32>, vector<13x208xf32> -> vector<13x208xf32>
    %78 = arith.addf %73, %77 : vector<13x208xf32>
    %79 = vector.extract_strided_slice %62 {offsets = [1, 0], sizes = [13, 78], strides = [1, 1]} : vector<15x90xf32> to vector<13x78xf32>
    %c3_52 = arith.constant 3 : index
    %c0_53 = arith.constant 0 : index
    %c0_54 = arith.constant 0 : index
    %80 = vector.load %arg6[%c3_52, %c0_53, %c0_54] : memref<9x78x208xf32, #tpu.memory_space<vmem>>, vector<1x78x208xf32>
    %81 = vector.shape_cast %80 : vector<1x78x208xf32> to vector<78x208xf32>
    %cst_55 = arith.constant dense<0.000000e+00> : vector<13x208xf32>
    %82 = tpu.matmul %79, %81, %cst_55 {dimension_numbers = #tpu.dot_dimension_numbers<[1], [0], [0], [1], [0, 0, 1, 1], [], []>} : vector<13x78xf32>, vector<78x208xf32>, vector<13x208xf32> -> vector<13x208xf32>
    %83 = arith.addf %78, %82 : vector<13x208xf32>
    %84 = vector.extract_strided_slice %62 {offsets = [1, 6], sizes = [13, 78], strides = [1, 1]} : vector<15x90xf32> to vector<13x78xf32>
    %c4_56 = arith.constant 4 : index
    %c0_57 = arith.constant 0 : index
    %c0_58 = arith.constant 0 : index
    %85 = vector.load %arg6[%c4_56, %c0_57, %c0_58] : memref<9x78x208xf32, #tpu.memory_space<vmem>>, vector<1x78x208xf32>
    %86 = vector.shape_cast %85 : vector<1x78x208xf32> to vector<78x208xf32>
    %cst_59 = arith.constant dense<0.000000e+00> : vector<13x208xf32>
    %87 = tpu.matmul %84, %86, %cst_59 {dimension_numbers = #tpu.dot_dimension_numbers<[1], [0], [0], [1], [0, 0, 1, 1], [], []>} : vector<13x78xf32>, vector<78x208xf32>, vector<13x208xf32> -> vector<13x208xf32>
    %88 = arith.addf %83, %87 : vector<13x208xf32>
    %89 = vector.extract_strided_slice %62 {offsets = [1, 12], sizes = [13, 78], strides = [1, 1]} : vector<15x90xf32> to vector<13x78xf32>
    %c5_60 = arith.constant 5 : index
    %c0_61 = arith.constant 0 : index
    %c0_62 = arith.constant 0 : index
    %90 = vector.load %arg6[%c5_60, %c0_61, %c0_62] : memref<9x78x208xf32, #tpu.memory_space<vmem>>, vector<1x78x208xf32>
    %91 = vector.shape_cast %90 : vector<1x78x208xf32> to vector<78x208xf32>
    %cst_63 = arith.constant dense<0.000000e+00> : vector<13x208xf32>
    %92 = tpu.matmul %89, %91, %cst_63 {dimension_numbers = #tpu.dot_dimension_numbers<[1], [0], [0], [1], [0, 0, 1, 1], [], []>} : vector<13x78xf32>, vector<78x208xf32>, vector<13x208xf32> -> vector<13x208xf32>
    %93 = arith.addf %88, %92 : vector<13x208xf32>
    %94 = vector.extract_strided_slice %62 {offsets = [2, 0], sizes = [13, 78], strides = [1, 1]} : vector<15x90xf32> to vector<13x78xf32>
    %c6_64 = arith.constant 6 : index
    %c0_65 = arith.constant 0 : index
    %c0_66 = arith.constant 0 : index
    %95 = vector.load %arg6[%c6_64, %c0_65, %c0_66] : memref<9x78x208xf32, #tpu.memory_space<vmem>>, vector<1x78x208xf32>
    %96 = vector.shape_cast %95 : vector<1x78x208xf32> to vector<78x208xf32>
    %cst_67 = arith.constant dense<0.000000e+00> : vector<13x208xf32>
    %97 = tpu.matmul %94, %96, %cst_67 {dimension_numbers = #tpu.dot_dimension_numbers<[1], [0], [0], [1], [0, 0, 1, 1], [], []>} : vector<13x78xf32>, vector<78x208xf32>, vector<13x208xf32> -> vector<13x208xf32>
    %98 = arith.addf %93, %97 : vector<13x208xf32>
    %99 = vector.extract_strided_slice %62 {offsets = [2, 6], sizes = [13, 78], strides = [1, 1]} : vector<15x90xf32> to vector<13x78xf32>
    %c7_68 = arith.constant 7 : index
    %c0_69 = arith.constant 0 : index
    %c0_70 = arith.constant 0 : index
    %100 = vector.load %arg6[%c7_68, %c0_69, %c0_70] : memref<9x78x208xf32, #tpu.memory_space<vmem>>, vector<1x78x208xf32>
    %101 = vector.shape_cast %100 : vector<1x78x208xf32> to vector<78x208xf32>
    %cst_71 = arith.constant dense<0.000000e+00> : vector<13x208xf32>
    %102 = tpu.matmul %99, %101, %cst_71 {dimension_numbers = #tpu.dot_dimension_numbers<[1], [0], [0], [1], [0, 0, 1, 1], [], []>} : vector<13x78xf32>, vector<78x208xf32>, vector<13x208xf32> -> vector<13x208xf32>
    %103 = arith.addf %98, %102 : vector<13x208xf32>
    %104 = vector.extract_strided_slice %62 {offsets = [2, 12], sizes = [13, 78], strides = [1, 1]} : vector<15x90xf32> to vector<13x78xf32>
    %c8_72 = arith.constant 8 : index
    %c0_73 = arith.constant 0 : index
    %c0_74 = arith.constant 0 : index
    %105 = vector.load %arg6[%c8_72, %c0_73, %c0_74] : memref<9x78x208xf32, #tpu.memory_space<vmem>>, vector<1x78x208xf32>
    %106 = vector.shape_cast %105 : vector<1x78x208xf32> to vector<78x208xf32>
    %cst_75 = arith.constant dense<0.000000e+00> : vector<13x208xf32>
    %107 = tpu.matmul %104, %106, %cst_75 {dimension_numbers = #tpu.dot_dimension_numbers<[1], [0], [0], [1], [0, 0, 1, 1], [], []>} : vector<13x78xf32>, vector<78x208xf32>, vector<13x208xf32> -> vector<13x208xf32>
    %108 = arith.addf %103, %107 : vector<13x208xf32>
    %c0_76 = arith.constant 0 : index
    %c0_77 = arith.constant 0 : index
    %109 = vector.load %arg7[%c0_76, %c0_77] : memref<1x208xf32, #tpu.memory_space<vmem>>, vector<1x208xf32>
    %110 = vector.broadcast %109 : vector<1x208xf32> to vector<13x208xf32>
    %111 = arith.addf %108, %110 : vector<13x208xf32>
    %cst_78 = arith.constant 0.000000e+00 : f32
    %112 = vector.broadcast %cst_78 : f32 to vector<13x208xf32>
    %113 = arith.maximumf %111, %112 : vector<13x208xf32>
    %114 = vector.extract_strided_slice %113 {offsets = [0, 0], sizes = [12, 208], strides = [1, 1]} : vector<13x208xf32> to vector<12x208xf32>
    %115 = vector.extract_strided_slice %113 {offsets = [1, 0], sizes = [12, 208], strides = [1, 1]} : vector<13x208xf32> to vector<12x208xf32>
    %116 = arith.maximumf %114, %115 : vector<12x208xf32>
    %117 = vector.extract_strided_slice %116 {offsets = [0, 0], sizes = [12, 192], strides = [1, 1]} : vector<12x208xf32> to vector<12x192xf32>
    %118 = vector.extract_strided_slice %116 {offsets = [0, 16], sizes = [12, 192], strides = [1, 1]} : vector<12x208xf32> to vector<12x192xf32>
    %119 = arith.maximumf %117, %118 : vector<12x192xf32>
    %c0_79 = arith.constant 0 : index
    %c0_80 = arith.constant 0 : index
    %120 = vector.load %arg8[%c0_79, %c0_80] : memref<6x12xf32, #tpu.memory_space<vmem>>, vector<6x12xf32>
    %cst_81 = arith.constant dense<0.000000e+00> : vector<6x192xf32>
    %121 = tpu.matmul %120, %119, %cst_81 {dimension_numbers = #tpu.dot_dimension_numbers<[1], [0], [0], [1], [0, 0, 1, 1], [], []>} : vector<6x12xf32>, vector<12x192xf32>, vector<6x192xf32> -> vector<6x192xf32>
    %c0_82 = arith.constant 0 : index
    %c0_83 = arith.constant 0 : index
    %122 = vector.load %arg9[%c0_82, %c0_83] : memref<192x96xf32, #tpu.memory_space<vmem>>, vector<192x96xf32>
    %cst_84 = arith.constant dense<0.000000e+00> : vector<6x96xf32>
    %123 = tpu.matmul %121, %122, %cst_84 {dimension_numbers = #tpu.dot_dimension_numbers<[1], [0], [0], [1], [0, 0, 1, 1], [], []>} : vector<6x192xf32>, vector<192x96xf32>, vector<6x96xf32> -> vector<6x96xf32>
    %cst_85 = arith.constant 0.000000e+00 : f32
    %124 = vector.broadcast %cst_85 : f32 to vector<1x120xf32>
    %125 = vector.extract_strided_slice %123 {offsets = [0, 0], sizes = [1, 96], strides = [1, 1]} : vector<6x96xf32> to vector<1x96xf32>
    %c0_86 = arith.constant 0 : index
    %c0_87 = arith.constant 0 : index
    %126 = vector.load %arg10[%c0_86, %c0_87] : memref<576x120xf32, #tpu.memory_space<vmem>>, vector<96x120xf32>
    %cst_88 = arith.constant dense<0.000000e+00> : vector<1x120xf32>
    %127 = tpu.matmul %125, %126, %cst_88 {dimension_numbers = #tpu.dot_dimension_numbers<[1], [0], [0], [1], [0, 0, 1, 1], [], []>} : vector<1x96xf32>, vector<96x120xf32>, vector<1x120xf32> -> vector<1x120xf32>
    %128 = arith.addf %124, %127 : vector<1x120xf32>
    %129 = vector.extract_strided_slice %123 {offsets = [1, 0], sizes = [1, 96], strides = [1, 1]} : vector<6x96xf32> to vector<1x96xf32>
    %c96 = arith.constant 96 : index
    %c0_89 = arith.constant 0 : index
    %130 = vector.load %arg10[%c96, %c0_89] : memref<576x120xf32, #tpu.memory_space<vmem>>, vector<96x120xf32>
    %cst_90 = arith.constant dense<0.000000e+00> : vector<1x120xf32>
    %131 = tpu.matmul %129, %130, %cst_90 {dimension_numbers = #tpu.dot_dimension_numbers<[1], [0], [0], [1], [0, 0, 1, 1], [], []>} : vector<1x96xf32>, vector<96x120xf32>, vector<1x120xf32> -> vector<1x120xf32>
    %132 = arith.addf %128, %131 : vector<1x120xf32>
    %133 = vector.extract_strided_slice %123 {offsets = [2, 0], sizes = [1, 96], strides = [1, 1]} : vector<6x96xf32> to vector<1x96xf32>
    %c192 = arith.constant 192 : index
    %c0_91 = arith.constant 0 : index
    %134 = vector.load %arg10[%c192, %c0_91] : memref<576x120xf32, #tpu.memory_space<vmem>>, vector<96x120xf32>
    %cst_92 = arith.constant dense<0.000000e+00> : vector<1x120xf32>
    %135 = tpu.matmul %133, %134, %cst_92 {dimension_numbers = #tpu.dot_dimension_numbers<[1], [0], [0], [1], [0, 0, 1, 1], [], []>} : vector<1x96xf32>, vector<96x120xf32>, vector<1x120xf32> -> vector<1x120xf32>
    %136 = arith.addf %132, %135 : vector<1x120xf32>
    %137 = vector.extract_strided_slice %123 {offsets = [3, 0], sizes = [1, 96], strides = [1, 1]} : vector<6x96xf32> to vector<1x96xf32>
    %c288 = arith.constant 288 : index
    %c0_93 = arith.constant 0 : index
    %138 = vector.load %arg10[%c288, %c0_93] : memref<576x120xf32, #tpu.memory_space<vmem>>, vector<96x120xf32>
    %cst_94 = arith.constant dense<0.000000e+00> : vector<1x120xf32>
    %139 = tpu.matmul %137, %138, %cst_94 {dimension_numbers = #tpu.dot_dimension_numbers<[1], [0], [0], [1], [0, 0, 1, 1], [], []>} : vector<1x96xf32>, vector<96x120xf32>, vector<1x120xf32> -> vector<1x120xf32>
    %140 = arith.addf %136, %139 : vector<1x120xf32>
    %141 = vector.extract_strided_slice %123 {offsets = [4, 0], sizes = [1, 96], strides = [1, 1]} : vector<6x96xf32> to vector<1x96xf32>
    %c384 = arith.constant 384 : index
    %c0_95 = arith.constant 0 : index
    %142 = vector.load %arg10[%c384, %c0_95] : memref<576x120xf32, #tpu.memory_space<vmem>>, vector<96x120xf32>
    %cst_96 = arith.constant dense<0.000000e+00> : vector<1x120xf32>
    %143 = tpu.matmul %141, %142, %cst_96 {dimension_numbers = #tpu.dot_dimension_numbers<[1], [0], [0], [1], [0, 0, 1, 1], [], []>} : vector<1x96xf32>, vector<96x120xf32>, vector<1x120xf32> -> vector<1x120xf32>
    %144 = arith.addf %140, %143 : vector<1x120xf32>
    %145 = vector.extract_strided_slice %123 {offsets = [5, 0], sizes = [1, 96], strides = [1, 1]} : vector<6x96xf32> to vector<1x96xf32>
    %c480 = arith.constant 480 : index
    %c0_97 = arith.constant 0 : index
    %146 = vector.load %arg10[%c480, %c0_97] : memref<576x120xf32, #tpu.memory_space<vmem>>, vector<96x120xf32>
    %cst_98 = arith.constant dense<0.000000e+00> : vector<1x120xf32>
    %147 = tpu.matmul %145, %146, %cst_98 {dimension_numbers = #tpu.dot_dimension_numbers<[1], [0], [0], [1], [0, 0, 1, 1], [], []>} : vector<1x96xf32>, vector<96x120xf32>, vector<1x120xf32> -> vector<1x120xf32>
    %148 = arith.addf %144, %147 : vector<1x120xf32>
    %c0_99 = arith.constant 0 : index
    %c0_100 = arith.constant 0 : index
    %149 = vector.load %arg11[%c0_99, %c0_100] : memref<1x120xf32, #tpu.memory_space<vmem>>, vector<1x120xf32>
    %150 = arith.addf %148, %149 : vector<1x120xf32>
    %cst_101 = arith.constant 0.000000e+00 : f32
    %151 = vector.broadcast %cst_101 : f32 to vector<1x120xf32>
    %152 = arith.maximumf %150, %151 : vector<1x120xf32>
    %c0_102 = arith.constant 0 : index
    %c0_103 = arith.constant 0 : index
    %153 = vector.load %arg12[%c0_102, %c0_103] : memref<120x84xf32, #tpu.memory_space<vmem>>, vector<120x84xf32>
    %cst_104 = arith.constant dense<0.000000e+00> : vector<1x84xf32>
    %154 = tpu.matmul %152, %153, %cst_104 {dimension_numbers = #tpu.dot_dimension_numbers<[1], [0], [0], [1], [0, 0, 1, 1], [], []>} : vector<1x120xf32>, vector<120x84xf32>, vector<1x84xf32> -> vector<1x84xf32>
    %c0_105 = arith.constant 0 : index
    %c0_106 = arith.constant 0 : index
    %155 = vector.load %arg13[%c0_105, %c0_106] : memref<1x84xf32, #tpu.memory_space<vmem>>, vector<1x84xf32>
    %156 = arith.addf %154, %155 : vector<1x84xf32>
    %cst_107 = arith.constant 0.000000e+00 : f32
    %157 = vector.broadcast %cst_107 : f32 to vector<1x84xf32>
    %158 = arith.maximumf %156, %157 : vector<1x84xf32>
    %c0_108 = arith.constant 0 : index
    %c0_109 = arith.constant 0 : index
    %159 = vector.load %arg14[%c0_108, %c0_109] : memref<84x10xf32, #tpu.memory_space<vmem>>, vector<84x10xf32>
    %cst_110 = arith.constant dense<0.000000e+00> : vector<1x10xf32>
    %160 = tpu.matmul %158, %159, %cst_110 {dimension_numbers = #tpu.dot_dimension_numbers<[1], [0], [0], [1], [0, 0, 1, 1], [], []>} : vector<1x84xf32>, vector<84x10xf32>, vector<1x10xf32> -> vector<1x10xf32>
    %c0_111 = arith.constant 0 : index
    %c0_112 = arith.constant 0 : index
    %161 = vector.load %arg15[%c0_111, %c0_112] : memref<1x10xf32, #tpu.memory_space<vmem>>, vector<1x10xf32>
    %162 = arith.addf %160, %161 : vector<1x10xf32>
    %c0_113 = arith.constant 0 : index
    %c0_114 = arith.constant 0 : index
    %c0_115 = arith.constant 0 : index
    %163 = vector.load %arg16[%c0_113, %c0_114, %c0_115] : memref<1x1x10xf32, #tpu.memory_space<vmem>>, vector<1x1x10xf32>
    %164 = vector.shape_cast %163 : vector<1x1x10xf32> to vector<1x10xf32>
    %165 = vector.shape_cast %162 : vector<1x10xf32> to vector<1x1x10xf32>
    tpu.vector_store %arg16[%c0_113, %c0_114, %c0_115], %165 {strides = array<i32>} : memref<1x1x10xf32, #tpu.memory_space<vmem>>, vector<1x1x10xf32>,
    return
  }
  func.func @transform_0(%arg0: i32) -> (i32, i32, i32) {
    %c0_i32 = arith.constant 0 : i32
    %c0_i32_0 = arith.constant 0 : i32
    %c0_i32_1 = arith.constant 0 : i32
    return %arg0, %c0_i32, %c0_i32_0 : i32, i32, i32
  }
  func.func @transform_1(%arg0: i32) -> (i32, i32, i32) {
    %c0_i32 = arith.constant 0 : i32
    %c0_i32_0 = arith.constant 0 : i32
    %c0_i32_1 = arith.constant 0 : i32
    %c0_i32_2 = arith.constant 0 : i32
    return %c0_i32, %c0_i32_0, %c0_i32_1 : i32, i32, i32
  }
  func.func @transform_2(%arg0: i32) -> (i32, i32) {
    %c0_i32 = arith.constant 0 : i32
    %c0_i32_0 = arith.constant 0 : i32
    %c0_i32_1 = arith.constant 0 : i32
    return %c0_i32, %c0_i32_0 : i32, i32
  }
  func.func @transform_3(%arg0: i32) -> (i32, i32) {
    %c0_i32 = arith.constant 0 : i32
    %c0_i32_0 = arith.constant 0 : i32
    %c0_i32_1 = arith.constant 0 : i32
    return %c0_i32, %c0_i32_0 : i32, i32
  }
  func.func @transform_4(%arg0: i32) -> (i32, i32) {
    %c0_i32 = arith.constant 0 : i32
    %c0_i32_0 = arith.constant 0 : i32
    %c0_i32_1 = arith.constant 0 : i32
    return %c0_i32, %c0_i32_0 : i32, i32
  }
  func.func @transform_5(%arg0: i32) -> (i32, i32, i32) {
    %c0_i32 = arith.constant 0 : i32
    %c0_i32_0 = arith.constant 0 : i32
    %c0_i32_1 = arith.constant 0 : i32
    %c0_i32_2 = arith.constant 0 : i32
    return %c0_i32, %c0_i32_0, %c0_i32_1 : i32, i32, i32
  }
  func.func @transform_6(%arg0: i32) -> (i32, i32) {
    %c0_i32 = arith.constant 0 : i32
    %c0_i32_0 = arith.constant 0 : i32
    %c0_i32_1 = arith.constant 0 : i32
    return %c0_i32, %c0_i32_0 : i32, i32
  }
  func.func @transform_7(%arg0: i32) -> (i32, i32) {
    %c0_i32 = arith.constant 0 : i32
    %c0_i32_0 = arith.constant 0 : i32
    %c0_i32_1 = arith.constant 0 : i32
    return %c0_i32, %c0_i32_0 : i32, i32
  }
  func.func @transform_8(%arg0: i32) -> (i32, i32) {
    %c0_i32 = arith.constant 0 : i32
    %c0_i32_0 = arith.constant 0 : i32
    %c0_i32_1 = arith.constant 0 : i32
    return %c0_i32, %c0_i32_0 : i32, i32
  }
  func.func @transform_9(%arg0: i32) -> (i32, i32) {
    %c0_i32 = arith.constant 0 : i32
    %c0_i32_0 = arith.constant 0 : i32
    %c0_i32_1 = arith.constant 0 : i32
    return %c0_i32, %c0_i32_0 : i32, i32
  }
  func.func @transform_10(%arg0: i32) -> (i32, i32) {
    %c0_i32 = arith.constant 0 : i32
    %c0_i32_0 = arith.constant 0 : i32
    %c0_i32_1 = arith.constant 0 : i32
    return %c0_i32, %c0_i32_0 : i32, i32
  }
  func.func @transform_11(%arg0: i32) -> (i32, i32) {
    %c0_i32 = arith.constant 0 : i32
    %c0_i32_0 = arith.constant 0 : i32
    %c0_i32_1 = arith.constant 0 : i32
    return %c0_i32, %c0_i32_0 : i32, i32
  }
  func.func @transform_12(%arg0: i32) -> (i32, i32) {
    %c0_i32 = arith.constant 0 : i32
    %c0_i32_0 = arith.constant 0 : i32
    %c0_i32_1 = arith.constant 0 : i32
    return %c0_i32, %c0_i32_0 : i32, i32
  }
  func.func @transform_13(%arg0: i32) -> (i32, i32) {
    %c0_i32 = arith.constant 0 : i32
    %c0_i32_0 = arith.constant 0 : i32
    %c0_i32_1 = arith.constant 0 : i32
    return %c0_i32, %c0_i32_0 : i32, i32
  }
  func.func @transform_14(%arg0: i32) -> (i32, i32) {
    %c0_i32 = arith.constant 0 : i32
    %c0_i32_0 = arith.constant 0 : i32
    %c0_i32_1 = arith.constant 0 : i32
    return %c0_i32, %c0_i32_0 : i32, i32
  }
  func.func @transform_15(%arg0: i32) -> (i32, i32, i32) {
    %c0_i32 = arith.constant 0 : i32
    %c0_i32_0 = arith.constant 0 : i32
    %c0_i32_1 = arith.constant 0 : i32
    return %arg0, %c0_i32, %c0_i32_0 : i32, i32, i32
  }
}

</mosaic_0001>

<bundles_post_ra>
// kernel: net_forward.1
= control target key start
LH: loop header
LB: loop body
LE: loop exit
PB: predicated region body
PF: predicated region fallthrough
CT: control target
= control target key end

     0   :  { %s6841_s0 = inlined_call_operand.vmem [shape: f32[2,32,32], index: 0, kind: input, shape index: {}]   ;;  %s6842_s1 = inlined_call_operand.hbm [shape: f32[9,30,180], index: 1, kind: input, shape index: {}]   ;;  %s6843_s2 = inlined_call_operand.hbm [shape: f32[1,180], index: 2, kind: input, shape index: {}]   ;;  %s6844_s3 = inlined_call_operand.vmem [shape: f32[15,29], index: 3, kind: input, shape index: {}]   ;;  %s6845_s4 = inlined_call_operand.hbm [shape: f32[174,90], index: 4, kind: input, shape index: {}]   ;;  %s6846_s5 = inlined_call_operand.hbm [shape: f32[9,78,208], index: 5, kind: input, shape index: {}]   ;;  %s6847_s6 = inlined_call_operand.hbm [shape: f32[1,208], index: 6, kind: input, shape index: {}]   ;;  %s6848_s7 = inlined_call_operand.hbm [shape: f32[6,12], index: 7, kind: input, shape index: {}]   ;;  %s6849_s8 = inlined_call_operand.vmem [shape: f32[192,96], index: 8, kind: input, shape index: {}]   ;;  %s6850_s9 = inlined_call_operand.hbm [shape: f32[576,120], index: 9, kind: input, shape index: {}]   ;;  %s6851_s10 = inlined_call_operand.vmem [shape: f32[1,120], index: 10, kind: input, shape index: {}]   ;;  %s6852_s11 = inlined_call_operand.vmem [shape: f32[120,84], index: 11, kind: input, shape index: {}]   ;;  %s6853_s12 = inlined_call_operand.hbm [shape: f32[1,84], index: 12, kind: input, shape index: {}]   ;;  %s6854_s13 = inlined_call_operand.vmem [shape: f32[84,10], index: 13, kind: input, shape index: {}]   ;;  %s6855_s14 = inlined_call_operand.hbm [shape: f32[1,10], index: 14, kind: input, shape index: {}]   ;;  %s6856_s15 = inlined_call_operand.hbm [shape: f32[2,1,10], index: 15, kind: output, shape index: {}]  }
   0x1   :  { %6872 = sst [smem:[#allocation32_spill]] %s6843_s2 }
   0x2   :  { %6873 = sst [smem:[#allocation33_spill]] %s6846_s5 }
   0x3   :  { %6874 = sst [smem:[#allocation34_spill]] %s6856_s15 }
   0x4   :  { %20 = vsyncpa [#allocation3], 0 }
   0x5   :  { %21 = vsyncpa [#allocation6], 0 }
   0x6   :  { %22 = vsyncpa [#allocation9], 0 }
   0x7   :  { %23 = vsyncpa [#allocation12], 0 }
   0x8   :  { %24 = vsyncpa [#allocation15], 0 }
   0x9   :  { %25 = vsyncpa [#allocation4], 0 }
   0xa   :  { %27 = vsyncpa [#allocation4 + $0x1], 0  ;;  %s5880_s18 = smov 0   ;;  %s5882_s19 = smov 0  }
   0xb   :  { %s5884_s20 = smov 0   ;;  %s5886_s21 = smov 0  }
   0xc LB: > { %6875 = sst [smem:[#allocation24_spill]] %s5763_s18  ;;  %s5901_s22 = sadd.s32 4294967295, %s5775_s21   ;;  %s5775_s21 = sphi %s5886_s21, %s6913_s21   ;;  %s5771_s20 = sphi %s5884_s20, %s6916_s20   ;;  %s5767_s19 = sphi %s5882_s19, %s6915_s19   ;;  %s5763_s18 = sphi %s5880_s18, %s6914_s18  }
   0xd   : > { %6876 = sst [smem:[#allocation25_spill]] %s5767_s19  ;;  %s4190_s23 = sadd.s32 4294967294, %s5775_s21  }
   0xe   : > { %6877 = sst [smem:[#allocation26_spill]] %s5771_s20  ;;  %s5905_s24 = sadd.s32 1, %s5775_s21  }
   0xf   : > { %6878 = sst [smem:[#allocation27_spill]] %s5775_s21  ;;  %s360_s25 = sadd.s32 1, %s5771_s20 }
  0x10   : > { %6879 = sst [smem:[#allocation28_spill]] %s5905_s24  ;;  %s357_s26 = ssub.s32 %s5775_s21, %s5905_s24 }
  0x11   : > { %p370_p0 = scmp.ne.s32.totalorder %s5771_s20, %s5767_s19  ;;  %p358_p1 = scmp.eq.s32.totalorder %s357_s26, 0 }
  0x12   : > { %p371_p2 = scmp.eq.s32.totalorder %s5901_s22, 1  ;;  %p376_p3 = scmp.ne.s32.totalorder %s5767_s19, %s5763_s18 }
  0x13   : > { %p377_p4 = scmp.eq.s32.totalorder %s4190_s23, 1  ;;  %p4191_p7 = scmp.ge.s32.totalorder %s5775_s21, 1 }
  0x14   : > { %s5916_s27 = scalar_select %p358_p1, %s5771_s20, %s360_s25  }
  0x15   : > { %p5918_p5 = por %p371_p2, %p370_p0  ;;  %p5922_p6 = por %p377_p4, %p376_p3 }
  0x16   : > { %6880 = sst [smem:[#allocation29_spill]] %s5916_s27  ;;  %p384_p8 = scmp.lt.s32.totalorder %s5775_s21, 3 }
  0x17   : > { %s6881_s28 = scalar_select %p5918_p5, 1, 0 }
  0x18   : > { %s6883_s29 = scalar_select %p5922_p6, 1, 0 }
  0x19   : > { %6882 = sst [smem:[#allocation30_spill]] %s6881_s28  ;;  %p6864_p9 = scmp.eq.s32.totalorder %s5901_s22, 0 }
  0x1a   : > { %6884 = sst [smem:[#allocation31_spill]] %s6883_s29  ;;  %p5929_p10 = pnand %p4191_p7, %p384_p8 }
  0x1b   : > { %s5777_s16 = smov [#allocation5]   ;;  %s5778_s25 = smov [#allocation8]  }
  0x1c   : > { %s6885_s30 = scalar_select %p5929_p10, 1, 0 }
  0x1d   : > { %s410_s17 = sshll.u32 %s5777_s16, 4  ;;  %p5306_p11 = pneg %p5929_p10  ;;  %s411_s17 = int_to_ptr.vmem [resolvable:$true] %s410_s17 }
  0x1e   : > { %s436_s26 = sshll.u32 %s5778_s25, 4  ;;  %s5779_s27 = smov [#allocation11]   ;;  %s5941_s26 = int_to_ptr.vmem [resolvable:$true] %s436_s26 }
  0x1f   : > { %p5937_p12 = pnand %p6864_p9, %p5306_p11  ;;  %s5943_s20 = sshll.u32 %s5779_s27, 4  ;;  %s462_s20 = int_to_ptr.vmem [resolvable:$true] %s5943_s20 }
  0x20   : > { %s6887_s2 = sld [smem:[#allocation32_spill]] }
  0x21   : > { %p5953_p0 = pneg %p5937_p12 }
  0x26   : > { %s5441_s16 = scalar_lea.hbm %s6887_s2, 32 }
  0x27   : > { %p5442_p13 = scmp.ne.s32.totalorder %s6887_s2, %s5441_s16  ;;  %p5448_p3 = scmp.lt.u32.totalorder %s5441_s16, %s6887_s2 }
  0x29   : > { %p5444_p1 = pnand %p5953_p0, %p5442_p13 }
  0x2b   : > { %p5445_p2 = pneg %p5444_p1 }
  0x2d   : > { %p5450_p4 = pnand %p5448_p3, %p5445_p2 }
  0x2f   : > { %5453 = shalt.err (!%p5450_p4)
}
  0x30   : > { %s5454_s24 = scalar_lea.vmem %s411_s17, 32  ;;  %p5462_p9 = scmp.lt.s32.totalorder %s411_s17, %s411_s17 }
  0x31   : > { %p5455_p7 = scmp.ne.s32.totalorder %s411_s17, %s5454_s24  ;;  %p5463_p6 = scmp.lt.s32.totalorder %s5454_s24, %s5454_s24 }
  0x33   : > { %p5457_p8 = pnand %p5455_p7, %p5953_p0  ;;  %p5464_p5 = por %p5463_p6, %p5462_p9 }
  0x35   : > { %p5458_p11 = pneg %p5457_p8 }
  0x37   : > { %p5465_p10 = pnand %p5464_p5, %p5458_p11 }
  0x39   : > { %5468 = shalt.err (!%p5465_p10)
}
  0x3a   : > { %5312 = dma.hbm_to_vmem [thread:$0]  (!%p5937_p12), %s6887_s2, 32, %s411_s17, [#allocation6]  }
  0x3b   : > { %s6889_s5 = sld [smem:[#allocation33_spill]] }
  0x41   : > { %s5469_s25 = scalar_lea.hbm %s6889_s5, 23040 }
  0x42   : > { %p5470_p13 = scmp.ne.s32.totalorder %s6889_s5, %s5469_s25  ;;  %p5476_p5 = scmp.lt.u32.totalorder %s5469_s25, %s6889_s5 }
  0x44   : > { %p5472_p1 = pnand %p5470_p13, %p5953_p0 }
  0x46   : > { %p5473_p6 = pneg %p5472_p1 }
  0x48   : > { %p5478_p9 = pnand %p5476_p5, %p5473_p6 }
  0x4a   : > { %5481 = shalt.err (!%p5478_p9)
}
  0x4b   : > { %s5482_s17 = scalar_lea.vmem %s5941_s26, 23040  ;;  %p5490_p4 = scmp.lt.s32.totalorder %s5941_s26, %s5941_s26 }
  0x4c   : > { %p5483_p10 = scmp.ne.s32.totalorder %s5941_s26, %s5482_s17  ;;  %p5491_p7 = scmp.lt.s32.totalorder %s5482_s17, %s5482_s17 }
  0x4e   : > { %p5485_p2 = pnand %p5483_p10, %p5953_p0  ;;  %p5492_p8 = por %p5491_p7, %p5490_p4 }
  0x50   : > { %p5486_p3 = pneg %p5485_p2 }
  0x52   : > { %p5493_p11 = pnand %p5492_p8, %p5486_p3 }
  0x54   : > { %5496 = shalt.err (!%p5493_p11)
}
  0x55   : > { %s6870_s28 = smov 256   ;;  %s6871_s19 = smov 16  }
  0x56   : > { %5318 = dma.hbm_to_vmem [thread:$0]  (!%p5937_p12), %s6889_s5, 23040, %s5941_s26, [#allocation9], %s6870_s28, %s6870_s28, %s6871_s19  }
  0x57   : > { %s5497_s25 = scalar_lea.hbm %s6848_s7, 128 }
  0x58   : > { %p5498_p13 = scmp.ne.s32.totalorder %s6848_s7, %s5497_s25  ;;  %p5504_p5 = scmp.lt.u32.totalorder %s5497_s25, %s6848_s7 }
  0x5a   : > { %p5500_p1 = pnand %p5498_p13, %p5953_p0 }
  0x5c   : > { %p5501_p6 = pneg %p5500_p1 }
  0x5e   : > { %p5506_p9 = pnand %p5504_p5, %p5501_p6 }
  0x60   : > { %5509 = shalt.err (!%p5506_p9)
}
  0x61   : > { %s5510_s18 = scalar_lea.vmem %s462_s20, 128  ;;  %p5518_p4 = scmp.lt.s32.totalorder %s462_s20, %s462_s20 }
  0x62   : > { %p5511_p10 = scmp.ne.s32.totalorder %s462_s20, %s5510_s18  ;;  %p5519_p7 = scmp.lt.s32.totalorder %s5510_s18, %s5510_s18 }
  0x64   : > { %p5513_p2 = pnand %p5511_p10, %p5953_p0  ;;  %p5520_p8 = por %p5519_p7, %p5518_p4 }
  0x66   : > { %p5514_p3 = pneg %p5513_p2 }
  0x68   : > { %p5521_p11 = pnand %p5520_p8, %p5514_p3 }
  0x6a   : > { %5524 = shalt.err (!%p5521_p11)
}
  0x6b   : > { %5324 = dma.hbm_to_vmem [thread:$0]  (!%p5937_p12), %s6848_s7, 128, %s462_s20, [#allocation12]  }
  0x6c   : > { %s5782_s2 = smov [#allocation14]   ;;  %s5783_s16 = smov [#allocation2]  }
  0x6d   : > { %s494_s29 = sshll.u32 %s5782_s2, 4  ;;  %s396_s25 = sshll.u32 %s5783_s16, 4  ;;  %s495_s29 = int_to_ptr.vmem [resolvable:$true] %s494_s29  ;;  %s397_s25 = int_to_ptr.vmem [resolvable:$true] %s396_s25 }
  0x6e   : > { %s5525_s17 = scalar_lea.hbm %s6853_s12, 16 }
  0x6f   : > { %p5526_p13 = scmp.ne.s32.totalorder %s6853_s12, %s5525_s17  ;;  %p5532_p5 = scmp.lt.u32.totalorder %s5525_s17, %s6853_s12 }
  0x71   : > { %p5528_p1 = pnand %p5526_p13, %p5953_p0 }
  0x73   : > { %p5529_p6 = pneg %p5528_p1 }
  0x75   : > { %p5534_p9 = pnand %p5532_p5, %p5529_p6 }
  0x77   : > { %5537 = shalt.err (!%p5534_p9)
}
  0x78   : > { %s5538_s20 = scalar_lea.vmem %s495_s29, 16  ;;  %s5545_s21 = scalar_lea.vmem %s495_s29, 32 }
  0x79   : > { %p5539_p10 = scmp.ne.s32.totalorder %s495_s29, %s5538_s20  ;;  %p5546_p4 = scmp.lt.s32.totalorder %s495_s29, %s495_s29 }
  0x7a   : > { %p5547_p7 = scmp.lt.s32.totalorder %s5545_s21, %s5538_s20 }
  0x7b   : > { %p5541_p2 = pnand %p5539_p10, %p5953_p0 }
  0x7c   : > { %p5548_p8 = por %p5547_p7, %p5546_p4 }
  0x7d   : > { %p5542_p3 = pneg %p5541_p2 }
  0x7f   : > { %p5549_p11 = pnand %p5548_p8, %p5542_p3 }
  0x81   : > { %5552 = shalt.err (!%p5549_p11)
}
  0x82   : > { %5330 = dma.hbm_to_vmem [thread:$0]  (!%p5937_p12), %s6853_s12, 16, %s495_s29, [#allocation15]  }
  0x83   : > { %s5553_s27 = scalar_lea.hbm %s6842_s1, 9216 }
  0x84   : > { %p5554_p13 = scmp.ne.s32.totalorder %s6842_s1, %s5553_s27  ;;  %p5560_p5 = scmp.lt.u32.totalorder %s5553_s27, %s6842_s1 }
  0x86   : > { %p5556_p1 = pnand %p5554_p13, %p5953_p0 }
  0x88   : > { %p5557_p6 = pneg %p5556_p1 }
  0x8a   : > { %p5562_p9 = pnand %p5560_p5, %p5557_p6 }
  0x8c   : > { %5565 = shalt.err (!%p5562_p9)
}
  0x8d   : > { %s5566_s20 = scalar_lea.vmem %s397_s25, 9216  ;;  %p5574_p4 = scmp.lt.s32.totalorder %s397_s25, %s397_s25 }
  0x8e   : > { %p5567_p10 = scmp.ne.s32.totalorder %s397_s25, %s5566_s20  ;;  %p5575_p7 = scmp.lt.s32.totalorder %s5566_s20, %s5566_s20 }
  0x90   : > { %p5569_p2 = pnand %p5567_p10, %p5953_p0  ;;  %p5576_p8 = por %p5575_p7, %p5574_p4 }
  0x92   : > { %p5570_p3 = pneg %p5569_p2 }
  0x94   : > { %p5577_p11 = pnand %p5576_p8, %p5570_p3 }
  0x96   : > { %5580 = shalt.err (!%p5577_p11)
}
  0x97   : > { %s6890_s29 = smov 16   ;;  %s6891_s21 = smov 256  }
  0x98   : > { %5309 = dma.hbm_to_vmem [thread:$0]  (!%p5937_p12), %s6842_s1, 9216, %s397_s25, [#allocation3], %s6891_s21, %s6891_s21, %s6890_s29  }
  0x99   : > { %s5784_s19 = smov [#allocation7]   ;;  %s5581_s17 = scalar_lea.hbm %s6845_s4, 2816 }
  0x9a   : > { %s423_s16 = sshll.u32 %s5784_s19, 4  ;;  %p5582_p13 = scmp.ne.s32.totalorder %s6845_s4, %s5581_s17  ;;  %s424_s16 = int_to_ptr.vmem [resolvable:$true] %s423_s16 }
  0x9b   : > { %p5588_p5 = scmp.lt.u32.totalorder %s5581_s17, %s6845_s4 }
  0x9c   : > { %p5584_p1 = pnand %p5582_p13, %p5953_p0 }
  0x9e   : > { %p5585_p6 = pneg %p5584_p1 }
  0xa0   : > { %p5590_p9 = pnand %p5588_p5, %p5585_p6 }
  0xa2   : > { %5593 = shalt.err (!%p5590_p9)
}
  0xa3   : > { %s5594_s25 = scalar_lea.vmem %s424_s16, 2816  ;;  %p5602_p4 = scmp.lt.s32.totalorder %s424_s16, %s424_s16 }
  0xa4   : > { %p5595_p10 = scmp.ne.s32.totalorder %s424_s16, %s5594_s25  ;;  %p5603_p7 = scmp.lt.s32.totalorder %s5594_s25, %s5594_s25 }
  0xa6   : > { %p5597_p2 = pnand %p5595_p10, %p5953_p0  ;;  %p5604_p8 = por %p5603_p7, %p5602_p4 }
  0xa8   : > { %p5598_p3 = pneg %p5597_p2 }
  0xaa   : > { %p5605_p11 = pnand %p5604_p8, %p5598_p3 }
  0xac   : > { %5608 = shalt.err (!%p5605_p11)
}
  0xad   : > { %s5785_s29 = smov 128   ;;  %s5786_s21 = smov 8  }
  0xae   : > { %5315 = dma.hbm_to_vmem [thread:$0]  (!%p5937_p12), %s6845_s4, 2816, %s424_s16, [#allocation6], %s5785_s29, %s5785_s29, %s5786_s21  }
  0xaf   : > { %s5787_s2 = smov [#allocation10]   ;;  %s5788_s27 = smov [#allocation13]  }
  0xb0   : > { %s450_s19 = sshll.u32 %s5787_s2, 4  ;;  %s474_s24 = sshll.u32 %s5788_s27, 4  ;;  %s451_s19 = int_to_ptr.vmem [resolvable:$true] %s450_s19  ;;  %s6074_s24 = int_to_ptr.vmem [resolvable:$true] %s474_s24 }
  0xb1   : > { %s5609_s26 = scalar_lea.hbm %s6847_s6, 32 }
  0xb2   : > { %p5610_p13 = scmp.ne.s32.totalorder %s6847_s6, %s5609_s26  ;;  %p5616_p5 = scmp.lt.u32.totalorder %s5609_s26, %s6847_s6 }
  0xb4   : > { %p5612_p1 = pnand %p5610_p13, %p5953_p0 }
  0xb6   : > { %p5613_p6 = pneg %p5612_p1 }
  0xb8   : > { %p5618_p9 = pnand %p5616_p5, %p5613_p6 }
  0xba   : > { %5621 = shalt.err (!%p5618_p9)
}
  0xbb   : > { %s5622_s28 = scalar_lea.vmem %s451_s19, 32  ;;  %p5630_p4 = scmp.lt.s32.totalorder %s451_s19, %s451_s19 }
  0xbc   : > { %p5623_p10 = scmp.ne.s32.totalorder %s451_s19, %s5622_s28  ;;  %p5631_p7 = scmp.lt.s32.totalorder %s5622_s28, %s5622_s28 }
  0xbe   : > { %p5625_p2 = pnand %p5623_p10, %p5953_p0  ;;  %p5632_p8 = por %p5631_p7, %p5630_p4 }
  0xc0   : > { %p5626_p3 = pneg %p5625_p2 }
  0xc2   : > { %p5633_p11 = pnand %p5632_p8, %p5626_p3 }
  0xc4   : > { %5636 = shalt.err (!%p5633_p11)
}
  0xc5   : > { %5321 = dma.hbm_to_vmem [thread:$0]  (!%p5937_p12), %s6847_s6, 32, %s451_s19, [#allocation9]  }
  0xc6   : > { %s5637_s26 = scalar_lea.hbm %s6850_s9, 9216 }
  0xc7   : > { %p5638_p13 = scmp.ne.s32.totalorder %s6850_s9, %s5637_s26  ;;  %p5644_p5 = scmp.lt.u32.totalorder %s5637_s26, %s6850_s9 }
  0xc9   : > { %p5640_p1 = pnand %p5638_p13, %p5953_p0 }
  0xcb   : > { %p5641_p6 = pneg %p5640_p1 }
  0xcd   : > { %p5646_p9 = pnand %p5644_p5, %p5641_p6 }
  0xcf   : > { %5649 = shalt.err (!%p5646_p9)
}
  0xd0   : > { %s5650_s19 = scalar_lea.vmem %s6074_s24, 9216  ;;  %p5658_p4 = scmp.lt.s32.totalorder %s6074_s24, %s6074_s24 }
  0xd1   : > { %p5651_p10 = scmp.ne.s32.totalorder %s6074_s24, %s5650_s19  ;;  %p5659_p7 = scmp.lt.s32.totalorder %s5650_s19, %s5650_s19 }
  0xd3   : > { %p5653_p2 = pnand %p5651_p10, %p5953_p0  ;;  %p5660_p8 = por %p5659_p7, %p5658_p4 }
  0xd5   : > { %p5654_p3 = pneg %p5653_p2 }
  0xd7   : > { %p5661_p11 = pnand %p5660_p8, %p5654_p3 }
  0xd9   : > { %5664 = shalt.err (!%p5661_p11)
}
  0xda   : > { %5327 = dma.hbm_to_vmem [thread:$0]  (!%p5937_p12), %s6850_s9, 9216, %s6074_s24, [#allocation12], %s5785_s29, %s5785_s29, %s5786_s21  }
  0xdb   : > { %s5789_s27 = smov [#allocation16]   ;;  %s5665_s20 = scalar_lea.hbm %s6855_s14, 16 }
  0xdc   : > { %s508_s17 = sshll.u32 %s5789_s27, 4  ;;  %p5666_p13 = scmp.ne.s32.totalorder %s6855_s14, %s5665_s20  ;;  %s509_s17 = int_to_ptr.vmem [resolvable:$true] %s508_s17 }
  0xdd   : > { %p5672_p5 = scmp.lt.u32.totalorder %s5665_s20, %s6855_s14 }
  0xde   : > { %p5668_p1 = pnand %p5666_p13, %p5953_p0 }
  0xe0   : > { %p5669_p6 = pneg %p5668_p1 }
  0xe2   : > { %p5674_p9 = pnand %p5672_p5, %p5669_p6 }
  0xe4   : > { %5677 = shalt.err (!%p5674_p9)
}
  0xe5   : > { %s5678_s29 = scalar_lea.vmem %s509_s17, 16  ;;  %s5685_s21 = scalar_lea.vmem %s509_s17, 32 }
  0xe6   : > { %p5679_p10 = scmp.ne.s32.totalorder %s509_s17, %s5678_s29  ;;  %p5686_p4 = scmp.lt.s32.totalorder %s509_s17, %s509_s17 }
  0xe7   : > { %p5687_p7 = scmp.lt.s32.totalorder %s5685_s21, %s5678_s29 }
  0xe8   : > { %p5681_p2 = pnand %p5679_p10, %p5953_p0 }
  0xe9   : > { %p5688_p8 = por %p5687_p7, %p5686_p4 }
  0xea   : > { %p5682_p3 = pneg %p5681_p2 }
  0xec   : > { %p5689_p11 = pnand %p5688_p8, %p5682_p3 }
  0xee   : > { %5692 = shalt.err (!%p5689_p11)
}
  0xef   : > { %5333 = dma.hbm_to_vmem [thread:$0]  (!%p5937_p12), %s6855_s14, 16, %s509_s17, [#allocation15]  }
  0xf0   : > { %p6892_p13 = scmp.ne.s32.totalorder %s6885_s30, 0 }
  0xf1   : > { %p6893_p1 = scmp.eq.s32.totalorder (!%p6892_p13), %s5901_s22, 0 }
  0xf2   : > { %529 = sbr.rel (%p6892_p13) target bundleno = 3091 (0xc13), region = 80 }
  0xf9   : > { %5738 = dma.done.wait (%p6893_p1), [#allocation3], 9216   ;;  %p6894_p0 = pmov %p6893_p1 }
  0xfb   : > { %5740 = vsyncadd (%p6894_p0), [#allocation3], 4294958080  ;;  %p6895_p6 = pmov %p6894_p0 }
  0xfc   : > { %p6896_p5 = pmov %p6894_p0 }
  0xfd   : > { %5742 = dma.done.wait (%p6895_p6), [#allocation6], 2848  }
  0xfe   : > { %5744 = vsyncadd (%p6896_p5), [#allocation6], 4294964448  ;;  %p6897_p9 = pmov %p6894_p0 }
  0xff   : > { %p6898_p12 = pmov %p6894_p0 }
 0x100   : > { %5746 = dma.done.wait (%p6897_p9), [#allocation9], 23072  }
 0x101   : > { %5748 = vsyncadd (%p6898_p12), [#allocation9], 4294944224  ;;  %p6899_p10 = pmov %p6894_p0 }
 0x102   : > { %p6900_p2 = pmov %p6894_p0 }
 0x103   : > { %5750 = dma.done.wait (%p6899_p10), [#allocation12], 9344  }
 0x104   : > { %5752 = vsyncadd (%p6900_p2), [#allocation12], 4294957952  ;;  %p6901_p3 = pmov %p6894_p0 }
 0x105   : > { %p6902_p4 = pmov %p6894_p0 }
 0x106   : > { %5754 = dma.done.wait (%p6901_p3), [#allocation15], 32  }
 0x107   : > { %5756 = vsyncadd (%p6902_p4), [#allocation15], 4294967264  ;;  %p608_p7 = scmp.lt.s32.totalorder %s5901_s22, 1  ;;  %v5790_v0 = vmov 0.0   ;;  %s5791_s17 = smov 127   ;;  %v627_v5 = vld [vmem:[#allocation2 + $0x48] sm:$0xff] }
 0x108   : > { %726 = vmatprep.mubr.f32.mxu0 %v5790_v0  ;;  %1940 = vmatprep.mubr.f32.mxu1 %v5790_v0  ;;  %v629_v6 = vld [vmem:[#allocation2 + $0x58] sm:$0xff]  ;;  %vm655_vm0 = vcmask 1045504   ;;  %v626_v8 = vld [vmem:[#allocation2 + $0x40] sm:$0xff]  ;;  %v628_v9 = vld [vmem:[#allocation2 + $0x50] sm:$0xff]  ;;  %vm5792_vm1 = vmmov 1   ;;  %s5793_s18 = smov 126  }
 0x109   : > { %s609_s15 = scalar_select %p608_p7, %s5901_s22, 1  ;;  %v4654_v7 = vpack.c.bf16 %v629_v6, %v627_v5  ;;  %v631_v10 = vld [vmem:[#allocation2 + $0x68] sm:$0xff]  ;;  %v4656_v11 = vpack.c.bf16 %v628_v9, %v626_v8  ;;  %v633_v12 = vld [vmem:[#allocation2 + $0x78] sm:$0x3f]  ;;  %v630_v13 = vld [vmem:[#allocation2 + $0x60] sm:$0xff]  ;;  %vm991_vm3 = vcmask 1046528  }
 0x10a   : > { %v632_v14 = vld [vmem:[#allocation2 + $0x70] sm:$0x3f]  ;;  %v4658_v15 = vpack.c.bf16 %v633_v12, %v631_v10  ;;  %vm6181_vm2 = vmpackc.low %vm655_vm0, %vm5792_vm1  ;;  %v618_v17 = vld [vmem:[#allocation2 + $0x8] sm:$0xff]  ;;  %vm646_vm4 = vcmask 244736   ;;  %s5794_s26 = smov 122   ;;  %vm1839_vm5 = vcmask 998400  }
 0x10b   : > { %s4327_s30 = sshll.u32 %s609_s15, 5  ;;  %4655 = vmatprep.subr.bf16.mxu0 %v4654_v7  ;;  %v620_v18 = vld [vmem:[#allocation2 + $0x18] sm:$0xff]  ;;  %v4661_v19 = vpack.c.bf16 %v632_v14, %v630_v13  ;;  %v617_v35 = vld [vmem:[#allocation2] sm:$0xff]  ;;  %v619_v36 = vld [vmem:[#allocation2 + $0x10] sm:$0xff]  ;;  %vm1869_vm6 = vcmask 1044480   ;;  %vm1862_vm8 = vcmask 236544  }
 0x10c   : > { %s612_s27 = scalar_lea.vmem %s6841_s0, %s4327_s30  ;;  %4657 = vmatpush1.bf16.msra.mxu0 %v4656_v11  ;;  %v4664_v20 = vpack.c.bf16 %v620_v18, %v618_v17  ;;  %v622_v37 = vld [vmem:[#allocation2 + $0x28] sm:$0xff]  ;;  %v624_v38 = vld [vmem:[#allocation2 + $0x38] sm:$0x3f]  ;;  %v4666_v39 = vpack.c.bf16 %v619_v36, %v617_v35  ;;  %v621_v41 = vld [vmem:[#allocation2 + $0x20] sm:$0xff]  ;;  %vm1975_vm9 = vcmask 375808   ;;  %s5796_s19 = smov 116  }
 0x10d   : > { %v6167_v1 = vld [vmem:[%s612_s27] sm:$0xff]  ;;  %v6169_v2 = vld [vmem:[%s612_s27 + $0x8] sm:$0xff]  ;;  %v6171_v3 = vld [vmem:[%s612_s27 + $0x10] sm:$0xff]  ;;  %4660 = vmatprep.subr.msk.bf16.mxu0 %vm6181_vm2, %v4658_v15  ;;  %v4668_v40 = vpack.c.bf16 %v624_v38, %v622_v37  ;;  %vm2107_vm10 = vcmask 637952   ;;  %s5797_s29 = smov 112   ;;  %vm3142_vm11 = vcmask 916480  }
 0x10e   : > { %638 = vrot.lane.b32.xlu0 %v6167_v1, %s5791_s17  ;;  %642 = vrot.lane.b32.xlu1 %v6171_v3, %s5791_s17  ;;  %v6177_v4 = vld [vmem:[%s612_s27 + $0x18] sm:$0xff]  ;;  %v992_v21 = vrot.slane %v6167_v1, 1  ;;  %v993_v22 = vrot.slane %v6169_v2, 1  ;;  %v995_v23 = vrot.slane %v6171_v3, 1  ;;  %v1375_v28 = vrot.slane %v6167_v1, 2  ;;  %v856_v44 = vld [vmem:[#allocation2 + $0x88] sm:$0xff]  ;;  %vm4749_vm7 = vmpackc.low %vm1869_vm6, %vm5792_vm1 }
 0x10f   : > { %v6211_v26 = vrot.slane %v6177_v4, 1  ;;  %v1376_v29 = vrot.slane %v6169_v2, 2  ;;  %v1378_v30 = vrot.slane %v6171_v3, 2  ;;  %v6243_v33 = vrot.slane %v6177_v4, 2  ;;  %v623_v42 = vld [vmem:[#allocation2 + $0x30] sm:$0x3f] }
 0x110   : > { %4663 = vmatpush1.bf16.msk.msra.mxu0 %vm6181_vm2, %v4661_v19  ;;  %v6205_v24 = vsel %vm991_vm3, %v992_v21, %v993_v22  ;;  %v6208_v25 = vsel %vm991_vm3, %v993_v22, %v995_v23  ;;  %v858_v45 = vld [vmem:[#allocation2 + $0x98] sm:$0xff]  ;;  %v4671_v46 = vpack.c.bf16 %v623_v42, %v621_v41  ;;  %v855_v51 = vld [vmem:[#allocation2 + $0x80] sm:$0xff]  ;;  %v857_v52 = vld [vmem:[#allocation2 + $0x90] sm:$0xff]  ;;  %vm3158_vm12 = vcmask 1043456   ;;  %s6905_s20 = sld [smem:[#allocation25_spill]]  ;;  %s6906_s24 = sld [smem:[#allocation30_spill]] }
 0x111   : > { %4665 = vmatprep.subr.bf16.mxu0 %v4664_v20  ;;  %v6219_v27 = vsel %vm991_vm3, %v995_v23, %v6211_v26  ;;  %v6237_v31 = vsel %vm655_vm0, %v1375_v28, %v1376_v29  ;;  %v6240_v32 = vsel %vm655_vm0, %v1376_v29, %v1378_v30  ;;  %v6251_v34 = vsel %vm655_vm0, %v1378_v30, %v6243_v33  ;;  %v860_v53 = vld [vmem:[#allocation2 + $0xa8] sm:$0xff]  ;;  %v862_v54 = vld [vmem:[#allocation2 + $0xb8] sm:$0x3f]  ;;  %v859_v57 = vld [vmem:[#allocation2 + $0xa0] sm:$0xff]  ;;  %s4324_s15 = sshll.u32 %s5901_s22, 4  ;;  %s5799_s22 = smov [#allocation17]  }
 0x112   : > { %640 = vrot.lane.b32.xlu0 %v6169_v2, %s5791_s17  ;;  %644 = vrot.lane.b32.xlu1 %v6177_v4, %s5791_s17  ;;  %v4674_v47 = vpack.c.bf16 %v858_v45, %v856_v44  ;;  %v4676_v55 = vpack.c.bf16 %v857_v52, %v855_v51  ;;  %v4678_v56 = vpack.c.bf16 %v862_v54, %v860_v53  ;;  %v861_v58 = vld [vmem:[#allocation2 + $0xb0] sm:$0x3f]  ;;  %v984_v59 = vld [vmem:[#allocation2 + $0xc8] sm:$0xff]  ;;  %v986_v60 = vld [vmem:[#allocation2 + $0xd8] sm:$0xff]  ;;  %vm3154_vm14 = vcmask 97280   ;;  %s5697_s25 = sshll.u32 %s5799_s22, 4  ;;  %s5698_s25 = int_to_ptr.vmem [resolvable:$false] %s5697_s25 }
 0x113   : > { %v4681_v61 = vpack.c.bf16 %v861_v58, %v859_v57  ;;  %v4684_v62 = vpack.c.bf16 %v986_v60, %v984_v59  ;;  %v983_v63 = vld [vmem:[#allocation2 + $0xc0] sm:$0xff]  ;;  %v988_v5 = vld [vmem:[#allocation2 + $0xe8] sm:$0xff]  ;;  %v990_v6 = vld [vmem:[#allocation2 + $0xf8] sm:$0x3f]  ;;  %vm3260_vm15 = vcmask 523264   ;;  %s5699_s5 = scalar_lea.vmem %s5698_s25, 32 }
 0x114   : > { %v4688_v8 = vpack.c.bf16 %v990_v6, %v988_v5  ;;  %v987_v9 = vld [vmem:[#allocation2 + $0xe0] sm:$0xff]  ;;  %v989_v10 = vld [vmem:[#allocation2 + $0xf0] sm:$0x3f]  ;;  %v1112_v11 = vld [vmem:[#allocation2 + $0x108] sm:$0xff] }
 0x115   : > { %v1114_v12 = vld [vmem:[#allocation2 + $0x118] sm:$0xff]  ;;  %v4691_v13 = vpack.c.bf16 %v989_v10, %v987_v9  ;;  %v1111_v17 = vld [vmem:[#allocation2 + $0x100] sm:$0xff]  ;;  %v1113_v18 = vld [vmem:[#allocation2 + $0x110] sm:$0xff] }
 0x116   : > { %863 = vrot.lane.b32.xlu0 %v6167_v1, %s5793_s18  ;;  %865 = vrot.lane.b32.xlu1 %v6169_v2, %s5793_s18  ;;  %v1116_v19 = vld [vmem:[#allocation2 + $0x128] sm:$0xff]  ;;  %v1118_v20 = vld [vmem:[#allocation2 + $0x138] sm:$0x3f]  ;;  %v4696_v21 = vpack.c.bf16 %v1113_v18, %v1111_v17  ;;  %v1115_v23 = vld [vmem:[#allocation2 + $0x120] sm:$0xff]  ;;  %s606_s28 = sand.u32 1, %s6905_s20   ;;  %p6908_p11 = scmp.ne.s32.totalorder %s6906_s24, 0 }
 0x117   : > { %v4698_v22 = vpack.c.bf16 %v1118_v20, %v1116_v19  ;;  %v1117_v28 = vld [vmem:[#allocation2 + $0x130] sm:$0x3f]  ;;  %v1240_v29 = vld [vmem:[#allocation2 + $0x148] sm:$0xff]  ;;  %v1242_v30 = vld [vmem:[#allocation2 + $0x158] sm:$0xff]  ;;  %s607_s30 = scalar_lea.vmem [#allocation17], %s606_s28 }
 0x118   : > { %v4701_v35 = vpack.c.bf16 %v1117_v28, %v1115_v23  ;;  %v4704_v36 = vpack.c.bf16 %v1242_v30, %v1240_v29  ;;  %v1241_v37 = vld [vmem:[#allocation2 + $0x150] sm:$0xff]  ;;  %v1244_v38 = vld [vmem:[#allocation2 + $0x168] sm:$0xff]  ;;  %v1243_v42 = vld [vmem:[#allocation2 + $0x160] sm:$0xff]  ;;  %s4047_s23 = sshll.u32 %s607_s30, 4  ;;  %s6801_s23 = int_to_ptr.vmem [resolvable:$true] %s4047_s23 }
 0x119   : > { %v1368_v44 = vld [vmem:[#allocation2 + $0x188] sm:$0xff]  ;;  %v1370_v45 = vld [vmem:[#allocation2 + $0x198] sm:$0xff]  ;;  %v1373_v57 = vld [vmem:[#allocation2 + $0x1b0] sm:$0x3f]  ;;  %s5693_s20 = scalar_lea.vmem %s6801_s23, 16  ;;  %p5700_p0 = scmp.lt.s32.totalorder %s6801_s23, %s5698_s25 }
 0x11a   : > { %867 = vrot.lane.b32.xlu0 %v6171_v3, %s5793_s18  ;;  %869 = vrot.lane.b32.xlu1 %v6177_v4, %s5793_s18  ;;  %v1372_v51 = vld [vmem:[#allocation2 + $0x1a8] sm:$0xff]  ;;  %v1374_v52 = vld [vmem:[#allocation2 + $0x1b8] sm:$0x3f]  ;;  %v1494_v5 = vld [vmem:[#allocation2 + $0x1c0] sm:$0xff]  ;;  %p5694_p8 = scmp.ne.s32.totalorder %s6801_s23, %s5693_s20  ;;  %p5701_p6 = scmp.lt.s32.totalorder %s5699_s5, %s5693_s20 }
 0x11b   : > { %v1495_v58 = vld [vmem:[#allocation2 + $0x1c8] sm:$0xff]  ;;  %v1497_v59 = vld [vmem:[#allocation2 + $0x1d8] sm:$0xff]  ;;  %v1496_v6 = vld [vmem:[#allocation2 + $0x1d0] sm:$0xff] }
 0x11c   : > { %v1498_v10 = vld [vmem:[#allocation2 + $0x1e0] sm:$0xff]  ;;  %v1629_v17 = vld [vmem:[#allocation2 + $0x238] sm:$0x3f]  ;;  %vm4987_vm13 = vmpackc.low %vm3158_vm12, %vm5792_vm1  ;;  %vm3360_vm1 = vcmask 785408   ;;  %p5695_p13 = pnand %p5694_p8, %p6908_p11  ;;  %p5702_p5 = por %p5701_p6, %p5700_p0 }
 0x11d   : > { %v1626_v20 = vld [vmem:[#allocation2 + $0x220] sm:$0xff] }
 0x11e   : > { %1119 = vrot.lane.b32.xlu0 %v6205_v24, %s5791_s17  ;;  %1121 = vrot.lane.b32.xlu1 %v6208_v25, %s5791_s17  ;;  %p5696_p1 = pneg %p5695_p13 }
 0x120   : > { %p5703_p9 = pnand %p5702_p5, %p5696_p1 }
 0x122   : > { %1123 = vrot.lane.b32.xlu0 %v6219_v27, %s5791_s17  ;;  %1125 = vrot.lane.b32.xlu1 %v6211_v26, %s5791_s17 }
 0x126   : > { %1247 = vrot.lane.b32.xlu0 %v6205_v24, %s5793_s18  ;;  %1249 = vrot.lane.b32.xlu1 %v6208_v25, %s5793_s18 }
 0x12a   : > { %1251 = vrot.lane.b32.xlu0 %v6219_v27, %s5793_s18  ;;  %1253 = vrot.lane.b32.xlu1 %v6211_v26, %s5793_s18 }
 0x12e   : > { %1502 = vrot.lane.b32.xlu0 %v6237_v31, %s5791_s17  ;;  %1504 = vrot.lane.b32.xlu1 %v6240_v32, %s5791_s17 }
 0x132   : > { %1506 = vrot.lane.b32.xlu0 %v6251_v34, %s5791_s17  ;;  %1508 = vrot.lane.b32.xlu1 %v6243_v33, %s5791_s17  ;;  %s6907_s17 = sld [smem:[#allocation34_spill]] }
 0x136   : > { %1630 = vrot.lane.b32.xlu0 %v6237_v31, %s5793_s18  ;;  %1632 = vrot.lane.b32.xlu1 %v6240_v32, %s5793_s18 }
 0x13a   : > { %1634 = vrot.lane.b32.xlu0 %v6251_v34, %s5793_s18  ;;  %1636 = vrot.lane.b32.xlu1 %v6243_v33, %s5793_s18  ;;  %s6799_s18 = scalar_lea.hbm %s6907_s17, %s4324_s15 }
 0x180   : > { %v639_v43 = vpop.permute.xlu0 %638  ;;  %v643_v49 = vpop.permute.xlu1 %642 }
 0x181   : > { %4216 = vmatmul.mubr.msk.f32.vlgmr.msra.gmra.mrb[0].mxu0 %vm646_vm4, %v639_v43  ;;  %v1245_v43 = vld [vmem:[#allocation2 + $0x170] sm:$0x3f] }
 0x182   : > { %732 = vmatprep.mubr.f32.mxu0 %v5790_v0  ;;  %4667 = vmatpush1.bf16.msra.mxu0 %v4666_v39  ;;  %v1246_v39 = vld [vmem:[#allocation2 + $0x178] sm:$0x3f] }
 0x183   : > { %4670 = vmatprep.subr.msk.bf16.mxu0 %vm6181_vm2, %v4668_v40  ;;  %v4708_v41 = vpack.c.bf16 %v1246_v39, %v1244_v38  ;;  %v1749_v38 = vld [vmem:[#allocation5] sm:$0x3] }
 0x184   : > { %v641_v48 = vpop.permute.xlu0 %640  ;;  %v645_v50 = vpop.permute.xlu1 %644 }
 0x185   : > { %4217 = vmatmul.mubr.msk.f32.gmra.mrb[2].mxu0 %vm646_vm4, %v641_v48 }
 0x186   : > { %738 = vmatprep.mubr.f32.mxu0 %v5790_v0  ;;  %4673 = vmatpush1.bf16.msk.msra.mxu0 %vm6181_vm2, %v4671_v46  ;;  %v4711_v46 = vpack.c.bf16 %v1245_v43, %v1243_v42 }
 0x187   : > { %4675 = vmatprep.subr.bf16.mxu0 %v4674_v47 }
 0x189   : > { %4218 = vmatmul.mubr.msk.f32.gmra.mrb[4].mxu0 %vm646_vm4, %v643_v49  ;;  %v1367_v49 = vld [vmem:[#allocation2 + $0x180] sm:$0xff] }
 0x18a   : > { %744 = vmatprep.mubr.f32.mxu0 %v5790_v0 }
 0x18d   : > { %4219 = vmatmul.mubr.msk.f32.gmra.mrb[6].mxu0 %vm646_vm4, %v645_v50  ;;  %v1369_v50 = vld [vmem:[#allocation2 + $0x190] sm:$0xff] }
 0x18e   : > { %829 = vmatprep.mubr.f32.mxu0 %v5790_v0  ;;  %v4716_v54 = vpack.c.bf16 %v1369_v50, %v1367_v49 }
 0x191   : > { %4222 = vmatmul.mubr.msk.f32.vlgmr.msra.gmra.mrb[0].mxu0 %vm646_vm4, %v6167_v1  ;;  %v985_v1 = vld [vmem:[#allocation2 + $0xd0] sm:$0xff] }
 0x192   : > { %835 = vmatprep.mubr.f32.mxu0 %v5790_v0  ;;  %4677 = vmatpush1.bf16.msra.mxu0 %v4676_v55  ;;  %v4686_v7 = vpack.c.bf16 %v985_v1, %v983_v63  ;;  %v4718_v55 = vpack.c.bf16 %v1374_v52, %v1372_v51 }
 0x193   : > { %4680 = vmatprep.subr.msk.bf16.mxu0 %vm6181_vm2, %v4678_v56  ;;  %v1371_v56 = vld [vmem:[#allocation2 + $0x1a0] sm:$0xff] }
 0x195   : > { %4223 = vmatmul.mubr.msk.f32.gmra.mrb[2].mxu0 %vm646_vm4, %v6169_v2  ;;  %v864_v2 = vpop.permute.xlu0 %863 }
 0x196   : > { %841 = vmatprep.mubr.f32.mxu0 %v5790_v0  ;;  %4683 = vmatpush1.bf16.msk.msra.mxu0 %vm6181_vm2, %v4681_v61  ;;  %v4721_v61 = vpack.c.bf16 %v1373_v57, %v1371_v56 }
 0x197   : > { %4685 = vmatprep.subr.bf16.mxu0 %v4684_v62  ;;  %v4724_v62 = vpack.c.bf16 %v1497_v59, %v1495_v58 }
 0x199   : > { %4224 = vmatmul.mubr.msk.f32.gmra.mrb[4].mxu0 %vm646_vm4, %v6171_v3  ;;  %v866_v3 = vpop.permute.xlu1 %865  ;;  %v868_v14 = vpop.permute.xlu0 %867 }
 0x19a   : > { %847 = vmatprep.mubr.f32.mxu0 %v5790_v0 }
 0x19d   : > { %4225 = vmatmul.mubr.msk.f32.gmra.mrb[6].mxu0 %vm646_vm4, %v6177_v4  ;;  %v4694_v4 = vpack.c.bf16 %v1114_v12, %v1112_v11  ;;  %v870_v15 = vpop.permute.xlu1 %869  ;;  %v1120_v40 = vpop.permute.xlu0 %1119  ;;  %v1500_v11 = vld [vmem:[#allocation2 + $0x1f0] sm:$0x3f]  ;;  %v1623_v12 = vld [vmem:[#allocation2 + $0x208] sm:$0xff] }
 0x19e   : > { %949 = vmatprep.mubr.f32.mxu0 %v5790_v0 }
 0x1a1   : > { %4228 = vmatmul.mubr.msk.f32.vlgmr.msra.gmra.mrb[0].mxu0 %vm646_vm4, %v864_v2  ;;  %v1124_v47 = vpop.permute.xlu0 %1123  ;;  %v1499_v2 = vld [vmem:[#allocation2 + $0x1e8] sm:$0xff] }
 0x1a2   : > { %955 = vmatprep.mubr.f32.mxu0 %v5790_v0  ;;  %4687 = vmatpush1.bf16.msra.mxu0 %v4686_v7  ;;  %v1501_v7 = vld [vmem:[#allocation2 + $0x1f8] sm:$0x3f] }
 0x1a3   : > { %4690 = vmatprep.subr.msk.bf16.mxu0 %vm6181_vm2, %v4688_v8  ;;  %v4726_v8 = vpack.c.bf16 %v1496_v6, %v1494_v5  ;;  %v4728_v9 = vpack.c.bf16 %v1501_v7, %v1499_v2 }
 0x1a5   : > { %4229 = vmatmul.mubr.msk.f32.gmra.mrb[2].mxu0 %vm646_vm4, %v866_v3  ;;  %v1248_v53 = vpop.permute.xlu0 %1247  ;;  %v1625_v3 = vld [vmem:[#allocation2 + $0x218] sm:$0xff] }
 0x1a6   : > { %961 = vmatprep.mubr.f32.mxu0 %v5790_v0  ;;  %4693 = vmatpush1.bf16.msk.msra.mxu0 %vm6181_vm2, %v4691_v13  ;;  %v4731_v13 = vpack.c.bf16 %v1500_v11, %v1498_v10 }
 0x1a7   : > { %4695 = vmatprep.subr.bf16.mxu0 %v4694_v4  ;;  %v4734_v4 = vpack.c.bf16 %v1625_v3, %v1623_v12 }
 0x1a9   : > { %4230 = vmatmul.mubr.msk.f32.gmra.mrb[4].mxu0 %vm646_vm4, %v868_v14  ;;  %v1252_v63 = vpop.permute.xlu0 %1251  ;;  %v1624_v14 = vld [vmem:[#allocation2 + $0x210] sm:$0xff] }
 0x1aa   : > { %967 = vmatprep.mubr.f32.mxu0 %v5790_v0 }
 0x1ad   : > { %4231 = vmatmul.mubr.msk.f32.gmra.mrb[6].mxu0 %vm646_vm4, %v870_v15  ;;  %v1627_v15 = vld [vmem:[#allocation2 + $0x228] sm:$0xff]  ;;  %v1503_v18 = vpop.permute.xlu0 %1502 }
 0x1ae   : > { %1077 = vmatprep.mubr.f32.mxu0 %v5790_v0  ;;  %v4738_v19 = vpack.c.bf16 %v1629_v17, %v1627_v15 }
 0x1b1   : > { %4234 = vmatmul.mubr.msk.f32.vlgmr.msra.gmra.mrb[0].mxu0 %vm646_vm4, %v6205_v24  ;;  %v1239_v24 = vld [vmem:[#allocation2 + $0x140] sm:$0xff] }
 0x1b2   : > { %1083 = vmatprep.mubr.f32.mxu0 %v5790_v0  ;;  %4697 = vmatpush1.bf16.msra.mxu0 %v4696_v21  ;;  %v1628_v21 = vld [vmem:[#allocation2 + $0x230] sm:$0x3f] }
 0x1b3   : > { %4700 = vmatprep.subr.msk.bf16.mxu0 %vm6181_vm2, %v4698_v22 }
 0x1b5   : > { %4235 = vmatmul.mubr.msk.f32.gmra.mrb[2].mxu0 %vm646_vm4, %v6208_v25  ;;  %v4706_v25 = vpack.c.bf16 %v1241_v37, %v1239_v24 }
 0x1b6   : > { %1089 = vmatprep.mubr.f32.mxu0 %v5790_v0  ;;  %4703 = vmatpush1.bf16.msk.msra.mxu0 %vm6181_vm2, %v4701_v35 }
 0x1b7   : > { %4705 = vmatprep.subr.bf16.mxu0 %v4704_v36  ;;  %v1751_v36 = vlaneseq }
 0x1b9   : > { %4236 = vmatmul.mubr.msk.f32.gmra.mrb[4].mxu0 %vm646_vm4, %v6219_v27  ;;  %v1122_v27 = vpop.permute.xlu1 %1121  ;;  %v6381_v24 = vshrl.u32 %v1751_v36, 7 }
 0x1ba   : > { %1095 = vmatprep.mubr.f32.mxu0 %v5790_v0 }
 0x1bb   : > { %v1753_v37 = vsub.s32 0, %v6381_v24  ;;  %v1757_v39 = vsub.s32 1, %v6381_v24 }
 0x1bd   : > { %4237 = vmatmul.mubr.msk.f32.gmra.mrb[6].mxu0 %vm646_vm4, %v6211_v26  ;;  %v4714_v26 = vpack.c.bf16 %v1370_v45, %v1368_v44  ;;  %v1126_v48 = vpop.permute.xlu1 %1125 }
 0x1be   : > { %1205 = vmatprep.mubr.f32.mxu0 %v5790_v0 }
 0x1c1   : > { %4240 = vmatmul.mubr.msk.f32.vlgmr.msra.gmra.mrb[0].mxu0 %vm646_vm4, %v1120_v40  ;;  %v1250_v60 = vpop.permute.xlu1 %1249  ;;  %v1754_v40 = vrot.slane %v1749_v38, %v1753_v37 }
 0x1c2   : > { %1211 = vmatprep.mubr.f32.mxu0 %v5790_v0  ;;  %4707 = vmatpush1.bf16.msra.mxu0 %v4706_v25  ;;  %v1758_v25 = vrot.slane %v1749_v38, %v1757_v39 }
 0x1c3   : > { %4710 = vmatprep.subr.msk.bf16.mxu0 %vm6181_vm2, %v4708_v41 }
 0x1c5   : > { %4241 = vmatmul.mubr.msk.f32.gmra.mrb[2].mxu0 %vm646_vm4, %v1122_v27  ;;  %v1254_v1 = vpop.permute.xlu1 %1253 }
 0x1c6   : > { %1217 = vmatprep.mubr.f32.mxu0 %v5790_v0  ;;  %4713 = vmatpush1.bf16.msk.msra.mxu0 %vm6181_vm2, %v4711_v46 }
 0x1c7   : > { %4715 = vmatprep.subr.bf16.mxu0 %v4714_v26 }
 0x1c9   : > { %4242 = vmatmul.mubr.msk.f32.gmra.mrb[4].mxu0 %vm646_vm4, %v1124_v47  ;;  %v1505_v22 = vpop.permute.xlu1 %1504 }
 0x1ca   : > { %1223 = vmatprep.mubr.f32.mxu0 %v5790_v0 }
 0x1cd   : > { %4243 = vmatmul.mubr.msk.f32.gmra.mrb[6].mxu0 %vm646_vm4, %v1126_v48  ;;  %v1509_v23 = vpop.permute.xlu1 %1508 }
 0x1ce   : > { %1333 = vmatprep.mubr.f32.mxu0 %v5790_v0 }
 0x1d1   : > { %4246 = vmatmul.mubr.msk.f32.vlgmr.msra.gmra.mrb[0].mxu0 %vm646_vm4, %v1248_v53  ;;  %v1633_v29 = vpop.permute.xlu1 %1632 }
 0x1d2   : > { %1339 = vmatprep.mubr.f32.mxu0 %v5790_v0  ;;  %4717 = vmatpush1.bf16.msra.mxu0 %v4716_v54 }
 0x1d3   : > { %4720 = vmatprep.subr.msk.bf16.mxu0 %vm6181_vm2, %v4718_v55 }
 0x1d5   : > { %4247 = vmatmul.mubr.msk.f32.gmra.mrb[2].mxu0 %vm646_vm4, %v1250_v60  ;;  %v1637_v35 = vpop.permute.xlu1 %1636 }
 0x1d6   : > { %1345 = vmatprep.mubr.f32.mxu0 %v5790_v0  ;;  %4723 = vmatpush1.bf16.msk.msra.mxu0 %vm6181_vm2, %v4721_v61 }
 0x1d7   : > { %4725 = vmatprep.subr.bf16.mxu0 %v4724_v62 }
 0x1d9   : > { %4248 = vmatmul.mubr.msk.f32.gmra.mrb[4].mxu0 %vm646_vm4, %v1252_v63 }
 0x1da   : > { %1351 = vmatprep.mubr.f32.mxu0 %v5790_v0 }
 0x1dd   : > { %4249 = vmatmul.mubr.msk.f32.gmra.mrb[6].mxu0 %vm646_vm4, %v1254_v1 }
 0x1de   : > { %1460 = vmatprep.mubr.f32.mxu0 %v5790_v0 }
 0x1e1   : > { %4252 = vmatmul.mubr.msk.f32.vlgmr.msra.gmra.mrb[0].mxu0 %vm646_vm4, %v6237_v31  ;;  %v1622_v31 = vld [vmem:[#allocation2 + $0x200] sm:$0xff] }
 0x1e2   : > { %1466 = vmatprep.mubr.f32.mxu0 %v5790_v0  ;;  %4727 = vmatpush1.bf16.msra.mxu0 %v4726_v8 }
 0x1e3   : > { %4730 = vmatprep.subr.msk.bf16.mxu0 %vm6181_vm2, %v4728_v9 }
 0x1e5   : > { %4253 = vmatmul.mubr.msk.f32.gmra.mrb[2].mxu0 %vm646_vm4, %v6240_v32  ;;  %v4736_v32 = vpack.c.bf16 %v1624_v14, %v1622_v31 }
 0x1e6   : > { %1472 = vmatprep.mubr.f32.mxu0 %v5790_v0  ;;  %4733 = vmatpush1.bf16.msk.msra.mxu0 %vm6181_vm2, %v4731_v13 }
 0x1e7   : > { %4735 = vmatprep.subr.bf16.mxu0 %v4734_v4 }
 0x1e9   : > { %4254 = vmatmul.mubr.msk.f32.gmra.mrb[4].mxu0 %vm646_vm4, %v6251_v34  ;;  %v4741_v34 = vpack.c.bf16 %v1628_v21, %v1626_v20 }
 0x1ea   : > { %1478 = vmatprep.mubr.f32.mxu0 %v5790_v0 }
 0x1ed   : > { %4255 = vmatmul.mubr.msk.f32.gmra.mrb[6].mxu0 %vm646_vm4, %v6243_v33  ;;  %v1507_v33 = vpop.permute.xlu0 %1506 }
 0x1ee   : > { %1588 = vmatprep.mubr.f32.mxu0 %v5790_v0 }
 0x1f1   : > { %4258 = vmatmul.mubr.msk.f32.vlgmr.msra.gmra.mrb[0].mxu0 %vm646_vm4, %v1503_v18  ;;  %v1631_v28 = vpop.permute.xlu0 %1630 }
 0x1f2   : > { %1594 = vmatprep.mubr.f32.mxu0 %v5790_v0  ;;  %4737 = vmatpush1.bf16.msra.mxu0 %v4736_v32 }
 0x1f3   : > { %4740 = vmatprep.subr.msk.bf16.mxu0 %vm6181_vm2, %v4738_v19 }
 0x1f5   : > { %4259 = vmatmul.mubr.msk.f32.gmra.mrb[2].mxu0 %vm646_vm4, %v1505_v22  ;;  %v1635_v30 = vpop.permute.xlu0 %1634 }
 0x1f6   : > { %1600 = vmatprep.mubr.f32.mxu0 %v5790_v0  ;;  %4743 = vmatpush1.bf16.msk.msra.mxu0 %vm6181_vm2, %v4741_v34 }
 0x1f9   : > { %4260 = vmatmul.mubr.msk.f32.gmra.mrb[4].mxu0 %vm646_vm4, %v1507_v33 }
 0x1fa   : > { %1606 = vmatprep.mubr.f32.mxu0 %v5790_v0 }
 0x1fd   : > { %4261 = vmatmul.mubr.msk.f32.gmra.mrb[6].mxu0 %vm646_vm4, %v1509_v23 }
 0x1fe   : > { %1716 = vmatprep.mubr.f32.mxu0 %v5790_v0 }
 0x201   : > { %4264 = vmatmul.mubr.msk.f32.vlgmr.msra.gmra.mrb[0].mxu0 %vm646_vm4, %v1631_v28 }
 0x202   : > { %1722 = vmatprep.mubr.f32.mxu0 %v5790_v0 }
 0x205   : > { %4265 = vmatmul.mubr.msk.f32.gmra.mrb[2].mxu0 %vm646_vm4, %v1633_v29 }
 0x206   : > { %1728 = vmatprep.mubr.f32.mxu0 %v5790_v0 }
 0x209   : > { %4266 = vmatmul.mubr.msk.f32.gmra.mrb[4].mxu0 %vm646_vm4, %v1635_v30 }
 0x20a   : > { %1734 = vmatprep.mubr.f32.mxu0 %v5790_v0 }
 0x20d   : > { %4267 = vmatmul.mubr.msk.f32.gmra.mrb[6].mxu0 %vm646_vm4, %v1637_v35  ;;  %vm4032_vm4 = vcmask 73728  }
 0x20e   : > { %3229 = vmatprep.mubr.f32.mxu0 %v5790_v0 }
 0x2d4   : > { %v1718_v41 = vpop.f32.mrb[0].mxu0 }
 0x2d5   : > { %v1761_v42 = vadd.f32 %v1754_v40, %v1718_v41  ;;  %v1720_v43 = vpop.f32.mrb[1].mxu0 }
 0x2d6   : > { %v1762_v44 = vadd.f32 %v1758_v25, %v1720_v43 }
 0x2d7   : > { %v1769_v27 = vmax.f32 %v1761_v42, 0.0 }
 0x2d8   : > { %v1724_v45 = vpop.f32.mrb[2].mxu0  ;;  %v1770_v47 = vmax.f32 %v1762_v44, 0.0 }
 0x2d9   : > { %v1763_v46 = vadd.f32 %v1754_v40, %v1724_v45  ;;  %v1726_v26 = vpop.f32.mrb[3].mxu0  ;;  %v1785_v52 = vrot.slane %v1769_v27, 1 }
 0x2da   : > { %v1764_v48 = vadd.f32 %v1758_v25, %v1726_v26  ;;  %v1788_v56 = vrot.slane %v1770_v47, 1 }
 0x2db   : > { %v1771_v49 = vmax.f32 %v1763_v46, 0.0 }
 0x2dc   : > { %v1772_v50 = vmax.f32 %v1764_v48, 0.0  ;;  %v1730_v51 = vpop.f32.mrb[4].mxu0 }
 0x2dd   : > { %v1786_v53 = vrot.slane %v1771_v49, 1  ;;  %v1765_v54 = vadd.f32 %v1754_v40, %v1730_v51  ;;  %v1732_v55 = vpop.f32.mrb[5].mxu0 }
 0x2de   : > { %v1789_v57 = vrot.slane %v1772_v50, 1  ;;  %v1766_v58 = vadd.f32 %v1758_v25, %v1732_v55 }
 0x2df   : > { %v1773_v59 = vmax.f32 %v1765_v54, 0.0  ;;  %v1787_v60 = vsel %vm991_vm3, %v1785_v52, %v1786_v53 }
 0x2e0   : > { %v1774_v61 = vmax.f32 %v1766_v58, 0.0  ;;  %v1736_v62 = vpop.f32.mrb[6].mxu0  ;;  %v1790_v63 = vsel %vm991_vm3, %v1788_v56, %v1789_v57  ;;  %v1807_v1 = vmax.f32 %v1769_v27, %v1787_v60  ;;  %v1953_v58 = vld [vmem:[#allocation7] sm:$0xff] }
 0x2e1   : > { %v1791_v5 = vrot.slane %v1773_v59, 1  ;;  %v1767_v6 = vadd.f32 %v1754_v40, %v1736_v62  ;;  %v1738_v2 = vpop.f32.mrb[7].mxu0  ;;  %v1808_v7 = vmax.f32 %v1770_v47, %v1790_v63  ;;  %v1860_v60 = vld [vmem:[%s6844_s3] sm:$0xff]  ;;  %v5795_v62 = vmov 0.0|0.0   ;;  %v1955_v63 = vld [vmem:[#allocation7 + $0x10] sm:$0xff] }
 0x2e2   : > { %v1793_v8 = vrot.slane %v1774_v61, 1  ;;  %v1768_v9 = vadd.f32 %v1758_v25, %v1738_v2  ;;  %v1957_v2 = vld [vmem:[#allocation7 + $0x20] sm:$0xff] }
 0x2e3   : > { %v1775_v10 = vmax.f32 %v1767_v6, 0.0  ;;  %v5411_v11 = vpack.i.bf16 %v1808_v7, %v1807_v1  ;;  %v1792_v12 = vsel %vm991_vm3, %v1786_v53, %v1791_v5 }
 0x2e4   : > { %v1776_v3 = vmax.f32 %v1768_v9, 0.0  ;;  %v1794_v13 = vsel %vm991_vm3, %v1789_v57, %v1793_v8  ;;  %v1809_v4 = vmax.f32 %v1771_v49, %v1792_v12  ;;  %v1959_v9 = vld [vmem:[#allocation7 + $0x30] sm:$0xff]  ;;  %v1961_v12 = vld [vmem:[#allocation7 + $0x40] sm:$0xff] }
 0x2e5   : > { %v1795_v31 = vrot.slane %v1775_v10, 1  ;;  %5412 = vrot.lane.b32.xlu0 %v5411_v11, %s5794_s26  ;;  %v1810_v14 = vmax.f32 %v1772_v50, %v1794_v13 }
 0x2e6   : > { %v1797_v15 = vrot.slane %v1776_v3, 1 }
 0x2e7   : > { %v1813_v17 = vmax.f32 %v1775_v10, %v1795_v31  ;;  %v5416_v18 = vpack.i.bf16 %v1810_v14, %v1809_v4  ;;  %v1796_v32 = vsel %vm991_vm3, %v1791_v5, %v1795_v31  ;;  %v1861_v5 = vld [vmem:[%s6844_s3 + $0x8] sm:$0x7f]  ;;  %v1960_v10 = vld [vmem:[#allocation7 + $0x38] sm:$0xff] }
 0x2e8   : > { %v1814_v19 = vmax.f32 %v1776_v3, %v1797_v15  ;;  %v1798_v20 = vsel %vm991_vm3, %v1793_v8, %v1797_v15  ;;  %v1811_v21 = vmax.f32 %v1773_v59, %v1796_v32  ;;  %v1954_v59 = vld [vmem:[#allocation7 + $0x8] sm:$0xff]  ;;  %v4764_v11 = vpack.c.bf16 %v1960_v10, %v1959_v9  ;;  %v1964_v31 = vld [vmem:[#allocation7 + $0x58] sm:$0xff]  ;;  %v1965_v15 = vld [vmem:[#allocation7 + $0x60] sm:$0xff] }
 0x2e9   : > { %5417 = vrot.lane.b32.xlu1 %v5416_v18, %s5794_s26  ;;  %v1812_v22 = vmax.f32 %v1774_v61, %v1798_v20  ;;  %v4755_v61 = vpack.c.bf16 %v1954_v59, %v1953_v58  ;;  %v1962_v3 = vld [vmem:[#allocation7 + $0x48] sm:$0xff]  ;;  %v1967_v32 = vld [vmem:[#allocation7 + $0x70] sm:$0xff] }
 0x2ea   : > { %v5426_v34 = vpack.i.bf16 %v1814_v19, %v1813_v17  ;;  %v4767_v13 = vpack.c.bf16 %v1962_v3, %v1961_v12  ;;  %v2063_v9 = vld [vmem:[#allocation8 + $0x18] sm:$0xff] }
 0x2eb   : > { %v5421_v33 = vpack.i.bf16 %v1812_v22, %v1811_v21 }
 0x2ed   : > { %5427 = vrot.lane.b32.xlu1 %v5426_v34, %s5794_s26  ;;  %5422 = vrot.lane.b32.xlu0 %v5421_v33, %s5794_s26  ;;  %v1971_v33 = vld [vmem:[#allocation7 + $0x90] sm:$0xff] }
 0x357   : > { %v5413_v23 = vpop.permute.xlu0 %5412 }
 0x358   : > { %v5415_v28 = vunpack.i.h.bf16 %v5413_v23  ;;  %v5414_v29 = vunpack.i.l.bf16 %v5413_v23  ;;  %v1972_v23 = vld [vmem:[#allocation7 + $0x98] sm:$0xff] }
 0x35a   : > { %v1840_v38 = vsel %vm1839_vm5, %v5414_v29, %v5415_v28  ;;  %v1853_v43 = vmax.f32 %v1808_v7, %v5415_v28  ;;  %v1958_v7 = vld [vmem:[#allocation7 + $0x28] sm:$0xff]  ;;  %v4782_v28 = vpack.c.bf16 %v1972_v23, %v1971_v33  ;;  %v1973_v29 = vld [vmem:[#allocation7 + $0xa0] sm:$0xff]  ;;  %v2064_v23 = vld [vmem:[#allocation8 + $0x20] sm:$0xff] }
 0x35b   : > { %v5418_v30 = vpop.permute.xlu1 %5417  ;;  %v1852_v44 = vmax.f32 %v1807_v1, %v1840_v38  ;;  %v1956_v1 = vld [vmem:[#allocation7 + $0x18] sm:$0xff]  ;;  %v4761_v8 = vpack.c.bf16 %v1958_v7, %v1957_v2  ;;  %v2097_v2 = vld [vmem:[#allocation8 + $0x120] sm:$0xff]  ;;  %v2099_v7 = vld [vmem:[#allocation8 + $0x130] sm:$0x3f] }
 0x35c   : > { %v5420_v35 = vunpack.i.h.bf16 %v5418_v30  ;;  %v5419_v36 = vunpack.i.l.bf16 %v5418_v30  ;;  %v4758_v6 = vpack.c.bf16 %v1956_v1, %v1955_v63  ;;  %v1974_v30 = vld [vmem:[#allocation7 + $0xa8] sm:$0x3f]  ;;  %v2098_v63 = vld [vmem:[#allocation8 + $0x128] sm:$0xff]  ;;  %v4807_v10 = vpack.c.bf16 %v2099_v7, %v2097_v2 }
 0x35d   : > { %v2100_v1 = vld [vmem:[#allocation8 + $0x138] sm:$0x3f] }
 0x35e   : > { %v1855_v40 = vmax.f32 %v1810_v14, %v5420_v35  ;;  %v1841_v25 = vsel %vm1839_vm5, %v5419_v36, %v5420_v35  ;;  %v4785_v35 = vpack.c.bf16 %v1974_v30, %v1973_v29  ;;  %v2069_v30 = vld [vmem:[#allocation8 + $0x48] sm:$0xff] }
 0x35f   : > { %v5428_v41 = vpop.permute.xlu1 %5427  ;;  %v5423_v42 = vpop.permute.xlu0 %5422  ;;  %v1854_v45 = vmax.f32 %v1809_v4, %v1841_v25  ;;  %v1963_v4 = vld [vmem:[#allocation7 + $0x50] sm:$0xff] }
 0x360   : > { %v5430_v27 = vunpack.i.h.bf16 %v5428_v41  ;;  %v5429_v46 = vunpack.i.l.bf16 %v5428_v41  ;;  %v5425_v26 = vunpack.i.h.bf16 %v5423_v42  ;;  %v5424_v47 = vunpack.i.l.bf16 %v5423_v42  ;;  %v2082_v41 = vld [vmem:[#allocation8 + $0xa8] sm:$0xff]  ;;  %v2084_v42 = vld [vmem:[#allocation8 + $0xb8] sm:$0xff] }
 0x361   : > { %v4744_v48 = vpack.c.bf16 %v1855_v40, %v1853_v43  ;;  %v4746_v49 = vpack.c.bf16 %v1854_v45, %v1852_v44  ;;  %v4770_v14 = vpack.c.bf16 %v1964_v31, %v1963_v4  ;;  %v2081_v43 = vld [vmem:[#allocation8 + $0xa0] sm:$0xff]  ;;  %v4788_v44 = vpack.c.bf16 %v2084_v42, %v2082_v41  ;;  %v2083_v45 = vld [vmem:[#allocation8 + $0xb0] sm:$0xff]  ;;  %v2073_v42 = vld [vmem:[#allocation8 + $0x68] sm:$0xff] }
 0x362   : > { %v1859_v50 = vmax.f32 %v1814_v19, %v5430_v27  ;;  %v1843_v51 = vsel %vm1839_vm5, %v5429_v46, %v5430_v27  ;;  %v1857_v52 = vmax.f32 %v1812_v22, %v5425_v26  ;;  %v1842_v53 = vsel %vm1839_vm5, %v5424_v47, %v5425_v26  ;;  %v1968_v19 = vld [vmem:[#allocation7 + $0x78] sm:$0xff]  ;;  %v1970_v22 = vld [vmem:[#allocation7 + $0x88] sm:$0xff] }
 0x363   : > { %v1858_v54 = vmax.f32 %v1813_v17, %v1843_v51  ;;  %v1856_v55 = vmax.f32 %v1811_v21, %v1842_v53  ;;  %4745 = vmatprep.subr.bf16.mxu1 %v4744_v48  ;;  %v1966_v17 = vld [vmem:[#allocation7 + $0x68] sm:$0xff]  ;;  %v4776_v20 = vpack.c.bf16 %v1968_v19, %v1967_v32  ;;  %v1969_v21 = vld [vmem:[#allocation7 + $0x80] sm:$0xff]  ;;  %v2086_v27 = vld [vmem:[#allocation8 + $0xc8] sm:$0xff]  ;;  %v4790_v26 = vpack.c.bf16 %v2083_v45, %v2081_v43 }
 0x364   : > { %v4748_v56 = vpack.c.bf16 %v1859_v50, %v1857_v52  ;;  %4747 = vmatpush1.bf16.msra.mxu1 %v4746_v49  ;;  %v4773_v18 = vpack.c.bf16 %v1966_v17, %v1965_v15  ;;  %v4779_v34 = vpack.c.bf16 %v1970_v22, %v1969_v21  ;;  %v2088_v46 = vld [vmem:[#allocation8 + $0xd8] sm:$0xff]  ;;  %v2085_v48 = vld [vmem:[#allocation8 + $0xc0] sm:$0xff]  ;;  %v2087_v49 = vld [vmem:[#allocation8 + $0xd0] sm:$0xff] }
 0x365   : > { %v4751_v57 = vpack.c.bf16 %v1858_v54, %v1856_v55  ;;  %v4792_v47 = vpack.c.bf16 %v2088_v46, %v2086_v27  ;;  %v2090_v50 = vld [vmem:[#allocation8 + $0xe8] sm:$0xff]  ;;  %v2092_v51 = vld [vmem:[#allocation8 + $0xf8] sm:$0xff]  ;;  %v4794_v52 = vpack.c.bf16 %v2087_v49, %v2085_v48  ;;  %v2089_v54 = vld [vmem:[#allocation8 + $0xe0] sm:$0xff] }
 0x366   : > { %4750 = vmatprep.subr.msk.bf16.mxu1 %vm4749_vm7, %v4748_v56  ;;  %v4796_v53 = vpack.c.bf16 %v2092_v51, %v2090_v50  ;;  %v2091_v55 = vld [vmem:[#allocation8 + $0xf0] sm:$0xff]  ;;  %v2094_v56 = vld [vmem:[#allocation8 + $0x108] sm:$0xff]  ;;  %v2060_v19 = vld [vmem:[#allocation8] sm:$0xff] }
 0x367   : > { %v4798_v58 = vpack.c.bf16 %v2091_v55, %v2089_v54  ;;  %v2065_v21 = vld [vmem:[#allocation8 + $0x28] sm:$0xff]  ;;  %v2067_v22 = vld [vmem:[#allocation8 + $0x38] sm:$0xff]  ;;  %v2072_v27 = vld [vmem:[#allocation8 + $0x60] sm:$0xff] }
 0x368   : > { %4753 = vmatpush1.bf16.msk.msra.mxu1 %vm4749_vm7, %v4751_v57  ;;  %v2096_v57 = vld [vmem:[#allocation8 + $0x118] sm:$0xff]  ;;  %v4814_v33 = vpack.c.bf16 %v2067_v22, %v2065_v21  ;;  %v2074_v46 = vld [vmem:[#allocation8 + $0x70] sm:$0xff]  ;;  %v2076_v50 = vld [vmem:[#allocation8 + $0x80] sm:$0xff] }
 0x369   : > { %4754 = vmatprep.subr.bf16.mxu1 %v5795_v62  ;;  %v4800_v59 = vpack.c.bf16 %v2096_v57, %v2094_v56  ;;  %v2075_v43 = vld [vmem:[#allocation8 + $0x78] sm:$0xff]  ;;  %v4824_v48 = vpack.c.bf16 %v2074_v46, %v2072_v27  ;;  %v2078_v51 = vld [vmem:[#allocation8 + $0x90] sm:$0x3f]  ;;  %v2283_v56 = vld [vmem:[#allocation8 + $0x140] sm:$0xff] }
 0x36a   : > { %v4822_v45 = vpack.c.bf16 %v2075_v43, %v2073_v42  ;;  %v4829_v54 = vpack.c.bf16 %v2078_v51, %v2076_v50  ;;  %v2285_v57 = vld [vmem:[#allocation8 + $0x150] sm:$0xff]  ;;  %v2299_v22 = vld [vmem:[#allocation8 + $0x1c0] sm:$0xff]  ;;  %v2408_v43 = vld [vmem:[#allocation8 + $0x228] sm:$0xff] }
 0x36b   : > { %4270 = vmatmul.mubr.msk.f32.vlgmr.msra.gmra.mrb[0].mxu1 %vm1862_vm8, %v1860_v60  ;;  %v2093_v60 = vld [vmem:[#allocation8 + $0x100] sm:$0xff] }
 0x36c   : > { %1946 = vmatprep.mubr.f32.mxu1 %v5790_v0  ;;  %4756 = vmatpush1.bf16.msra.mxu1 %v4755_v61  ;;  %v2095_v61 = vld [vmem:[#allocation8 + $0x110] sm:$0xff]  ;;  %v2407_v46 = vld [vmem:[#allocation8 + $0x220] sm:$0xff] }
 0x36d   : > { %4757 = vmatprep.subr.bf16.mxu1 %v5795_v62 }
 0x36f   : > { %4271 = vmatmul.mubr.msk.f32.gmra.mrb[2].mxu1 %vm1862_vm8, %v1861_v5  ;;  %v4802_v5 = vpack.c.bf16 %v2095_v61, %v2093_v60  ;;  %v4834_v60 = vpack.c.bf16 %v2285_v57, %v2283_v56 }
 0x370   : > { %4759 = vmatpush1.bf16.msra.mxu1 %v4758_v6  ;;  %v4804_v6 = vpack.c.bf16 %v2100_v1, %v2098_v63  ;;  %v2287_v63 = vld [vmem:[#allocation8 + $0x160] sm:$0xff]  ;;  %v2289_v1 = vld [vmem:[#allocation8 + $0x170] sm:$0xff] }
 0x371   : > { %4760 = vmatprep.subr.bf16.mxu1 %v5795_v62  ;;  %v4838_v2 = vpack.c.bf16 %v2289_v1, %v2287_v63 }
 0x374   : > { %4762 = vmatpush1.bf16.msra.mxu1 %v4761_v8  ;;  %v2061_v8 = vld [vmem:[#allocation8 + $0x8] sm:$0xff] }
 0x375   : > { %4763 = vmatprep.subr.bf16.mxu1 %v5795_v62 }
 0x378   : > { %4765 = vmatpush1.bf16.msra.mxu1 %v4764_v11  ;;  %v4810_v11 = vpack.c.bf16 %v2063_v9, %v2061_v8  ;;  %v2291_v8 = vld [vmem:[#allocation8 + $0x180] sm:$0xff]  ;;  %v2293_v9 = vld [vmem:[#allocation8 + $0x190] sm:$0xff] }
 0x379   : > { %4766 = vmatprep.subr.bf16.mxu1 %v5795_v62 }
 0x37c   : > { %4768 = vmatpush1.bf16.msra.mxu1 %v4767_v13 }
 0x37d   : > { %4769 = vmatprep.subr.bf16.mxu1 %v5795_v62 }
 0x380   : > { %4771 = vmatpush1.bf16.msra.mxu1 %v4770_v14 }
 0x381   : > { %4772 = vmatprep.subr.bf16.mxu1 %v5795_v62 }
 0x384   : > { %4774 = vmatpush1.bf16.msra.mxu1 %v4773_v18 }
 0x385   : > { %4775 = vmatprep.subr.bf16.mxu1 %v5795_v62 }
 0x388   : > { %4777 = vmatpush1.bf16.msra.mxu1 %v4776_v20  ;;  %v2062_v20 = vld [vmem:[#allocation8 + $0x10] sm:$0xff] }
 0x389   : > { %4778 = vmatprep.subr.bf16.mxu1 %v5795_v62 }
 0x38c   : > { %4780 = vmatpush1.bf16.msra.mxu1 %v4779_v34  ;;  %v4812_v34 = vpack.c.bf16 %v2062_v20, %v2060_v19  ;;  %v2302_v19 = vld [vmem:[#allocation8 + $0x1d8] sm:$0x3f] }
 0x38d   : > { %4781 = vmatprep.subr.bf16.mxu1 %v5795_v62 }
 0x390   : > { %4783 = vmatpush1.bf16.msra.mxu1 %v4782_v28  ;;  %v2066_v28 = vld [vmem:[#allocation8 + $0x30] sm:$0xff] }
 0x391   : > { %4784 = vmatprep.subr.bf16.mxu1 %v5795_v62 }
 0x394   : > { %4787 = vmatpush1.bf16.msk.msra.mxu1 %vm6181_vm2, %v4785_v35  ;;  %v2071_v35 = vld [vmem:[#allocation8 + $0x58] sm:$0xff] }
 0x395   : > { %4789 = vmatprep.subr.bf16.mxu1 %v4788_v44 }
 0x43e   : > { %v1942_v36 = vpop.f32.mrb[0].mxu1 }
 0x43f   : > { %v1944_v38 = vpop.f32.mrb[1].mxu1 }
 0x440   : > { %4273 = vmatprep.mubr.msk.f32.mxu1 %vm1975_vm9, %v1944_v38  ;;  %v4818_v38 = vpack.c.bf16 %v2071_v35, %v2069_v30  ;;  %v2401_v30 = vld [vmem:[#allocation8 + $0x1f0] sm:$0xff]  ;;  %v2404_v35 = vld [vmem:[#allocation8 + $0x208] sm:$0xff] }
 0x441   : > { %2050 = vmatmul.mubr.f32.vlgmr.msra.gmra.mrb[4].mxu1 %v1942_v36  ;;  %v4816_v36 = vpack.c.bf16 %v2066_v28, %v2064_v23  ;;  %v2402_v23 = vld [vmem:[#allocation8 + $0x1f8] sm:$0xff] }
 0x442   : > { %v1948_v40 = vpop.f32.mrb[2].mxu1  ;;  %4791 = vmatpush1.bf16.msra.mxu1 %v4790_v26  ;;  %v2077_v26 = vld [vmem:[#allocation8 + $0x88] sm:$0xff] }
 0x443   : > { %v1950_v25 = vpop.f32.mrb[3].mxu1  ;;  %4793 = vmatprep.subr.bf16.mxu1 %v4792_v47  ;;  %v2079_v47 = vld [vmem:[#allocation8 + $0x98] sm:$0x3f] }
 0x444   : > { %4274 = vmatprep.mubr.msk.f32.mxu1 %vm1975_vm9, %v1950_v25  ;;  %v2070_v25 = vld [vmem:[#allocation8 + $0x50] sm:$0xff]  ;;  %v4826_v49 = vpack.c.bf16 %v2079_v47, %v2077_v26 }
 0x445   : > { %2055 = vmatmul.mubr.f32.gmra.mrb[6].mxu1 %v1948_v40  ;;  %v2068_v40 = vld [vmem:[#allocation8 + $0x40] sm:$0xff]  ;;  %v2409_v26 = vld [vmem:[#allocation8 + $0x230] sm:$0xff] }
 0x446   : > { %2182 = vmatprep.mubr.f32.mxu1 %v5790_v0  ;;  %4795 = vmatpush1.bf16.msra.mxu1 %v4794_v52  ;;  %v4820_v44 = vpack.c.bf16 %v2070_v25, %v2068_v40  ;;  %v2284_v52 = vld [vmem:[#allocation8 + $0x148] sm:$0xff]  ;;  %v2403_v25 = vld [vmem:[#allocation8 + $0x200] sm:$0xff]  ;;  %v4864_v50 = vpack.c.bf16 %v2409_v26, %v2407_v46  ;;  %v2636_v46 = vld [vmem:[#allocation8 + $0x350] sm:$0xff] }
 0x447   : > { %4797 = vmatprep.subr.bf16.mxu1 %v4796_v53  ;;  %v2286_v53 = vld [vmem:[#allocation8 + $0x158] sm:$0xff] }
 0x448   : > { %v4832_v55 = vpack.c.bf16 %v2286_v53, %v2284_v52  ;;  %v2411_v52 = vld [vmem:[#allocation8 + $0x240] sm:$0xff]  ;;  %v2413_v53 = vld [vmem:[#allocation8 + $0x250] sm:$0xff] }
 0x449   : > { %v4868_v56 = vpack.c.bf16 %v2413_v53, %v2411_v52  ;;  %v2640_v52 = vld [vmem:[#allocation8 + $0x370] sm:$0xff] }
 0x44a   : > { %4799 = vmatpush1.bf16.msra.mxu1 %v4798_v58  ;;  %v2288_v58 = vld [vmem:[#allocation8 + $0x168] sm:$0xff] }
 0x44b   : > { %4801 = vmatprep.subr.bf16.mxu1 %v4800_v59  ;;  %v2290_v59 = vld [vmem:[#allocation8 + $0x178] sm:$0xff] }
 0x44c   : > { %v4836_v61 = vpack.c.bf16 %v2290_v59, %v2288_v58  ;;  %v2415_v58 = vld [vmem:[#allocation8 + $0x260] sm:$0xff]  ;;  %v2417_v59 = vld [vmem:[#allocation8 + $0x270] sm:$0x3f] }
 0x44d   : > { %v4873_v63 = vpack.c.bf16 %v2417_v59, %v2415_v58  ;;  %v2642_v58 = vld [vmem:[#allocation8 + $0x380] sm:$0xff]  ;;  %v2644_v59 = vld [vmem:[#allocation8 + $0x390] sm:$0xff] }
 0x44e   : > { %4803 = vmatpush1.bf16.msra.mxu1 %v4802_v5  ;;  %v2292_v5 = vld [vmem:[#allocation8 + $0x188] sm:$0xff] }
 0x44f   : > { %4806 = vmatprep.subr.msk.bf16.mxu1 %vm6181_vm2, %v4804_v6  ;;  %v2294_v6 = vld [vmem:[#allocation8 + $0x198] sm:$0xff] }
 0x450   : > { %v4840_v7 = vpack.c.bf16 %v2294_v6, %v2292_v5  ;;  %v2514_v5 = vld [vmem:[#allocation8 + $0x280] sm:$0xff]  ;;  %v2516_v6 = vld [vmem:[#allocation8 + $0x290] sm:$0xff] }
 0x452   : > { %4809 = vmatpush1.bf16.msk.msra.mxu1 %vm6181_vm2, %v4807_v10  ;;  %v2296_v10 = vld [vmem:[#allocation8 + $0x1a8] sm:$0xff] }
 0x453   : > { %4811 = vmatprep.subr.bf16.mxu1 %v4810_v11  ;;  %v2298_v11 = vld [vmem:[#allocation8 + $0x1b8] sm:$0xff] }
 0x514   : > { %v6429_v12 = vpop.f32.mrb[4].mxu1 }
 0x515   : > { %2103 = vrot.lane.b32.xlu0 %v6429_v12, %s5794_s26  ;;  %v2053_v3 = vpop.f32.mrb[5].mxu1  ;;  %v2419_v31 = vrot.slane %v6429_v12, 1  ;;  %v2766_v18 = vrot.slane %v6429_v12, 2 }
 0x516   : > { %v4842_v3 = vpack.c.bf16 %v2293_v9, %v2291_v8  ;;  %v4878_v8 = vpack.c.bf16 %v2516_v6, %v2514_v5  ;;  %v2646_v5 = vld [vmem:[#allocation8 + $0x3a0] sm:$0xff]  ;;  %v2648_v6 = vld [vmem:[#allocation8 + $0x3b0] sm:$0x3f] }
 0x518   : > { %v6433_v13 = vpop.f32.mrb[6].mxu1 }
 0x519   : > { %v6436_v4 = vrot.slane %v6433_v13, 1  ;;  %2303 = vrot.lane.b32.xlu0 %v6429_v12, %s5796_s19  ;;  %2105 = vrot.lane.b32.xlu1 %v6433_v13, %s5794_s26  ;;  %v2058_v14 = vpop.f32.mrb[7].mxu1  ;;  %v6450_v17 = vrot.slane %v6433_v13, 2 }
 0x51a   : > { %v2297_v14 = vld [vmem:[#allocation8 + $0x1b0] sm:$0xff] }
 0x51b   : > { %v6444_v15 = vsel %vm991_vm3, %v2419_v31, %v6436_v4  ;;  %v6458_v32 = vsel %vm655_vm0, %v2766_v18, %v6450_v17  ;;  %v4844_v31 = vpack.c.bf16 %v2298_v11, %v2296_v10  ;;  %v2300_v18 = vld [vmem:[#allocation8 + $0x1c8] sm:$0xff]  ;;  %v2518_v10 = vld [vmem:[#allocation8 + $0x2a0] sm:$0xff]  ;;  %v2520_v11 = vld [vmem:[#allocation8 + $0x2b0] sm:$0xff]  ;;  %vm5798_vm0 = vmmov 0  }
 0x51c   : > { %v4848_v21 = vpack.c.bf16 %v2302_v19, %v2300_v18  ;;  %v2522_v18 = vld [vmem:[#allocation8 + $0x2c0] sm:$0xff]  ;;  %v2524_v19 = vld [vmem:[#allocation8 + $0x2d0] sm:$0xff] }
 0x51d   : > { %2305 = vrot.lane.b32.xlu1 %v6433_v13, %s5796_s19  ;;  %2534 = vrot.lane.b32.xlu0 %v6444_v15, %s5794_s26 }
 0x521   : > { %2536 = vrot.lane.b32.xlu1 %v6436_v4, %s5794_s26  ;;  %2650 = vrot.lane.b32.xlu0 %v6444_v15, %s5796_s19 }
 0x525   : > { %2652 = vrot.lane.b32.xlu1 %v6436_v4, %s5796_s19  ;;  %2881 = vrot.lane.b32.xlu0 %v6458_v32, %s5794_s26 }
 0x529   : > { %2883 = vrot.lane.b32.xlu1 %v6450_v17, %s5794_s26  ;;  %2997 = vrot.lane.b32.xlu0 %v6458_v32, %s5796_s19  ;;  %s4035_s26 = scalar_lea.sflag [#allocation4], %s606_s28 }
 0x52d   : > { %2999 = vrot.lane.b32.xlu1 %v6450_v17, %s5796_s19 }
 0x587   : > { %v2104_v29 = vpop.permute.xlu0 %2103 }
 0x588   : > { %4277 = vmatmul.mubr.msk.f32.vlgmr.msra.gmra.mrb[8].mxu1 %vm2107_vm10, %v2104_v29  ;;  %v2399_v29 = vld [vmem:[#allocation8 + $0x1e0] sm:$0xff] }
 0x589   : > { %4813 = vmatpush1.bf16.msra.mxu1 %v4812_v34  ;;  %2188 = vmatprep.mubr.f32.mxu1 %v5790_v0  ;;  %v2301_v34 = vld [vmem:[#allocation8 + $0x1d0] sm:$0x3f] }
 0x58a   : > { %4815 = vmatprep.subr.bf16.mxu1 %v4814_v33  ;;  %v2400_v33 = vld [vmem:[#allocation8 + $0x1e8] sm:$0xff] }
 0x58b   : > { %v2106_v41 = vpop.permute.xlu1 %2105  ;;  %v4854_v28 = vpack.c.bf16 %v2402_v23, %v2400_v33  ;;  %v2304_v42 = vpop.permute.xlu0 %2303  ;;  %v2528_v33 = vld [vmem:[#allocation8 + $0x2f0] sm:$0xff]  ;;  %v2531_v23 = vld [vmem:[#allocation8 + $0x308] sm:$0xff] }
 0x58c   : > { %4278 = vmatmul.mubr.msk.f32.gmra.mrb[10].mxu1 %vm2107_vm10, %v2106_v41  ;;  %v2405_v41 = vld [vmem:[#allocation8 + $0x210] sm:$0xff] }
 0x58d   : > { %4817 = vmatpush1.bf16.msra.mxu1 %v4816_v36  ;;  %2269 = vmatprep.mubr.f32.mxu1 %v5790_v0  ;;  %v2406_v36 = vld [vmem:[#allocation8 + $0x218] sm:$0xff] }
 0x58e   : > { %4819 = vmatprep.subr.bf16.mxu1 %v4818_v38  ;;  %v4856_v38 = vpack.c.bf16 %v2401_v30, %v2399_v29  ;;  %v4858_v40 = vpack.c.bf16 %v2406_v36, %v2404_v35  ;;  %v2530_v30 = vld [vmem:[#allocation8 + $0x300] sm:$0xff]  ;;  %v2532_v35 = vld [vmem:[#allocation8 + $0x310] sm:$0x3f]  ;;  %v2631_v36 = vld [vmem:[#allocation8 + $0x328] sm:$0xff] }
 0x58f   : > { %v2306_v47 = vpop.permute.xlu1 %2305  ;;  %v2535_v26 = vpop.permute.xlu0 %2534 }
 0x591   : > { %4821 = vmatpush1.bf16.msra.mxu1 %v4820_v44  ;;  %v2410_v44 = vld [vmem:[#allocation8 + $0x238] sm:$0xff] }
 0x592   : > { %4823 = vmatprep.subr.bf16.mxu1 %v4822_v45  ;;  %v4860_v45 = vpack.c.bf16 %v2405_v41, %v2403_v25  ;;  %v4862_v27 = vpack.c.bf16 %v2410_v44, %v2408_v43  ;;  %v2630_v25 = vld [vmem:[#allocation8 + $0x320] sm:$0xff]  ;;  %v2632_v41 = vld [vmem:[#allocation8 + $0x330] sm:$0xff]  ;;  %v2637_v43 = vld [vmem:[#allocation8 + $0x358] sm:$0xff] }
 0x593   : > { %v4900_v44 = vpack.c.bf16 %v2632_v41, %v2630_v25  ;;  %v2537_v53 = vpop.permute.xlu1 %2536 }
 0x595   : > { %4825 = vmatpush1.bf16.msra.mxu1 %v4824_v48  ;;  %v2412_v48 = vld [vmem:[#allocation8 + $0x248] sm:$0xff] }
 0x596   : > { %4828 = vmatprep.subr.msk.bf16.mxu1 %vm6181_vm2, %v4826_v49  ;;  %v2414_v49 = vld [vmem:[#allocation8 + $0x258] sm:$0xff] }
 0x597   : > { %v4866_v51 = vpack.c.bf16 %v2414_v49, %v2412_v48  ;;  %v2641_v48 = vld [vmem:[#allocation8 + $0x378] sm:$0xff] }
 0x599   : > { %4831 = vmatpush1.bf16.msk.msra.mxu1 %vm6181_vm2, %v4829_v54  ;;  %v2416_v54 = vld [vmem:[#allocation8 + $0x268] sm:$0xff] }
 0x59a   : > { %4833 = vmatprep.subr.bf16.mxu1 %v4832_v55  ;;  %v2418_v55 = vld [vmem:[#allocation8 + $0x278] sm:$0x3f] }
 0x59b   : > { %v4870_v57 = vpack.c.bf16 %v2418_v55, %v2416_v54  ;;  %v2643_v54 = vld [vmem:[#allocation8 + $0x388] sm:$0xff]  ;;  %v2645_v55 = vld [vmem:[#allocation8 + $0x398] sm:$0xff] }
 0x59c   : > { %4281 = vmatmul.mubr.msk.f32.vlgmr.msra.gmra.mrb[8].mxu1 %vm2107_vm10, %v6429_v12  ;;  %v2295_v12 = vld [vmem:[#allocation8 + $0x1a0] sm:$0xff] }
 0x59d   : > { %4835 = vmatpush1.bf16.msra.mxu1 %v4834_v60  ;;  %2275 = vmatprep.mubr.f32.mxu1 %v5790_v0  ;;  %v4846_v20 = vpack.c.bf16 %v2297_v14, %v2295_v12  ;;  %v2515_v60 = vld [vmem:[#allocation8 + $0x288] sm:$0xff]  ;;  %v4882_v12 = vpack.c.bf16 %v2520_v11, %v2518_v10  ;;  %v2746_v10 = vld [vmem:[#allocation8 + $0x3c0] sm:$0xff]  ;;  %v2748_v11 = vld [vmem:[#allocation8 + $0x3d0] sm:$0xff] }
 0x59e   : > { %4837 = vmatprep.subr.bf16.mxu1 %v4836_v61  ;;  %v2517_v61 = vld [vmem:[#allocation8 + $0x298] sm:$0xff] }
 0x59f   : > { %v4876_v1 = vpack.c.bf16 %v2517_v61, %v2515_v60  ;;  %v2647_v60 = vld [vmem:[#allocation8 + $0x3a8] sm:$0xff]  ;;  %v2649_v61 = vld [vmem:[#allocation8 + $0x3b8] sm:$0x3f] }
 0x5a0   : > { %4282 = vmatmul.mubr.msk.f32.gmra.mrb[10].mxu1 %vm2107_vm10, %v6433_v13  ;;  %v4851_v13 = vpack.c.bf16 %v2301_v34, %v2299_v22  ;;  %v4886_v22 = vpack.c.bf16 %v2524_v19, %v2522_v18  ;;  %v2750_v18 = vld [vmem:[#allocation8 + $0x3e0] sm:$0xff]  ;;  %v2752_v19 = vld [vmem:[#allocation8 + $0x3f0] sm:$0xff] }
 0x5a1   : > { %4839 = vmatpush1.bf16.msra.mxu1 %v4838_v2  ;;  %2381 = vmatprep.mubr.f32.mxu1 %v5790_v0  ;;  %v2519_v2 = vld [vmem:[#allocation8 + $0x2a8] sm:$0xff] }
 0x5a2   : > { %4841 = vmatprep.subr.bf16.mxu1 %v4840_v7  ;;  %v2521_v7 = vld [vmem:[#allocation8 + $0x2b8] sm:$0xff] }
 0x5a3   : > { %v4880_v9 = vpack.c.bf16 %v2521_v7, %v2519_v2  ;;  %v2747_v2 = vld [vmem:[#allocation8 + $0x3c8] sm:$0xff]  ;;  %v2749_v7 = vld [vmem:[#allocation8 + $0x3d8] sm:$0xff] }
 0x5a5   : > { %4843 = vmatpush1.bf16.msra.mxu1 %v4842_v3  ;;  %v2523_v3 = vld [vmem:[#allocation8 + $0x2c8] sm:$0xff] }
 0x5a6   : > { %4845 = vmatprep.subr.bf16.mxu1 %v4844_v31  ;;  %v2525_v31 = vld [vmem:[#allocation8 + $0x2d8] sm:$0xff] }
 0x5a7   : > { %v4884_v14 = vpack.c.bf16 %v2525_v31, %v2523_v3  ;;  %v2751_v3 = vld [vmem:[#allocation8 + $0x3e8] sm:$0xff]  ;;  %v2753_v31 = vld [vmem:[#allocation8 + $0x3f8] sm:$0xff] }
 0x5a9   : > { %4847 = vmatpush1.bf16.msra.mxu1 %v4846_v20  ;;  %v2527_v20 = vld [vmem:[#allocation8 + $0x2e8] sm:$0xff] }
 0x5aa   : > { %4850 = vmatprep.subr.msk.bf16.mxu1 %vm6181_vm2, %v4848_v21  ;;  %v2529_v21 = vld [vmem:[#allocation8 + $0x2f8] sm:$0xff] }
 0x5ab   : > { %v4888_v34 = vpack.c.bf16 %v2529_v21, %v2527_v20  ;;  %v2651_v20 = vpop.permute.xlu0 %2650  ;;  %v2755_v21 = vld [vmem:[#allocation8 + $0x408] sm:$0xff] }
 0x5ad   : > { %4853 = vmatpush1.bf16.msk.msra.mxu1 %vm6181_vm2, %v4851_v13  ;;  %v2533_v13 = vld [vmem:[#allocation8 + $0x318] sm:$0x3f] }
 0x5ae   : > { %4855 = vmatprep.subr.bf16.mxu1 %v4854_v28  ;;  %v4892_v29 = vpack.c.bf16 %v2533_v13, %v2531_v23  ;;  %v2756_v23 = vld [vmem:[#allocation8 + $0x410] sm:$0xff]  ;;  %v2653_v13 = vpop.permute.xlu1 %2652 }
 0x5b0   : > { %4285 = vmatmul.mubr.msk.f32.vlgmr.msra.gmra.mrb[8].mxu1 %vm2107_vm10, %v2304_v42  ;;  %v2635_v42 = vld [vmem:[#allocation8 + $0x348] sm:$0xff] }
 0x5b1   : > { %4857 = vmatpush1.bf16.msra.mxu1 %v4856_v38  ;;  %2387 = vmatprep.mubr.f32.mxu1 %v5790_v0  ;;  %v2633_v38 = vld [vmem:[#allocation8 + $0x338] sm:$0xff] }
 0x5b2   : > { %4859 = vmatprep.subr.bf16.mxu1 %v4858_v40  ;;  %v4898_v40 = vpack.c.bf16 %v2633_v38, %v2631_v36  ;;  %v2758_v36 = vld [vmem:[#allocation8 + $0x420] sm:$0xff]  ;;  %v2760_v38 = vld [vmem:[#allocation8 + $0x430] sm:$0xff] }
 0x5b3   : > { %v4934_v25 = vpack.c.bf16 %v2760_v38, %v2758_v36  ;;  %v2990_v36 = vld [vmem:[#allocation8 + $0x568] sm:$0xff]  ;;  %v2992_v38 = vld [vmem:[#allocation8 + $0x578] sm:$0xff] }
 0x5b4   : > { %4286 = vmatmul.mubr.msk.f32.gmra.mrb[10].mxu1 %vm2107_vm10, %v2306_v47  ;;  %v2639_v47 = vld [vmem:[#allocation8 + $0x368] sm:$0xff] }
 0x5b5   : > { %4861 = vmatpush1.bf16.msra.mxu1 %v4860_v45  ;;  %2496 = vmatprep.mubr.f32.mxu1 %v5790_v0  ;;  %v4902_v45 = vpack.c.bf16 %v2637_v43, %v2635_v42  ;;  %v2762_v42 = vld [vmem:[#allocation8 + $0x440] sm:$0xff]  ;;  %v2764_v43 = vld [vmem:[#allocation8 + $0x450] sm:$0x3f] }
 0x5b6   : > { %4863 = vmatprep.subr.bf16.mxu1 %v4862_v27  ;;  %v2634_v27 = vld [vmem:[#allocation8 + $0x340] sm:$0xff] }
 0x5b7   : > { %v4904_v49 = vpack.c.bf16 %v2636_v46, %v2634_v27  ;;  %v4939_v27 = vpack.c.bf16 %v2764_v43, %v2762_v42  ;;  %v2994_v42 = vld [vmem:[#allocation8 + $0x588] sm:$0xff]  ;;  %v2996_v43 = vld [vmem:[#allocation8 + $0x598] sm:$0x3f] }
 0x5b9   : > { %4865 = vmatpush1.bf16.msra.mxu1 %v4864_v50  ;;  %v4906_v50 = vpack.c.bf16 %v2641_v48, %v2639_v47  ;;  %v2863_v47 = vld [vmem:[#allocation8 + $0x470] sm:$0xff]  ;;  %v2866_v48 = vld [vmem:[#allocation8 + $0x488] sm:$0xff] }
 0x5ba   : > { %4867 = vmatprep.subr.bf16.mxu1 %v4866_v51  ;;  %v2638_v51 = vld [vmem:[#allocation8 + $0x360] sm:$0xff] }
 0x5bd   : > { %4869 = vmatpush1.bf16.msra.mxu1 %v4868_v56  ;;  %v4908_v56 = vpack.c.bf16 %v2640_v52, %v2638_v51  ;;  %v2865_v52 = vld [vmem:[#allocation8 + $0x480] sm:$0xff] }
 0x5be   : > { %4872 = vmatprep.subr.msk.bf16.mxu1 %vm6181_vm2, %v4870_v57  ;;  %v4910_v57 = vpack.c.bf16 %v2645_v55, %v2643_v54  ;;  %v2870_v54 = vld [vmem:[#allocation8 + $0x4a8] sm:$0xff]  ;;  %v2872_v55 = vld [vmem:[#allocation8 + $0x4b8] sm:$0xff] }
 0x5c1   : > { %4875 = vmatpush1.bf16.msk.msra.mxu1 %vm6181_vm2, %v4873_v63  ;;  %v4912_v63 = vpack.c.bf16 %v2644_v59, %v2642_v58  ;;  %v2869_v58 = vld [vmem:[#allocation8 + $0x4a0] sm:$0xff]  ;;  %v2871_v59 = vld [vmem:[#allocation8 + $0x4b0] sm:$0xff] }
 0x5c2   : > { %4877 = vmatprep.subr.bf16.mxu1 %v4876_v1  ;;  %v4914_v1 = vpack.c.bf16 %v2649_v61, %v2647_v60  ;;  %v2874_v60 = vld [vmem:[#allocation8 + $0x4c8] sm:$0xff]  ;;  %v2876_v61 = vld [vmem:[#allocation8 + $0x4d8] sm:$0xff] }
 0x5c4   : > { %4289 = vmatmul.mubr.msk.f32.vlgmr.msra.gmra.mrb[8].mxu1 %vm2107_vm10, %v6444_v15  ;;  %v2526_v15 = vld [vmem:[#allocation8 + $0x2e0] sm:$0xff] }
 0x5c5   : > { %4879 = vmatpush1.bf16.msra.mxu1 %v4878_v8  ;;  %2502 = vmatprep.mubr.f32.mxu1 %v5790_v0  ;;  %v4890_v28 = vpack.c.bf16 %v2528_v33, %v2526_v15  ;;  %v4917_v8 = vpack.c.bf16 %v2648_v6, %v2646_v5  ;;  %v2754_v33 = vld [vmem:[#allocation8 + $0x400] sm:$0xff]  ;;  %v2875_v5 = vld [vmem:[#allocation8 + $0x4d0] sm:$0xff]  ;;  %v2878_v6 = vld [vmem:[#allocation8 + $0x4e8] sm:$0xff] }
 0x5c6   : > { %4881 = vmatprep.subr.bf16.mxu1 %v4880_v9  ;;  %v4920_v9 = vpack.c.bf16 %v2749_v7, %v2747_v2  ;;  %v2880_v2 = vld [vmem:[#allocation8 + $0x4f8] sm:$0x3f] }
 0x5c8   : > { %4290 = vmatmul.mubr.msk.f32.gmra.mrb[10].mxu1 %vm2107_vm10, %v6436_v4  ;;  %v4895_v4 = vpack.c.bf16 %v2532_v35, %v2530_v30  ;;  %v4930_v30 = vpack.c.bf16 %v2756_v23, %v2754_v33  ;;  %v2986_v33 = vld [vmem:[#allocation8 + $0x548] sm:$0xff]  ;;  %v2988_v23 = vld [vmem:[#allocation8 + $0x558] sm:$0xff] }
 0x5c9   : > { %4883 = vmatpush1.bf16.msra.mxu1 %v4882_v12  ;;  %2612 = vmatprep.mubr.f32.mxu1 %v5790_v0  ;;  %v4922_v12 = vpack.c.bf16 %v2748_v11, %v2746_v10  ;;  %v2879_v10 = vld [vmem:[#allocation8 + $0x4f0] sm:$0x3f]  ;;  %v2978_v11 = vld [vmem:[#allocation8 + $0x508] sm:$0xff] }
 0x5ca   : > { %4885 = vmatprep.subr.bf16.mxu1 %v4884_v14  ;;  %v4924_v14 = vpack.c.bf16 %v2753_v31, %v2751_v3  ;;  %v2980_v3 = vld [vmem:[#allocation8 + $0x518] sm:$0xff] }
 0x5cb   : > { %v4964_v31 = vpack.c.bf16 %v2980_v3, %v2978_v11 }
 0x5cd   : > { %4887 = vmatpush1.bf16.msra.mxu1 %v4886_v22  ;;  %v2757_v22 = vld [vmem:[#allocation8 + $0x418] sm:$0xff] }
 0x5ce   : > { %4889 = vmatprep.subr.bf16.mxu1 %v4888_v34  ;;  %v4926_v34 = vpack.c.bf16 %v2752_v19, %v2750_v18  ;;  %v4928_v15 = vpack.c.bf16 %v2757_v22, %v2755_v21  ;;  %v2982_v18 = vld [vmem:[#allocation8 + $0x528] sm:$0xff]  ;;  %v2984_v19 = vld [vmem:[#allocation8 + $0x538] sm:$0xff]  ;;  %v2981_v22 = vld [vmem:[#allocation8 + $0x520] sm:$0xff] }
 0x5cf   : > { %v4968_v21 = vpack.c.bf16 %v2984_v19, %v2982_v18 }
 0x5d1   : > { %4891 = vmatpush1.bf16.msra.mxu1 %v4890_v28  ;;  %v2759_v28 = vld [vmem:[#allocation8 + $0x428] sm:$0xff] }
 0x5d2   : > { %4894 = vmatprep.subr.msk.bf16.mxu1 %vm6181_vm2, %v4892_v29  ;;  %v2761_v29 = vld [vmem:[#allocation8 + $0x438] sm:$0xff] }
 0x5d3   : > { %v4932_v35 = vpack.c.bf16 %v2761_v29, %v2759_v28  ;;  %v4972_v28 = vpack.c.bf16 %v2988_v23, %v2986_v33  ;;  %v2985_v29 = vld [vmem:[#allocation8 + $0x540] sm:$0xff]  ;;  %v3236_v33 = vld [vmem:[%s6849_s8] sm:$0xff]  ;;  %v3237_v23 = vld [vmem:[%s6849_s8 + $0x8] sm:$0xff] }
 0x5d5   : > { %4897 = vmatpush1.bf16.msk.msra.mxu1 %vm6181_vm2, %v4895_v4  ;;  %v2763_v4 = vld [vmem:[#allocation8 + $0x448] sm:$0xff] }
 0x5d6   : > { %4899 = vmatprep.subr.bf16.mxu1 %v4898_v40  ;;  %v2765_v40 = vld [vmem:[#allocation8 + $0x458] sm:$0x3f] }
 0x5d7   : > { %v4936_v41 = vpack.c.bf16 %v2765_v40, %v2763_v4  ;;  %v4976_v40 = vpack.c.bf16 %v2992_v38, %v2990_v36  ;;  %v3240_v38 = vld [vmem:[%s6849_s8 + $0x20] sm:$0xff] }
 0x5d8   : > { %4293 = vmatmul.mubr.msk.f32.vlgmr.msra.gmra.mrb[8].mxu1 %vm2107_vm10, %v2535_v26  ;;  %v2861_v26 = vld [vmem:[#allocation8 + $0x460] sm:$0xff] }
 0x5d9   : > { %4901 = vmatpush1.bf16.msra.mxu1 %v4900_v44  ;;  %2618 = vmatprep.mubr.f32.mxu1 %v5790_v0  ;;  %v2862_v44 = vld [vmem:[#allocation8 + $0x468] sm:$0xff] }
 0x5da   : > { %4903 = vmatprep.subr.bf16.mxu1 %v4902_v45  ;;  %v2864_v45 = vld [vmem:[#allocation8 + $0x478] sm:$0xff] }
 0x5db   : > { %v4942_v46 = vpack.c.bf16 %v2864_v45, %v2862_v44  ;;  %v4980_v45 = vpack.c.bf16 %v2996_v43, %v2994_v42  ;;  %v3244_v43 = vld [vmem:[%s6849_s8 + $0x40] sm:$0xff] }
 0x5dc   : > { %4294 = vmatmul.mubr.msk.f32.gmra.mrb[10].mxu1 %vm2107_vm10, %v2537_v53  ;;  %v2867_v53 = vld [vmem:[#allocation8 + $0x490] sm:$0xff] }
 0x5dd   : > { %4905 = vmatpush1.bf16.msra.mxu1 %v4904_v49  ;;  %2728 = vmatprep.mubr.f32.mxu1 %v5790_v0  ;;  %v2868_v49 = vld [vmem:[#allocation8 + $0x498] sm:$0xff] }
 0x5de   : > { %4907 = vmatprep.subr.bf16.mxu1 %v4906_v50  ;;  %v4944_v50 = vpack.c.bf16 %v2863_v47, %v2861_v26  ;;  %v4946_v51 = vpack.c.bf16 %v2868_v49, %v2866_v48  ;;  %v3092_v49 = vld [vmem:[#allocation10] sm:$0x3] }
 0x5e1   : > { %4909 = vmatpush1.bf16.msra.mxu1 %v4908_v56  ;;  %v4948_v56 = vpack.c.bf16 %v2867_v53, %v2865_v52 }
 0x5e2   : > { %4911 = vmatprep.subr.bf16.mxu1 %v4910_v57  ;;  %v4950_v57 = vpack.c.bf16 %v2872_v55, %v2870_v54 }
 0x5e5   : > { %4913 = vmatpush1.bf16.msra.mxu1 %v4912_v63  ;;  %v4952_v63 = vpack.c.bf16 %v2871_v59, %v2869_v58 }
 0x5e6   : > { %4916 = vmatprep.subr.msk.bf16.mxu1 %vm6181_vm2, %v4914_v1  ;;  %v4954_v1 = vpack.c.bf16 %v2876_v61, %v2874_v60 }
 0x5e9   : > { %4919 = vmatpush1.bf16.msk.msra.mxu1 %vm6181_vm2, %v4917_v8  ;;  %v4958_v8 = vpack.c.bf16 %v2880_v2, %v2878_v6 }
 0x5ea   : > { %4921 = vmatprep.subr.bf16.mxu1 %v4920_v9  ;;  %v2877_v9 = vld [vmem:[#allocation8 + $0x4e0] sm:$0xff] }
 0x5ec   : > { %4297 = vmatmul.mubr.msk.f32.vlgmr.msra.gmra.mrb[8].mxu1 %vm2107_vm10, %v2651_v20 }
 0x5ed   : > { %4923 = vmatpush1.bf16.msra.mxu1 %v4922_v12  ;;  %2734 = vmatprep.mubr.f32.mxu1 %v5790_v0  ;;  %v2977_v12 = vld [vmem:[#allocation8 + $0x500] sm:$0xff] }
 0x5ee   : > { %4925 = vmatprep.subr.bf16.mxu1 %v4924_v14  ;;  %v2979_v14 = vld [vmem:[#allocation8 + $0x510] sm:$0xff] }
 0x5ef   : > { %v4966_v20 = vpack.c.bf16 %v2979_v14, %v2977_v12 }
 0x5f0   : > { %4298 = vmatmul.mubr.msk.f32.gmra.mrb[10].mxu1 %vm2107_vm10, %v2653_v13 }
 0x5f1   : > { %4927 = vmatpush1.bf16.msra.mxu1 %v4926_v34  ;;  %2843 = vmatprep.mubr.f32.mxu1 %v5790_v0  ;;  %v2983_v34 = vld [vmem:[#allocation8 + $0x530] sm:$0xff] }
 0x5f2   : > { %4929 = vmatprep.subr.bf16.mxu1 %v4928_v15  ;;  %v2882_v15 = vpop.permute.xlu0 %2881  ;;  %v4970_v13 = vpack.c.bf16 %v2983_v34, %v2981_v22 }
 0x5f5   : > { %4931 = vmatpush1.bf16.msra.mxu1 %v4930_v30  ;;  %v2987_v30 = vld [vmem:[#allocation8 + $0x550] sm:$0xff] }
 0x5f6   : > { %4933 = vmatprep.subr.bf16.mxu1 %v4932_v35  ;;  %v2884_v35 = vpop.permute.xlu1 %2883  ;;  %v4974_v4 = vpack.c.bf16 %v2987_v30, %v2985_v29  ;;  %v2998_v47 = vpop.permute.xlu0 %2997  ;;  %v4993_v29 = vpack.c.bf16 %v3237_v23, %v3236_v33  ;;  %v3238_v30 = vld [vmem:[%s6849_s8 + $0x10] sm:$0xff] }
 0x5f7   : > { %v3349_v33 = vld [vmem:[#allocation13 + $0x78] sm:$0xff] }
 0x5f9   : > { %4935 = vmatpush1.bf16.msra.mxu1 %v4934_v25  ;;  %v2989_v25 = vld [vmem:[#allocation8 + $0x560] sm:$0xff] }
 0x5fa   : > { %4938 = vmatprep.subr.msk.bf16.mxu1 %vm6181_vm2, %v4936_v41  ;;  %v2991_v41 = vld [vmem:[#allocation8 + $0x570] sm:$0xff]  ;;  %v3000_v48 = vpop.permute.xlu1 %2999 }
 0x5fb   : > { %v4978_v44 = vpack.c.bf16 %v2991_v41, %v2989_v25  ;;  %v3242_v25 = vld [vmem:[%s6849_s8 + $0x30] sm:$0xff]  ;;  %v3243_v41 = vld [vmem:[%s6849_s8 + $0x38] sm:$0xff] }
 0x5fc   : > { %v5002_v42 = vpack.c.bf16 %v3243_v41, %v3242_v25  ;;  %v3356_v25 = vld [vmem:[#allocation13 + $0xb0] sm:$0xff]  ;;  %v3357_v41 = vld [vmem:[#allocation13 + $0xb8] sm:$0xff] }
 0x5fd   : > { %4941 = vmatpush1.bf16.msk.msra.mxu1 %vm6181_vm2, %v4939_v27  ;;  %v2993_v27 = vld [vmem:[#allocation8 + $0x580] sm:$0xff] }
 0x5fe   : > { %4943 = vmatprep.subr.bf16.mxu1 %v4942_v46  ;;  %v2995_v46 = vld [vmem:[#allocation8 + $0x590] sm:$0x3f] }
 0x5ff   : > { %v4983_v26 = vpack.c.bf16 %v2995_v46, %v2993_v27  ;;  %v3246_v27 = vld [vmem:[%s6849_s8 + $0x50] sm:$0xff]  ;;  %v3247_v46 = vld [vmem:[%s6849_s8 + $0x58] sm:$0xff] }
 0x600   : > { %4301 = vmatmul.mubr.msk.f32.vlgmr.msra.gmra.mrb[8].mxu1 %vm2107_vm10, %v6458_v32  ;;  %v2873_v32 = vld [vmem:[#allocation8 + $0x4c0] sm:$0xff] }
 0x601   : > { %4945 = vmatpush1.bf16.msra.mxu1 %v4944_v50  ;;  %2849 = vmatprep.mubr.f32.mxu1 %v5790_v0  ;;  %v4956_v7 = vpack.c.bf16 %v2875_v5, %v2873_v32  ;;  %v3097_v50 = vrot.slane %v3092_v49, %v1753_v37 }
 0x602   : > { %4947 = vmatprep.subr.bf16.mxu1 %v4946_v51  ;;  %v3101_v51 = vrot.slane %v3092_v49, %v1757_v39 }
 0x604   : > { %4302 = vmatmul.mubr.msk.f32.gmra.mrb[10].mxu1 %vm2107_vm10, %v6450_v17  ;;  %v4961_v17 = vpack.c.bf16 %v2879_v10, %v2877_v9 }
 0x605   : > { %4949 = vmatpush1.bf16.msra.mxu1 %v4948_v56  ;;  %2959 = vmatprep.mubr.f32.mxu1 %v5790_v0 }
 0x606   : > { %4951 = vmatprep.subr.bf16.mxu1 %v4950_v57 }
 0x609   : > { %4953 = vmatpush1.bf16.msra.mxu1 %v4952_v63 }
 0x60a   : > { %4955 = vmatprep.subr.bf16.mxu1 %v4954_v1 }
 0x60d   : > { %4957 = vmatpush1.bf16.msra.mxu1 %v4956_v7 }
 0x60e   : > { %4960 = vmatprep.subr.msk.bf16.mxu1 %vm6181_vm2, %v4958_v8 }
 0x611   : > { %4963 = vmatpush1.bf16.msk.msra.mxu1 %vm6181_vm2, %v4961_v17 }
 0x612   : > { %4965 = vmatprep.subr.bf16.mxu1 %v4964_v31 }
 0x614   : > { %4305 = vmatmul.mubr.msk.f32.vlgmr.msra.gmra.mrb[8].mxu1 %vm2107_vm10, %v2882_v15 }
 0x615   : > { %4967 = vmatpush1.bf16.msra.mxu1 %v4966_v20  ;;  %2965 = vmatprep.mubr.f32.mxu1 %v5790_v0 }
 0x616   : > { %4969 = vmatprep.subr.bf16.mxu1 %v4968_v21 }
 0x618   : > { %4306 = vmatmul.mubr.msk.f32.gmra.mrb[10].mxu1 %vm2107_vm10, %v2884_v35  ;;  %v3239_v35 = vld [vmem:[%s6849_s8 + $0x18] sm:$0xff] }
 0x619   : > { %4971 = vmatpush1.bf16.msra.mxu1 %v4970_v13  ;;  %3075 = vmatprep.mubr.f32.mxu1 %v5790_v0  ;;  %v4996_v36 = vpack.c.bf16 %v3239_v35, %v3238_v30  ;;  %v3352_v30 = vld [vmem:[#allocation13 + $0x90] sm:$0xff]  ;;  %v3353_v35 = vld [vmem:[#allocation13 + $0x98] sm:$0xff] }
 0x61a   : > { %4973 = vmatprep.subr.bf16.mxu1 %v4972_v28  ;;  %v3153_v28 = vld [vmem:[#allocation11] sm:$0x3f] }
 0x61d   : > { %4975 = vmatpush1.bf16.msra.mxu1 %v4974_v4  ;;  %v3241_v4 = vld [vmem:[%s6849_s8 + $0x28] sm:$0xff] }
 0x61e   : > { %4977 = vmatprep.subr.bf16.mxu1 %v4976_v40  ;;  %v4999_v40 = vpack.c.bf16 %v3241_v4, %v3240_v38  ;;  %v3354_v38 = vld [vmem:[#allocation13 + $0xa0] sm:$0xff]  ;;  %v3355_v4 = vld [vmem:[#allocation13 + $0xa8] sm:$0xff] }
 0x621   : > { %4979 = vmatpush1.bf16.msra.mxu1 %v4978_v44  ;;  %v3245_v44 = vld [vmem:[%s6849_s8 + $0x48] sm:$0xff] }
 0x622   : > { %4982 = vmatprep.subr.msk.bf16.mxu1 %vm6181_vm2, %v4980_v45  ;;  %v5005_v45 = vpack.c.bf16 %v3245_v44, %v3244_v43  ;;  %v3334_v43 = vld [vmem:[#allocation13] sm:$0xff]  ;;  %v3335_v44 = vld [vmem:[#allocation13 + $0x8] sm:$0xff] }
 0x625   : > { %4985 = vmatpush1.bf16.msk.msra.mxu1 %vm6181_vm2, %v4983_v26  ;;  %v5008_v26 = vpack.c.bf16 %v3247_v46, %v3246_v27  ;;  %v3678_v27 = vld [vmem:[#allocation13 + $0x188] sm:$0xff]  ;;  %vm3868_vm2 = vcmask 982016  }
 0x626   : > { %5064 = vmatprep.subr.bf16.mxu1 %v5795_v62 }
 0x628   : > { %4309 = vmatmul.mubr.msk.f32.vlgmr.msra.gmra.mrb[8].mxu1 %vm2107_vm10, %v2998_v47  ;;  %v3248_v47 = vld [vmem:[%s6849_s8 + $0x60] sm:$0xff] }
 0x629   : > { %3081 = vmatprep.mubr.f32.mxu1 %v5790_v0 }
 0x62c   : > { %4310 = vmatmul.mubr.msk.f32.gmra.mrb[10].mxu1 %vm2107_vm10, %v3000_v48  ;;  %v3249_v48 = vld [vmem:[%s6849_s8 + $0x68] sm:$0xff] }
 0x62d   : > { %v5011_v49 = vpack.c.bf16 %v3249_v48, %v3248_v47  ;;  %4512 = vmatprep.mubr.msk.f32.mxu1 %vm5798_vm0, %v5790_v0  ;;  %v3336_v48 = vld [vmem:[#allocation13 + $0x10] sm:$0xff] }
 0x6fb   : > { %v3077_v52 = vpop.f32.mrb[8].mxu1 }
 0x6fc   : > { %v3104_v16 = vadd.f32 %v3097_v50, %v3077_v52  ;;  %v3079_v53 = vpop.f32.mrb[9].mxu1 }
 0x6fd   : > { %v3105_v54 = vadd.f32 %v3101_v51, %v3079_v53  ;;  %v3253_v53 = vld [vmem:[%s6849_s8 + $0x88] sm:$0xff] }
 0x6fe   : > { %v3108_v56 = vmax.f32 %v3104_v16, 0.0  ;;  %v3252_v16 = vld [vmem:[%s6849_s8 + $0x80] sm:$0xff] }
 0x6ff   : > { %v3083_v55 = vpop.f32.mrb[10].mxu1  ;;  %v3109_v59 = vmax.f32 %v3105_v54, 0.0  ;;  %v5017_v54 = vpack.c.bf16 %v3253_v53, %v3252_v16  ;;  %v3680_v16 = vld [vmem:[#allocation13 + $0x198] sm:$0xff] }
 0x700   : > { %v3106_v57 = vadd.f32 %v3097_v50, %v3083_v55  ;;  %v3085_v58 = vpop.f32.mrb[11].mxu1  ;;  %v3116_v1 = vrot.slane %v3108_v56, 1  ;;  %v3250_v50 = vld [vmem:[%s6849_s8 + $0x70] sm:$0xff] }
 0x701   : > { %v3107_v60 = vadd.f32 %v3101_v51, %v3085_v58  ;;  %v3119_v5 = vrot.slane %v3109_v59, 1  ;;  %v3251_v51 = vld [vmem:[%s6849_s8 + $0x78] sm:$0xff]  ;;  %v3254_v55 = vld [vmem:[%s6849_s8 + $0x90] sm:$0xff]  ;;  %v3256_v58 = vld [vmem:[%s6849_s8 + $0xa0] sm:$0xff] }
 0x702   : > { %v3110_v61 = vmax.f32 %v3106_v57, 0.0  ;;  %v5014_v52 = vpack.c.bf16 %v3251_v51, %v3250_v50  ;;  %v3337_v51 = vld [vmem:[#allocation13 + $0x18] sm:$0xff] }
 0x703   : > { %v3111_v63 = vmax.f32 %v3107_v60, 0.0 }
 0x704   : > { %v3117_v32 = vrot.slane %v3110_v61, 1 }
 0x705   : > { %v3120_v6 = vrot.slane %v3111_v63, 1 }
 0x706   : > { %v3128_v37 = vmax.f32 %v3110_v61, %v3117_v32  ;;  %v3118_v24 = vsel %vm991_vm3, %v3116_v1, %v3117_v32  ;;  %v3258_v61 = vld [vmem:[%s6849_s8 + $0xb0] sm:$0xff]  ;;  %v3505_v32 = vld [vmem:[#allocation13 + $0xc0] sm:$0xff] }
 0x707   : > { %v3129_v39 = vmax.f32 %v3111_v63, %v3120_v6  ;;  %v3121_v2 = vsel %vm991_vm3, %v3119_v5, %v3120_v6  ;;  %v3126_v7 = vmax.f32 %v3108_v56, %v3118_v24  ;;  %v3255_v56 = vld [vmem:[%s6849_s8 + $0x98] sm:$0xff]  ;;  %v3506_v5 = vld [vmem:[#allocation13 + $0xc8] sm:$0xff]  ;;  %vm3955_vm3 = vcmask 687104  }
 0x708   : > { %v3127_v8 = vmax.f32 %v3109_v59, %v3121_v2  ;;  %v5020_v57 = vpack.c.bf16 %v3255_v56, %v3254_v55  ;;  %v3257_v59 = vld [vmem:[%s6849_s8 + $0xa8] sm:$0xff]  ;;  %v3259_v63 = vld [vmem:[%s6849_s8 + $0xb8] sm:$0xff]  ;;  %v5065_v6 = vpack.c.bf16 %v3506_v5, %v3505_v32 }
 0x709   : > { %v5436_v9 = vpack.i.bf16 %v3129_v39, %v3128_v37  ;;  %v5023_v60 = vpack.c.bf16 %v3257_v59, %v3256_v58  ;;  %v5026_v1 = vpack.c.bf16 %v3259_v63, %v3258_v61  ;;  %v3508_v24 = vld [vmem:[#allocation13 + $0xd8] sm:$0xff]  ;;  %v3509_v2 = vld [vmem:[#allocation13 + $0xe0] sm:$0xff]  ;;  %v3682_v59 = vld [vmem:[#allocation13 + $0x1a8] sm:$0xff] }
 0x70a   : > { %v5431_v10 = vpack.i.bf16 %v3127_v8, %v3126_v7  ;;  %5066 = vmatpush3.bf16.msra.mxu1 %v5065_v6  ;;  %v3338_v56 = vld [vmem:[#allocation13 + $0x20] sm:$0xff]  ;;  %v3340_v63 = vld [vmem:[#allocation13 + $0x30] sm:$0xff]  ;;  %v3684_v5 = vld [vmem:[#allocation13 + $0x1b8] sm:$0xff] }
 0x70b   : > { %5437 = vrot.lane.b32.xlu1 %v5436_v9, %s5797_s29  ;;  %5067 = vmatprep.subr.bf16.mxu1 %v5795_v62  ;;  %v3511_v9 = vld [vmem:[#allocation13 + $0xf0] sm:$0xff]  ;;  %v3681_v58 = vld [vmem:[#allocation13 + $0x1a0] sm:$0xff] }
 0x70c   : > { %5432 = vrot.lane.b32.xlu0 %v5431_v10, %s5797_s29  ;;  %v3512_v10 = vld [vmem:[#allocation13 + $0xf8] sm:$0xff]  ;;  %v5107_v61 = vpack.c.bf16 %v3682_v59, %v3681_v58  ;;  %v3683_v32 = vld [vmem:[#allocation13 + $0x1b0] sm:$0xff]  ;;  %v3852_v58 = vld [vmem:[%s6852_s11] sm:$0xff] }
 0x70d   : > { %v3853_v59 = vld [vmem:[%s6852_s11 + $0x8] sm:$0xff] }
 0x77d   : > { %v5438_v11 = vpop.permute.xlu1 %5437 }
 0x77e   : > { %v5440_v3 = vunpack.i.h.bf16 %v5438_v11  ;;  %v5439_v17 = vunpack.i.l.bf16 %v5438_v11  ;;  %v5433_v31 = vpop.permute.xlu0 %5432  ;;  %v5074_v11 = vpack.c.bf16 %v3512_v10, %v3511_v9  ;;  %v3344_v10 = vld [vmem:[#allocation13 + $0x50] sm:$0xff] }
 0x77f   : > { %v5435_v12 = vunpack.i.h.bf16 %v5433_v31  ;;  %v5434_v14 = vunpack.i.l.bf16 %v5433_v31 }
 0x780   : > { %v3152_v18 = vmax.f32 %v3129_v39, %v5440_v3  ;;  %v3144_v19 = vsel %vm3142_vm11, %v5439_v17, %v5440_v3  ;;  %v3513_v3 = vld [vmem:[#allocation13 + $0x100] sm:$0xff]  ;;  %v3514_v17 = vld [vmem:[#allocation13 + $0x108] sm:$0xff] }
 0x781   : > { %v3151_v20 = vmax.f32 %v3128_v37, %v3144_v19  ;;  %v3150_v21 = vmax.f32 %v3127_v8, %v5435_v12  ;;  %v3143_v22 = vsel %vm3142_vm11, %v5434_v14, %v5435_v12  ;;  %v3507_v37 = vld [vmem:[#allocation13 + $0xd0] sm:$0xff]  ;;  %v5077_v31 = vpack.c.bf16 %v3514_v17, %v3513_v3  ;;  %v3516_v14 = vld [vmem:[#allocation13 + $0x118] sm:$0xff]  ;;  %v3346_v19 = vld [vmem:[#allocation13 + $0x60] sm:$0xff] }
 0x782   : > { %v3149_v34 = vmax.f32 %v3126_v7, %v3143_v22  ;;  %v5068_v39 = vpack.c.bf16 %v3508_v24, %v3507_v37  ;;  %v3510_v7 = vld [vmem:[#allocation13 + $0xe8] sm:$0xff]  ;;  %v3515_v12 = vld [vmem:[#allocation13 + $0x110] sm:$0xff]  ;;  %v5110_v37 = vpack.c.bf16 %v3684_v5, %v3683_v32  ;;  %v3342_v24 = vld [vmem:[#allocation13 + $0x40] sm:$0xff] }
 0x783   : > { %v4986_v15 = vpack.c.bf16 %v3152_v18, %v3150_v21  ;;  %v5071_v8 = vpack.c.bf16 %v3510_v7, %v3509_v2  ;;  %v5080_v18 = vpack.c.bf16 %v3516_v14, %v3515_v12  ;;  %v3685_v2 = vld [vmem:[#allocation13 + $0x1c0] sm:$0xff]  ;;  %v3686_v7 = vld [vmem:[#allocation13 + $0x1c8] sm:$0xff]  ;;  %v3687_v3 = vld [vmem:[#allocation13 + $0x1d0] sm:$0xff] }
 0x784   : > { %v4989_v13 = vpack.c.bf16 %v3151_v20, %v3149_v34  ;;  %5069 = vmatpush3.bf16.msra.mxu1 %v5068_v39  ;;  %v3347_v20 = vld [vmem:[#allocation13 + $0x68] sm:$0xff]  ;;  %v5113_v9 = vpack.c.bf16 %v3686_v7, %v3685_v2  ;;  %v3688_v17 = vld [vmem:[#allocation13 + $0x1d8] sm:$0xff]  ;;  %v3591_v14 = vld [vmem:[#allocation13 + $0x120] sm:$0xff] }
 0x785   : > { %4988 = vmatprep.subr.msk.bf16.mxu0 %vm4987_vm13, %v4986_v15  ;;  %5070 = vmatprep.subr.bf16.mxu1 %v5795_v62  ;;  %v5029_v22 = vpack.c.bf16 %v3347_v20, %v3346_v19  ;;  %v3348_v15 = vld [vmem:[#allocation13 + $0x70] sm:$0xff]  ;;  %v3343_v39 = vld [vmem:[#allocation13 + $0x48] sm:$0xff]  ;;  %v5116_v12 = vpack.c.bf16 %v3688_v17, %v3687_v3 }
 0x786   : > { %4991 = vmatpush1.bf16.msk.msra.mxu0 %vm4987_vm13, %v4989_v13  ;;  %v5032_v23 = vpack.c.bf16 %v3349_v33, %v3348_v15  ;;  %v3350_v13 = vld [vmem:[#allocation13 + $0x80] sm:$0xff]  ;;  %v3596_v33 = vld [vmem:[#allocation13 + $0x148] sm:$0xff] }
 0x787   : > { %4992 = vmatprep.subr.bf16.mxu0 %v5795_v62  ;;  %v3595_v15 = vld [vmem:[#allocation13 + $0x140] sm:$0xff]  ;;  %v3857_v32 = vld [vmem:[%s6852_s11 + $0x28] sm:$0xff] }
 0x788   : > { %5072 = vmatpush3.bf16.msra.mxu1 %v5071_v8  ;;  %v5059_v8 = vpack.c.bf16 %v3343_v39, %v3342_v24  ;;  %v3860_v39 = vld [vmem:[%s6852_s11 + $0x40] sm:$0xff]  ;;  %v3861_v2 = vld [vmem:[%s6852_s11 + $0x48] sm:$0xff] }
 0x789   : > { %4313 = vmatmul.mubr.msk.f32.vlgmr.msra.gmra.mrb[8].mxu0 %vm3154_vm14, %v3153_v28  ;;  %5073 = vmatprep.subr.bf16.mxu1 %v5795_v62  ;;  %v3351_v28 = vld [vmem:[#allocation13 + $0x88] sm:$0xff]  ;;  %v5149_v7 = vpack.c.bf16 %v3861_v2, %v3860_v39 }
 0x78a   : > { %4994 = vmatpush1.bf16.msra.mxu0 %v4993_v29  ;;  %v5035_v29 = vpack.c.bf16 %v3351_v28, %v3350_v13  ;;  %v3597_v13 = vld [vmem:[#allocation13 + $0x150] sm:$0xff]  ;;  %v3598_v28 = vld [vmem:[#allocation13 + $0x158] sm:$0xff] }
 0x78b   : > { %4995 = vmatprep.subr.bf16.mxu0 %v5795_v62  ;;  %v3865_v3 = vld [vmem:[%s6852_s11 + $0x68] sm:$0xff] }
 0x78c   : > { %5075 = vmatpush3.bf16.msra.mxu1 %v5074_v11  ;;  %v3345_v11 = vld [vmem:[#allocation13 + $0x58] sm:$0xff] }
 0x78d   : > { %5076 = vmatprep.subr.bf16.mxu1 %v5795_v62 }
 0x78e   : > { %4997 = vmatpush1.bf16.msra.mxu0 %v4996_v36  ;;  %v5038_v36 = vpack.c.bf16 %v3353_v35, %v3352_v30  ;;  %v3599_v30 = vld [vmem:[#allocation13 + $0x160] sm:$0xff]  ;;  %v3600_v35 = vld [vmem:[#allocation13 + $0x168] sm:$0xff] }
 0x78f   : > { %4998 = vmatprep.subr.bf16.mxu0 %v5795_v62 }
 0x790   : > { %5078 = vmatpush3.bf16.msra.mxu1 %v5077_v31  ;;  %v5062_v31 = vpack.c.bf16 %v3345_v11, %v3344_v10  ;;  %v3864_v11 = vld [vmem:[%s6852_s11 + $0x60] sm:$0xff] }
 0x791   : > { %5079 = vmatprep.subr.bf16.mxu1 %v5795_v62  ;;  %v5155_v17 = vpack.c.bf16 %v3865_v3, %v3864_v11 }
 0x792   : > { %5000 = vmatpush1.bf16.msra.mxu0 %v4999_v40  ;;  %v5041_v40 = vpack.c.bf16 %v3355_v4, %v3354_v38  ;;  %v3601_v38 = vld [vmem:[#allocation13 + $0x170] sm:$0xff]  ;;  %v3602_v4 = vld [vmem:[#allocation13 + $0x178] sm:$0xff] }
 0x793   : > { %5001 = vmatprep.subr.bf16.mxu0 %v5795_v62 }
 0x794   : > { %5081 = vmatpush3.bf16.msra.mxu1 %v5080_v18  ;;  %v3592_v18 = vld [vmem:[#allocation13 + $0x128] sm:$0xff] }
 0x795   : > { %5100 = vmatprep.subr.bf16.mxu1 %v5795_v62  ;;  %v5083_v19 = vpack.c.bf16 %v3592_v18, %v3591_v14  ;;  %v3944_v14 = vld [vmem:[%s6854_s13 + $0x8] sm:$0xff]  ;;  %v3945_v18 = vld [vmem:[%s6854_s13 + $0x10] sm:$0xff] }
 0x796   : > { %5003 = vmatpush1.bf16.msra.mxu0 %v5002_v42  ;;  %v5044_v42 = vpack.c.bf16 %v3357_v41, %v3356_v25  ;;  %v3763_v25 = vld [vmem:[#allocation13 + $0x1e0] sm:$0xff]  ;;  %v3764_v41 = vld [vmem:[#allocation13 + $0x1e8] sm:$0xff] }
 0x797   : > { %5004 = vmatprep.subr.bf16.mxu0 %v5795_v62 }
 0x79a   : > { %5006 = vmatpush1.bf16.msra.mxu0 %v5005_v45  ;;  %v3677_v45 = vld [vmem:[#allocation13 + $0x180] sm:$0xff] }
 0x79b   : > { %5007 = vmatprep.subr.bf16.mxu0 %v5795_v62  ;;  %v5101_v47 = vpack.c.bf16 %v3678_v27, %v3677_v45  ;;  %v3766_v45 = vld [vmem:[#allocation13 + $0x1f8] sm:$0xff] }
 0x79e   : > { %5009 = vmatpush1.bf16.msra.mxu0 %v5008_v26  ;;  %v5047_v26 = vpack.c.bf16 %v3335_v44, %v3334_v43  ;;  %v3765_v44 = vld [vmem:[#allocation13 + $0x1f0] sm:$0xff] }
 0x79f   : > { %5010 = vmatprep.subr.bf16.mxu0 %v5795_v62  ;;  %v5122_v27 = vpack.c.bf16 %v3766_v45, %v3765_v44 }
 0x7a2   : > { %5012 = vmatpush1.bf16.msra.mxu0 %v5011_v49 }
 0x7a3   : > { %5013 = vmatprep.subr.bf16.mxu0 %v5795_v62 }
 0x7a6   : > { %5015 = vmatpush1.bf16.msra.mxu0 %v5014_v52  ;;  %v3679_v52 = vld [vmem:[#allocation13 + $0x190] sm:$0xff] }
 0x7a7   : > { %5016 = vmatprep.subr.bf16.mxu0 %v5795_v62  ;;  %v5104_v55 = vpack.c.bf16 %v3680_v16, %v3679_v52  ;;  %v3771_v52 = vld [vmem:[#allocation13 + $0x220] sm:$0xff]  ;;  %v3772_v16 = vld [vmem:[#allocation13 + $0x228] sm:$0xff] }
 0x7aa   : > { %5018 = vmatpush1.bf16.msra.mxu0 %v5017_v54  ;;  %v5050_v54 = vpack.c.bf16 %v3337_v51, %v3336_v48 }
 0x7ab   : > { %5019 = vmatprep.subr.bf16.mxu0 %v5795_v62 }
 0x7ae   : > { %5021 = vmatpush1.bf16.msra.mxu0 %v5020_v57  ;;  %v3339_v57 = vld [vmem:[#allocation13 + $0x28] sm:$0xff] }
 0x7af   : > { %5022 = vmatprep.subr.bf16.mxu0 %v5795_v62 }
 0x7b2   : > { %5024 = vmatpush1.bf16.msra.mxu0 %v5023_v60  ;;  %v5053_v60 = vpack.c.bf16 %v3339_v57, %v3338_v56 }
 0x7b3   : > { %5025 = vmatprep.subr.bf16.mxu0 %v5795_v62 }
 0x7b6   : > { %5027 = vmatpush1.bf16.msra.mxu0 %v5026_v1  ;;  %v3341_v1 = vld [vmem:[#allocation13 + $0x38] sm:$0xff] }
 0x7b7   : > { %5028 = vmatprep.subr.bf16.mxu0 %v5795_v62  ;;  %v5056_v6 = vpack.c.bf16 %v3341_v1, %v3340_v63  ;;  %v3856_v1 = vld [vmem:[%s6852_s11 + $0x20] sm:$0xff] }
 0x7b8   : > { %v5143_v5 = vpack.c.bf16 %v3857_v32, %v3856_v1 }
 0x85c   : > { %v3231_v21 = vpop.f32.mrb[8].mxu0 }
 0x85d   : > { %v3233_v34 = vpop.f32.mrb[9].mxu0 }
 0x85e   : > { %4314 = vmatprep.mubr.msk.f32.mxu0 %vm3260_vm15, %v3233_v34 }
 0x85f   : > { %3329 = vmatmul.mubr.f32.vlgmr.msra.gmra.mrb[10].mxu0 %v3231_v21  ;;  %v3593_v21 = vld [vmem:[#allocation13 + $0x130] sm:$0xff] }
 0x860   : > { %5030 = vmatpush3.bf16.msra.mxu0 %v5029_v22  ;;  %4458 = vmatprep.mubr.msk.f32.mxu0 %vm5798_vm0, %v5790_v0  ;;  %v3594_v22 = vld [vmem:[#allocation13 + $0x138] sm:$0xff] }
 0x861   : > { %5031 = vmatprep.subr.bf16.mxu0 %v5795_v62  ;;  %v5086_v34 = vpack.c.bf16 %v3594_v22, %v3593_v21  ;;  %v3947_v22 = vld [vmem:[%s6854_s13 + $0x20] sm:$0xff] }
 0x864   : > { %5033 = vmatpush3.bf16.msra.mxu0 %v5032_v23  ;;  %v5089_v23 = vpack.c.bf16 %v3596_v33, %v3595_v15  ;;  %v3949_v33 = vld [vmem:[%s6854_s13 + $0x30] sm:$0xff] }
 0x865   : > { %5034 = vmatprep.subr.bf16.mxu0 %v5795_v62 }
 0x868   : > { %5036 = vmatpush3.bf16.msra.mxu0 %v5035_v29  ;;  %v5092_v29 = vpack.c.bf16 %v3598_v28, %v3597_v13 }
 0x869   : > { %5037 = vmatprep.subr.bf16.mxu0 %v5795_v62 }
 0x86c   : > { %5039 = vmatpush3.bf16.msra.mxu0 %v5038_v36  ;;  %v5095_v36 = vpack.c.bf16 %v3600_v35, %v3599_v30 }
 0x86d   : > { %5040 = vmatprep.subr.bf16.mxu0 %v5795_v62 }
 0x870   : > { %5042 = vmatpush3.bf16.msra.mxu0 %v5041_v40  ;;  %v5098_v40 = vpack.c.bf16 %v3602_v4, %v3601_v38 }
 0x871   : > { %5043 = vmatprep.subr.bf16.mxu0 %v5795_v62 }
 0x874   : > { %5045 = vmatpush3.bf16.msra.mxu0 %v5044_v42  ;;  %v5119_v42 = vpack.c.bf16 %v3764_v41, %v3763_v25 }
 0x875   : > { %5046 = vmatprep.subr.bf16.mxu0 %v5795_v62 }
 0x932   : > { %v6650_v46 = vpop.f32.mrb[10].mxu0 }
 0x933   : > { %v3359_v49 = vrot.slane %v6650_v46, 1  ;;  %v3517_v50 = vrot.slane %v6650_v46, 2  ;;  %v3332_v53 = vpop.f32.mrb[11].mxu0  ;;  %v3689_v20 = vrot.slane %v6650_v46, 4  ;;  %v3603_v43 = vrot.slane %v6650_v46, 3 }
 0x934   : > { %v5131_v53 = vpack.c.bf16 %v3772_v16, %v3771_v52  ;;  %v3775_v57 = vrot.slane %v6650_v46, 5  ;;  %v3953_v16 = vld [vmem:[%s6854_s13 + $0x50] sm:$0xf] }
 0x935   : > { %4459 = vmatmul.mubr.msk.f32.vlgmr.msra.gmra.mrb[12].mxu0 %vm3360_vm1, %v3359_v49  ;;  %4513 = vmatmul.mubr.msk.f32.vlgmr.msra.gmra.mrb[12].mxu1 %vm3360_vm1, %v3517_v50  ;;  %v3769_v49 = vld [vmem:[#allocation13 + $0x210] sm:$0xff]  ;;  %v3770_v50 = vld [vmem:[#allocation13 + $0x218] sm:$0xff] }
 0x936   : > { %5048 = vmatpush3.bf16.msra.mxu0 %v5047_v26  ;;  %5102 = vmatpush3.bf16.msra.mxu1 %v5101_v47  ;;  %v3767_v26 = vld [vmem:[#allocation13 + $0x200] sm:$0xff]  ;;  %v3768_v47 = vld [vmem:[#allocation13 + $0x208] sm:$0xff]  ;;  %v5128_v51 = vpack.c.bf16 %v3770_v50, %v3769_v49 }
 0x937   : > { %5049 = vmatprep.subr.bf16.mxu0 %v5795_v62  ;;  %5103 = vmatprep.subr.bf16.mxu1 %v5795_v62  ;;  %v5125_v48 = vpack.c.bf16 %v3768_v47, %v3767_v26  ;;  %v3849_v26 = vld [vmem:[%s6851_s10] sm:$0x1] }
 0x938   : > { %4485 = vmatprep.mubr.msk.f32.mxu0 %vm5798_vm0, %v5790_v0  ;;  %4566 = vmatprep.mubr.msk.f32.mxu1 %vm5798_vm0, %v5790_v0  ;;  %v3951_v50 = vld [vmem:[%s6854_s13 + $0x40] sm:$0xff] }
 0x93a   : > { %5051 = vmatpush3.bf16.msra.mxu0 %v5050_v54  ;;  %5105 = vmatpush3.bf16.msra.mxu1 %v5104_v55  ;;  %v3773_v54 = vld [vmem:[#allocation13 + $0x230] sm:$0xff]  ;;  %v3774_v55 = vld [vmem:[#allocation13 + $0x238] sm:$0xff] }
 0x93b   : > { %5052 = vmatprep.subr.bf16.mxu0 %v5795_v62  ;;  %5106 = vmatprep.subr.bf16.mxu1 %v5795_v62  ;;  %v5134_v56 = vpack.c.bf16 %v3774_v55, %v3773_v54 }
 0x93e   : > { %5054 = vmatpush3.bf16.msra.mxu0 %v5053_v60  ;;  %5108 = vmatpush3.bf16.msra.mxu1 %v5107_v61  ;;  %v5137_v60 = vpack.c.bf16 %v3853_v59, %v3852_v58  ;;  %v3855_v61 = vld [vmem:[%s6852_s11 + $0x18] sm:$0xff] }
 0x93f   : > { %5055 = vmatprep.subr.bf16.mxu0 %v5795_v62  ;;  %5109 = vmatprep.subr.bf16.mxu1 %v5795_v62  ;;  %v3954_v58 = vld [vmem:[#allocation16] sm:$0x1] }
 0x942   : > { %5057 = vmatpush3.bf16.msra.mxu0 %v5056_v6  ;;  %5111 = vmatpush3.bf16.msra.mxu1 %v5110_v37  ;;  %v3858_v6 = vld [vmem:[%s6852_s11 + $0x30] sm:$0xff]  ;;  %v3859_v37 = vld [vmem:[%s6852_s11 + $0x38] sm:$0xff] }
 0x943   : > { %5058 = vmatprep.subr.bf16.mxu0 %v5795_v62  ;;  %5112 = vmatprep.subr.bf16.mxu1 %v5795_v62  ;;  %v5146_v24 = vpack.c.bf16 %v3859_v37, %v3858_v6 }
 0x946   : > { %5060 = vmatpush3.bf16.msra.mxu0 %v5059_v8  ;;  %5114 = vmatpush3.bf16.msra.mxu1 %v5113_v9  ;;  %v3862_v8 = vld [vmem:[%s6852_s11 + $0x50] sm:$0xff]  ;;  %v3863_v9 = vld [vmem:[%s6852_s11 + $0x58] sm:$0xff] }
 0x947   : > { %5061 = vmatprep.subr.bf16.mxu0 %v5795_v62  ;;  %5115 = vmatprep.subr.bf16.mxu1 %v5795_v62  ;;  %v5152_v10 = vpack.c.bf16 %v3863_v9, %v3862_v8 }
 0x94a   : > { %5063 = vmatpush3.bf16.msra.mxu0 %v5062_v31  ;;  %5117 = vmatpush3.bf16.msra.mxu1 %v5116_v12  ;;  %v3866_v31 = vld [vmem:[%s6852_s11 + $0x70] sm:$0xff]  ;;  %v3943_v12 = vld [vmem:[%s6854_s13] sm:$0xff] }
 0x94b   : > { %5082 = vmatprep.subr.bf16.mxu0 %v5795_v62  ;;  %5136 = vmatprep.subr.bf16.mxu1 %v5795_v62 }
 0x94d   : > { %4486 = vmatmul.mubr.msk.f32.vlgmr.msra.gmra.mrb[14].mxu0 %vm3360_vm1, %v6650_v46  ;;  %4567 = vmatmul.mubr.msk.f32.vlgmr.msra.gmra.mrb[14].mxu1 %vm3360_vm1, %v3689_v20  ;;  %v3854_v46 = vld [vmem:[%s6852_s11 + $0x10] sm:$0xff]  ;;  %v3946_v20 = vld [vmem:[%s6854_s13 + $0x18] sm:$0xff] }
 0x94e   : > { %5084 = vmatpush3.bf16.msra.mxu0 %v5083_v19  ;;  %4539 = vmatprep.mubr.msk.f32.mxu0 %vm5798_vm0, %v5790_v0  ;;  %v5140_v63 = vpack.c.bf16 %v3855_v61, %v3854_v46  ;;  %v5158_v19 = vpack.c.bf16 %v3944_v14, %v3943_v12  ;;  %v5161_v21 = vpack.c.bf16 %v3946_v20, %v3945_v18 }
 0x94f   : > { %5085 = vmatprep.subr.bf16.mxu0 %v5795_v62  ;;  %4626 = vmatprep.mubr.msk.f32.mxu1 %vm5798_vm0, %v5790_v0 }
 0x950   : > { %5138 = vmatpush3.bf16.msra.mxu1 %v5137_v60 }
 0x951   : > { %5139 = vmatprep.subr.bf16.mxu1 %v5795_v62 }
 0x952   : > { %5087 = vmatpush3.bf16.msra.mxu0 %v5086_v34  ;;  %v3948_v34 = vld [vmem:[%s6854_s13 + $0x28] sm:$0xff] }
 0x953   : > { %5088 = vmatprep.subr.bf16.mxu0 %v5795_v62  ;;  %v5164_v15 = vpack.c.bf16 %v3948_v34, %v3947_v22 }
 0x954   : > { %5141 = vmatpush3.bf16.msra.mxu1 %v5140_v63 }
 0x955   : > { %5142 = vmatprep.subr.bf16.mxu1 %v5795_v62 }
 0x956   : > { %5090 = vmatpush3.bf16.msra.mxu0 %v5089_v23  ;;  %v3950_v23 = vld [vmem:[%s6854_s13 + $0x38] sm:$0xff] }
 0x957   : > { %5091 = vmatprep.subr.bf16.mxu0 %v5795_v62  ;;  %v5167_v13 = vpack.c.bf16 %v3950_v23, %v3949_v33 }
 0x958   : > { %5144 = vmatpush3.bf16.msra.mxu1 %v5143_v5 }
 0x959   : > { %5145 = vmatprep.subr.bf16.mxu1 %v5795_v62 }
 0x95a   : > { %5093 = vmatpush3.bf16.msra.mxu0 %v5092_v29 }
 0x95b   : > { %5094 = vmatprep.subr.bf16.mxu0 %v5795_v62 }
 0x95c   : > { %5147 = vmatpush3.bf16.msra.mxu1 %v5146_v24 }
 0x95d   : > { %5148 = vmatprep.subr.bf16.mxu1 %v5795_v62 }
 0x95e   : > { %5096 = vmatpush3.bf16.msra.mxu0 %v5095_v36 }
 0x95f   : > { %5097 = vmatprep.subr.bf16.mxu0 %v5795_v62 }
 0x960   : > { %5150 = vmatpush3.bf16.msra.mxu1 %v5149_v7 }
 0x961   : > { %5151 = vmatprep.subr.bf16.mxu1 %v5795_v62 }
 0x962   : > { %5099 = vmatpush3.bf16.msra.mxu0 %v5098_v40 }
 0x963   : > { %5118 = vmatprep.subr.bf16.mxu0 %v5795_v62 }
 0x964   : > { %5153 = vmatpush3.bf16.msra.mxu1 %v5152_v10 }
 0x965   : > { %4540 = vmatmul.mubr.msk.f32.vlgmr.msra.gmra.mrb[16].mxu0 %vm3360_vm1, %v3603_v43  ;;  %5154 = vmatprep.subr.bf16.mxu1 %v5795_v62 }
 0x966   : > { %5120 = vmatpush3.bf16.msra.mxu0 %v5119_v42  ;;  %4593 = vmatprep.mubr.msk.f32.mxu0 %vm5798_vm0, %v5790_v0 }
 0x967   : > { %5121 = vmatprep.subr.bf16.mxu0 %v5795_v62 }
 0x968   : > { %5156 = vmatpush3.bf16.msra.mxu1 %v5155_v17 }
 0x969   : > { %4624 = vmatprep.subr.mxu1 %v5790_v0 }
 0x96a   : > { %5123 = vmatpush3.bf16.msra.mxu0 %v5122_v27 }
 0x96b   : > { %5124 = vmatprep.subr.bf16.mxu0 %v5795_v62 }
 0x96c   : > { %4625 = vmatpush3.msra.mxu1 %v3866_v31 }
 0x96e   : > { %5126 = vmatpush3.bf16.msra.mxu0 %v5125_v48 }
 0x96f   : > { %5127 = vmatprep.subr.bf16.mxu0 %v5795_v62 }
 0x972   : > { %5129 = vmatpush3.bf16.msra.mxu0 %v5128_v51  ;;  %v3952_v51 = vld [vmem:[%s6854_s13 + $0x48] sm:$0xff] }
 0x973   : > { %5130 = vmatprep.subr.bf16.mxu0 %v5795_v62  ;;  %v5170_v52 = vpack.c.bf16 %v3952_v51, %v3951_v50 }
 0x976   : > { %5132 = vmatpush3.bf16.msra.mxu0 %v5131_v53  ;;  %v3867_v53 = vld [vmem:[#allocation14] sm:$0x1] }
 0x977   : > { %5133 = vmatprep.subr.bf16.mxu0 %v5795_v62 }
 0x97a   : > { %5135 = vmatpush3.bf16.msra.mxu0 %v5134_v56 }
 0x97b   : > { %5157 = vmatprep.subr.bf16.mxu0 %v5795_v62 }
 0x97d   : > { %4594 = vmatmul.mubr.msk.f32.vlgmr.msra.gmra.mrb[18].mxu0 %vm3360_vm1, %v3775_v57 }
 0x97e   : > { %4651 = vmatprep.mubr.msk.f32.mxu0 %vm5798_vm0, %v5790_v0  ;;  %5159 = vmatpush3.bf16.msra.mxu0 %v5158_v19 }
 0x97f   : > { %5160 = vmatprep.subr.bf16.mxu0 %v5795_v62 }
 0x982   : > { %5162 = vmatpush3.bf16.msra.mxu0 %v5161_v21 }
 0x983   : > { %5163 = vmatprep.subr.bf16.mxu0 %v5795_v62 }
 0x986   : > { %5165 = vmatpush3.bf16.msra.mxu0 %v5164_v15 }
 0x987   : > { %5166 = vmatprep.subr.bf16.mxu0 %v5795_v62 }
 0x98a   : > { %5168 = vmatpush3.bf16.msra.mxu0 %v5167_v13 }
 0x98b   : > { %5169 = vmatprep.subr.bf16.mxu0 %v5795_v62 }
 0x98e   : > { %5171 = vmatpush3.bf16.msra.mxu0 %v5170_v52 }
 0x98f   : > { %4649 = vmatprep.subr.mxu0 %v5790_v0 }
 0x992   : > { %4650 = vmatpush3.msk.msra.mxu0 %vm3158_vm12, %v3953_v16 }
 0xa08   : > { %v3429_v28 = vpop.f32.mrb[12].mxu0  ;;  %v3586_v29 = vpop.f32.mrb[12].mxu1 }
 0xa09   : > { %v4460_v30 = vpop.f32.mrb[13].mxu0  ;;  %v4514_v35 = vpop.f32.mrb[13].mxu1 }
 0xa20   : > { %v3501_v36 = vpop.f32.mrb[14].mxu0  ;;  %v3758_v38 = vpop.f32.mrb[14].mxu1 }
 0xa21   : > { %v3502_v4 = vadd.f32 %v3501_v36, %v3429_v28  ;;  %v4487_v40 = vpop.f32.mrb[15].mxu0  ;;  %v4568_v25 = vpop.f32.mrb[15].mxu1 }
 0xa23   : > { %v3590_v41 = vadd.f32 %v3586_v29, %v3502_v4 }
 0xa38   : > { %v3672_v42 = vpop.f32.mrb[16].mxu0 }
 0xa39   : > { %v3676_v43 = vadd.f32 %v3672_v42, %v3590_v41  ;;  %v4541_v44 = vpop.f32.mrb[17].mxu0 }
 0xa3b   : > { %v3762_v45 = vadd.f32 %v3758_v38, %v3676_v43 }
 0xa50   : > { %v3844_v27 = vpop.f32.mrb[18].mxu0 }
 0xa51   : > { %v3848_v62 = vadd.f32 %v3844_v27, %v3762_v45  ;;  %v4595_v47 = vpop.f32.mrb[19].mxu0 }
 0xa53   : > { %v3850_v48 = vadd.f32 %v3849_v26, %v3848_v62 }
 0xa55   : > { %v3851_v49 = vmax.f32 %v3850_v48, 0.0 }
 0xa57   : > { %4627 = vmatmul.mubr.msk.f32.vlgmr.msra.gmra.mrb[16].mxu1 %vm3868_vm2, %v3851_v49 }
 0xb2a   : > { %v3938_v54 = vpop.f32.mrb[16].mxu1 }
 0xb2b   : > { %v3939_v55 = vadd.f32 %v3938_v54, %v3867_v53  ;;  %v4628_v56 = vpop.f32.mrb[17].mxu1 }
 0xb2d   : > { %v3942_v57 = vmax.f32 %v3939_v55, 0.0 }
 0xb2f   : > { %4652 = vmatmul.mubr.msk.f32.vlgmr.msra.gmra.mrb[20].mxu0 %vm3955_vm3, %v3942_v57 }
 0xc02   : > { %v4028_v0 = vpop.f32.mrb[20].mxu0 }
 0xc03   : > { %v4029_v59 = vadd.f32 %v4028_v0, %v3954_v58  ;;  %v4653_v60 = vpop.f32.mrb[21].mxu0 }
 0xc05   : > { %4033 = vst.msk [vmem:[%s607_s30] sm:$0x1] %vm4032_vm4, %v4029_v59 }
 0xc06   : > { %5706 = shalt.err (!%p5703_p9)
}
 0xc07   : > { %s5707_s16 = scalar_lea.hbm %s6799_s18, 16  ;;  %s5711_s21 = scalar_lea.hbm %s6907_s17, 32 }
 0xc08   : > { %p5708_p12 = scmp.ne.s32.totalorder %s6799_s18, %s5707_s16  ;;  %p5712_p3 = scmp.lt.u32.totalorder %s6799_s18, %s6907_s17 }
 0xc09   : > { %p5713_p4 = scmp.lt.u32.totalorder %s5711_s21, %s5707_s16  ;;  %p5715_p8 = scmp.lt.u32.totalorder %s5707_s16, %s6799_s18 }
 0xc0a   : > { %p5709_p10 = pnand %p5708_p12, %p6908_p11 }
 0xc0b   : > { %p5714_p7 = por %p5713_p4, %p5712_p3 }
 0xc0c   : > { %p5710_p2 = pneg %p5709_p10 }
 0xc0d   : > { %p5716_p13 = por %p5715_p8, %p5714_p7 }
 0xc0f   : > { %p5717_p1 = pnand %p5716_p13, %p5710_p2 }
 0xc11   : > { %5720 = shalt.err (!%p5717_p1)
}
 0xc12   : > { %5304 = dma.vmem_to_hbm [thread:$0]  (%p6908_p11), %s6801_s23, 16, %s6799_s18, %s4035_s26  }
 0xc13 PF: > { %s6909_s30 = sld [smem:[#allocation27_spill]]  ;;  %s6910_s2 = sld [smem:[#allocation24_spill]] }
 0xc14   : > { %s6911_s27 = sld [smem:[#allocation31_spill]] }
 0xc19   : > { %p5356_p0 = scmp.ge.s32.totalorder %s6909_s30, 2  ;;  %s4059_s20 = sand.u32 1, %s6910_s2  }
 0xc1a   : > { %p6912_p6 = scmp.ne.s32.totalorder %s6911_s27, 0  ;;  %s4060_s22 = scalar_lea.sflag [#allocation4], %s4059_s20 }
 0xc1c   : > { %p5335_p5 = pnand %p5356_p0, %p6912_p6 }
 0xc1e   : > { %5758 = dma.done.wait (!%p5335_p5), %s4060_s22, 16  }
 0xc1f   : > { %5760 = vsyncadd (!%p5335_p5), %s4060_s22, 4294967280  ;;  %s6913_s21 = sld [smem:[#allocation28_spill]]  ;;  %s6914_s18 = sld [smem:[#allocation25_spill]] }
 0xc20   : > { %s6915_s19 = sld [smem:[#allocation26_spill]]  ;;  %s6916_s20 = sld [smem:[#allocation29_spill]] }
 0xc25   : > { %p30_p9 = scmp.ge.s32.totalorder %s6913_s21, 4  }
 0xc27   :  { %32 = sbr.rel (!%p30_p9) target bundleno = 12 (0xc), region = 168 }
 0xc2e   :  { %4064 = vsyncpa [#allocation3], 1 }
 0xc2f   :  { %4066 = vsyncpa [#allocation3 + $0x1], 1 }
 0xc30   :  { %4067 = vsyncpa [#allocation6], 1 }
 0xc31   :  { %4068 = vsyncpa [#allocation9], 1 }
 0xc32   :  { %4069 = vsyncpa [#allocation12], 1 }
 0xc33   :  { %4070 = vsyncpa [#allocation15], 1 }
 0xc34   :  { %4071 = vsyncpa [#allocation4], 1 }
 0xc35   :  { %4073 = vsyncpa [#allocation4 + $0x1], 1 }

</bundles_post_ra>
